<compile_context>
chip_gen: v5e
topology: v5e:2x2
jax: 0.10.0
libtpu: 0.0.40
codegen_flags: <defaults>
</compile_context>

<pallas_src>
import functools

import jax
import jax.numpy as jnp
import numpy as np
from jax.experimental import pallas as pl
from jax.experimental.pallas import tpu as pltpu

NEG_SLOPE = 0.01          # nn.LeakyReLU default
HIDDEN = 512
NUM_STACK = 16

JTS_INP_DIM = 29 * 3 + 29            # 116
JTS_OUT_DIM = 24 * 6                 # 144
PHI_TOT_DIM = 23 * 2                 # 46
SHAPE_TOT_DIM = 10
ZES_DIM = 32
JTS_TOT_DIM_1 = JTS_OUT_DIM + ZES_DIM        # 176
ZX_DIM = JTS_TOT_DIM_1 - JTS_INP_DIM         # 60
JTS_TOT_DIM_2 = JTS_OUT_DIM + PHI_TOT_DIM    # 190
ZET_DIM = PHI_TOT_DIM                        # 46


def _round_up(x, m):
    return -(-x // m) * m


def _slab_layout(dim, hidden=HIDDEN):
    """Row offsets of every weight section inside the packed per-layer slab.

    Slab layout (rows x 512 lanes, bf16), per coupling layer:
      [w1s_act | w1t_act | w2s | w2t | w3sT_act | w3tT_act | 6 bias rows]
    w1 keeps only the rows of conditioning (mask==1) features; w3 keeps only
    the columns of transformed (mask==0) features, stored transposed so the
    tile is (D/2, 512) and lane-dense.  Section offsets are 16-aligned (bf16
    sublane tile) so in-kernel slices are cheap views.
    """
    dh = dim // 2
    dh16 = _round_up(dh, 16)
    offs = (
        0,                          # w1s_act  (dh, H)
        dh16,                       # w1t_act  (dh, H)
        2 * dh16,                   # w2s      (H, H)
        2 * dh16 + hidden,          # w2t      (H, H)
        2 * dh16 + 2 * hidden,      # w3sT_act (dh, H)
        3 * dh16 + 2 * hidden,      # w3tT_act (dh, H)
        4 * dh16 + 2 * hidden,      # bias block: bs1,bt1,bs2,bt2,bs3,bt3
    )
    rows = offs[-1] + 16
    return dh, offs, rows


# ---------------------------------------------------------------------------
# Pallas kernel: one RealNVP affine-coupling layer per grid step.
# grid axis = coupling-layer index (sequential carry -> "arbitrary").
# z_ref (output block, shape (2, N, D/2) = (even half, odd half)) is resident
# across the grid and acts as the flow state.  Dropout = identity (eval mode).
# ---------------------------------------------------------------------------
def _coupling_kernel(x_ref, w_ref, z_ref, *, inverse, n_layers, dh, offs):
    i = pl.program_id(0)

    @pl.when(i == 0)
    def _():
        z_ref[...] = x_ref[...]

    # original coupling-layer index (inverse_p walks the layers in reverse)
    layer = (n_layers - 1 - i) if inverse else i
    parity = layer % 2
    is_even = parity == 0        # mask row [0,1,0,1,...] -> condition on odd half

    z0 = z_ref[0]                # even-indexed original features, (N, dh)
    z1 = z_ref[1]                # odd-indexed original features,  (N, dh)
    zc = jnp.where(is_even, z1, z0)      # conditioning half (mask == 1)
    zt = jnp.where(is_even, z0, z1)      # transformed half  (mask == 0)

    zcb = zc.astype(jnp.bfloat16)
    o_w1s, o_w1t, o_w2s, o_w2t, o_w3s, o_w3t, o_b = offs
    bias = w_ref[pl.ds(o_b, 6), :].astype(jnp.float32)   # [bs1,bt1,bs2,bt2,bs3,bt3]

    def mlp(o1, o2, o3, b1, b2, b3):
        h = jnp.dot(zcb, w_ref[pl.ds(o1, dh), :],
                    preferred_element_type=jnp.float32) + b1
        h = jnp.where(h >= 0, h, NEG_SLOPE * h)                       # LeakyReLU
        h = jnp.dot(h.astype(jnp.bfloat16), w_ref[pl.ds(o2, HIDDEN), :],
                    preferred_element_type=jnp.float32) + b2
        h = jnp.where(h >= 0, h, NEG_SLOPE * h)                       # LeakyReLU
        out = jax.lax.dot_general(                                    # h @ w3_act (w3 stored transposed)
            h.astype(jnp.bfloat16), w_ref[pl.ds(o3, dh), :],
            (((1,), (1,)), ((), ())), preferred_element_type=jnp.float32)
        return out + b3

    s = jnp.tanh(mlp(o_w1s, o_w2s, o_w3s, bias[0], bias[2], bias[4, :dh]))
    t = mlp(o_w1t, o_w2t, o_w3t, bias[1], bias[3], bias[5, :dh])

    if inverse:
        upd = (zt - t) * jnp.exp(-s)     # inverse_p on the transformed half
    else:
        upd = zt * jnp.exp(s) + t        # forward_p on the transformed half

    @pl.when(parity == 0)
    def _():
        z_ref[0] = upd

    @pl.when(parity == 1)
    def _():
        z_ref[1] = upd


def run_realnvp(x, slab, *, inverse):
    """Run a full RealNVP flow (NUM_STACK coupling layers) on x: (N, D) f32."""
    N, D = x.shape
    dh, offs, rows = _slab_layout(D)
    L, R, H = slab.shape
    assert (R, H) == (rows, HIDDEN), (slab.shape, rows)

    # split features into (even, odd) halves -> (2, N, dh)
    x2 = jnp.stack([x[:, 0::2], x[:, 1::2]], axis=0)
    npad = _round_up(max(N, 8), 8)
    if npad != N:
        x2 = jnp.pad(x2, ((0, 0), (0, npad - N), (0, 0)))

    order = (lambda i: L - 1 - i) if inverse else (lambda i: i)
    kernel = functools.partial(_coupling_kernel, inverse=inverse,
                               n_layers=L, dh=dh, offs=offs)

    out2 = pl.pallas_call(
        kernel,
        out_shape=jax.ShapeDtypeStruct((2, npad, dh), jnp.float32),
        grid_spec=pltpu.PrefetchScalarGridSpec(
            num_scalar_prefetch=0,
            grid=(L,),
            in_specs=[
                pl.BlockSpec((2, npad, dh), lambda i: (0, 0, 0)),        # initial state (fetched once)
                pl.BlockSpec((None, R, H), lambda i: (order(i), 0, 0)),  # packed layer slab (one DMA/step)
            ],
            out_specs=pl.BlockSpec((2, npad, dh), lambda i: (0, 0, 0)),  # resident carry
        ),
        compiler_params=pltpu.CompilerParams(
            dimension_semantics=("arbitrary",),
            vmem_limit_bytes=32 << 20),
    )(x2, slab)

    # re-interleave even/odd halves back to the original feature order
    out = jnp.stack([out2[0], out2[1]], axis=-1).reshape(npad, D)
    return out[:N]


# ---------------------------------------------------------------------------
# Parameter packing (host side, done once)
# ---------------------------------------------------------------------------
def pack_flow_params(raw, dim, hidden=HIDDEN):
    """Pack raw f32 flow params into the per-layer bf16 weight slab."""
    L = raw['ws1'].shape[0]
    dh, offs, rows = _slab_layout(dim, hidden)
    o_w1s, o_w1t, o_w2s, o_w2t, o_w3s, o_w3t, o_b = offs
    even = np.arange(0, dim, 2)
    odd = np.arange(1, dim, 2)
    r = {k: np.asarray(v, np.float32) for k, v in raw.items()}
    slab = np.zeros((L, rows, hidden), np.float32)
    for l in range(L):
        cond = odd if (l % 2 == 0) else even     # mask == 1 (conditioning) features
        tgt = even if (l % 2 == 0) else odd      # mask == 0 (transformed) features
        slab[l, o_w1s:o_w1s + dh] = r['ws1'][l][cond, :]
        slab[l, o_w1t:o_w1t + dh] = r['wt1'][l][cond, :]
        slab[l, o_w2s:o_w2s + hidden] = r['ws2'][l]
        slab[l, o_w2t:o_w2t + hidden] = r['wt2'][l]
        slab[l, o_w3s:o_w3s + dh] = r['ws3'][l][:, tgt].T
        slab[l, o_w3t:o_w3t + dh] = r['wt3'][l][:, tgt].T
        slab[l, o_b + 0] = r['bs1'][l]
        slab[l, o_b + 1] = r['bt1'][l]
        slab[l, o_b + 2] = r['bs2'][l]
        slab[l, o_b + 3] = r['bt2'][l]
        slab[l, o_b + 4, :dh] = r['bs3'][l][tgt]
        slab[l, o_b + 5, :dh] = r['bt3'][l][tgt]
    return jnp.asarray(slab).astype(jnp.bfloat16)


def init_flow_params(key, num_stack, dim, hidden=HIDDEN, w_scale=0.04, b_scale=0.02):
    ks = jax.random.split(key, 12)
    def w(k, shape, s):
        return s * jax.random.normal(k, shape, dtype=jnp.float32)
    L, D, H = num_stack, dim, hidden
    return dict(
        ws1=w(ks[0], (L, D, H), w_scale), bs1=w(ks[1], (L, H), b_scale),
        ws2=w(ks[2], (L, H, H), w_scale), bs2=w(ks[3], (L, H), b_scale),
        ws3=w(ks[4], (L, H, D), w_scale), bs3=w(ks[5], (L, D), b_scale),
        wt1=w(ks[6], (L, D, H), w_scale), bt1=w(ks[7], (L, H), b_scale),
        wt2=w(ks[8], (L, H, H), w_scale), bt2=w(ks[9], (L, H), b_scale),
        wt3=w(ks[10], (L, H, D), w_scale), bt3=w(ks[11], (L, D), b_scale),
    )


# ---------------------------------------------------------------------------
# Test-only plain-JAX reference (full-width masked math, matching the kernel's
# bf16-weight / bf16-activation, f32-accumulate arithmetic).
# ---------------------------------------------------------------------------
def build_masks(num_stack, dim):
    row0 = jnp.tile(jnp.array([0.0, 1.0], jnp.float32), dim // 2)
    row1 = jnp.tile(jnp.array([1.0, 0.0], jnp.float32), dim // 2)
    return jnp.tile(jnp.stack([row0, row1], axis=0), (num_stack // 2, 1))


def realnvp_reference(x, raw, masks, *, inverse):
    bf = lambda a: a.astype(jnp.bfloat16)
    f32 = jnp.float32
    L = masks.shape[0]
    idxs = range(L - 1, -1, -1) if inverse else range(L)
    z = x
    for l in idxs:
        m = masks[l]
        one_m = 1.0 - m
        zm = z * m

        def mlp(w1, b1, w2, b2, w3, b3):
            h = jnp.dot(bf(zm), bf(w1), preferred_element_type=f32) + bf(b1).astype(f32)
            h = jnp.where(h >= 0, h, NEG_SLOPE * h)
            h = jnp.dot(bf(h), bf(w2), preferred_element_type=f32) + bf(b2).astype(f32)
            h = jnp.where(h >= 0, h, NEG_SLOPE * h)
            return jnp.dot(bf(h), bf(w3), preferred_element_type=f32) + bf(b3).astype(f32)

        s = jnp.tanh(mlp(raw['ws1'][l], raw['bs1'][l], raw['ws2'][l], raw['bs2'][l],
                         raw['ws3'][l], raw['bs3'][l])) * one_m
        t = mlp(raw['wt1'][l], raw['bt1'][l], raw['wt2'][l], raw['bt2'][l],
                raw['wt3'][l], raw['bt3'][l]) * one_m
        if inverse:
            z = one_m * (z - t) * jnp.exp(-s) + zm
        else:
            z = zm + one_m * (z * jnp.exp(s) + t)
    return z


# ---------------------------------------------------------------------------
# Plain-JAX glue
# ---------------------------------------------------------------------------
def align_root(xyz_29):
    shape = xyz_29.shape
    xyz_29 = xyz_29.reshape(-1, 29, 3)
    xyz_29 = xyz_29 - xyz_29[:, :1, :]
    return xyz_29.reshape(shape)


def rotation_6d_to_matrix(d6):
    a1, a2 = d6[..., :3], d6[..., 3:]
    b1 = a1 / jnp.maximum(jnp.linalg.norm(a1, axis=-1, keepdims=True), 1e-12)
    b2 = a2 - jnp.sum(b1 * a2, axis=-1, keepdims=True) * b1
    b2 = b2 / jnp.maximum(jnp.linalg.norm(b2, axis=-1, keepdims=True), 1e-12)
    b3 = jnp.cross(b1, b2)
    return jnp.stack((b1, b2, b3), axis=-2)


def nikits_forward(inp, params, noise_key):
    joints = inp['pred_xyz_29']
    B, S = joints.shape[:2]
    N = B * S

    input_joints = align_root(joints.reshape(N, 29 * 3))                  # (N, 87)
    input_sigma = inp['pred_sigma'].reshape(N, 29)                        # (N, 29)
    phis = inp['pred_phi'].reshape(B, S, 23, 2)
    phis = phis / (jnp.linalg.norm(phis, axis=3, keepdims=True) + 1e-8)
    input_phis = phis.reshape(N, 23 * 2)                                  # (N, 46)
    pred_beta = inp['pred_beta'].reshape(N, 10)

    zx = 0.001 * jax.random.normal(noise_key, (N, ZX_DIM), dtype=jnp.float32)
    input1 = jnp.concatenate([input_joints, input_sigma, zx], axis=1)     # (N, 176)

    # flow_j2s.inverse_p (ShapeCondRealNVP with use_shape=False -> plain RealNVP)
    pose_out1 = run_realnvp(input1, params['slab_j2s'], inverse=True)
    inv_pred2swingrot6d = pose_out1[:, :JTS_OUT_DIM]                      # (N, 144)
    inv_pred2zes = pose_out1[:, -ZES_DIM:]                                # (N, 32)

    input2 = jnp.concatenate([inv_pred2swingrot6d, input_phis], axis=1)   # (N, 190)

    # flow_s2r.inverse_p
    pose_out2 = run_realnvp(input2, params['slab_s2r'], inverse=True)
    inv_pred2rot6d = pose_out2[:, :JTS_OUT_DIM]                           # (N, 144)
    inv_pred2zet = pose_out2[:, -ZET_DIM:]                                # (N, 46)

    inv_pred_rotmat = rotation_6d_to_matrix(inv_pred2rot6d.reshape(N, 24, 6))

    # TODO(synk): smpl_layer(...) outputs (verts, pred_xyz_29, pred_xyz_17,
    # refined rot_mats) require SMPL model files and are not reproduced.
    return dict(
        inv_pred2swingrot6d=inv_pred2swingrot6d.reshape(B, S, 24, 6),
        inv_pred2rot6d=inv_pred2rot6d.reshape(B, S, 24, 6),
        inv_pred2rotmat=inv_pred_rotmat.reshape(B, S, 24, 3, 3),
        pred_shape=pred_beta,
        pred_beta=pred_beta,
        pred_phi=inp['pred_phi'],
        pred_cam=inp['pred_cam'],
        inv_pred2zes=inv_pred2zes.reshape(B, S, ZES_DIM),
        inv_pred2zet=inv_pred2zet.reshape(B, S, ZET_DIM),
    )


if __name__ == "__main__":
    key = jax.random.PRNGKey(0)
    k_in, k_p1, k_p2, k_noise, k_chk = jax.random.split(key, 5)

    B, S = 2, 8   # batch=2, seq_len=8 -> N = 16 rows

    ki = jax.random.split(k_in, 5)
    inp = dict(
        pred_xyz_29=0.1 * jax.random.normal(ki[0], (B, S, 29, 3), jnp.float32),
        pred_beta=0.5 * jax.random.normal(ki[1], (B, S, 10), jnp.float32),
        pred_sigma=0.1 * jax.random.uniform(ki[2], (B, S, 29), jnp.float32) + 0.01,
        pred_phi=jax.random.normal(ki[3], (B, S, 23, 2), jnp.float32),
        pred_cam=jax.random.normal(ki[4], (B, S, 3), jnp.float32),
    )

    raw1 = init_flow_params(k_p1, NUM_STACK, JTS_TOT_DIM_1)
    raw2 = init_flow_params(k_p2, NUM_STACK, JTS_TOT_DIM_2)
    params = dict(
        slab_j2s=pack_flow_params(raw1, JTS_TOT_DIM_1),
        slab_s2r=pack_flow_params(raw2, JTS_TOT_DIM_2),
    )

    # Correctness check: packed bf16 Pallas flow vs. full-width plain-JAX
    # reference that uses identically-quantized weights/activations.
    kc1, kc2 = jax.random.split(k_chk)
    for raw, slab, dim, kc in ((raw1, params['slab_j2s'], JTS_TOT_DIM_1, kc1),
                               (raw2, params['slab_s2r'], JTS_TOT_DIM_2, kc2)):
        x_chk = 0.5 * jax.random.normal(kc, (B * S, dim), jnp.float32)
        got = jax.jit(functools.partial(run_realnvp, inverse=True))(x_chk, slab)
        ref = jax.jit(functools.partial(realnvp_reference, inverse=True))(
            x_chk, raw, build_masks(NUM_STACK, dim))
        err = float(jnp.max(jnp.abs(got - ref)))
        assert err < 2e-2, f"flow mismatch (dim={dim}): max abs err {err}"

    out = jax.jit(nikits_forward)(inp, params, k_noise)
    jax.block_until_ready(out)

    assert out['inv_pred2swingrot6d'].shape == (B, S, 24, 6)
    assert out['inv_pred2rot6d'].shape == (B, S, 24, 6)
    assert out['inv_pred2rotmat'].shape == (B, S, 24, 3, 3)
    assert out['inv_pred2zes'].shape == (B, S, ZES_DIM)
    assert out['inv_pred2zet'].shape == (B, S, ZET_DIM)
    assert not bool(jnp.isnan(out['inv_pred2rot6d']).any())
    assert not bool(jnp.isnan(out['inv_pred2rotmat']).any())
    print("KERNEL_OK")
</pallas_src>

<mosaic_0001>
module attributes {stable_mosaic.version = 11 : i64} {
  func.func @_coupling_kernel(%arg0: i32, %arg1: memref<2x16x88xf32, #tpu.memory_space<vmem>>, %arg2: memref<1x1424x512xbf16, #tpu.memory_space<vmem>>, %arg3: memref<2x16x88xf32, #tpu.memory_space<vmem>>) attributes {dimension_semantics = [#tpu.dimension_semantics<arbitrary>], iteration_bounds = array<i64: 16>, scalar_prefetch = 0 : i64, scratch_operands = 0 : i64, tpu.core_type = #tpu.core_type<tc>, window_params = [{pipeline_mode = #tpu.pipeline_mode<synchronous>, transform_indices = @transform_0, window_bounds = array<i64: 2, 16, 88>}, {transform_indices = @transform_1, window_bounds = array<i64: 1, 1424, 512>}, {pipeline_mode = #tpu.pipeline_mode<synchronous>, transform_indices = @transform_2, window_bounds = array<i64: 2, 16, 88>}]} {
    %c0_i32 = arith.constant 0 : i32
    %0 = arith.cmpi eq, %arg0, %c0_i32 : i32
    %1 = arith.extui %0 : i1 to i32
    %c0_i32_0 = arith.constant 0 : i32
    %2 = arith.cmpi ne, %1, %c0_i32_0 : i32
    scf.if %2 {
      %c0_43 = arith.constant 0 : index
      %c0_44 = arith.constant 0 : index
      %c0_45 = arith.constant 0 : index
      %109 = vector.load %arg1[%c0_43, %c0_44, %c0_45] : memref<2x16x88xf32, #tpu.memory_space<vmem>>, vector<2x16x88xf32>
      %c0_46 = arith.constant 0 : index
      %c0_47 = arith.constant 0 : index
      %c0_48 = arith.constant 0 : index
      %110 = vector.load %arg3[%c0_46, %c0_47, %c0_48] : memref<2x16x88xf32, #tpu.memory_space<vmem>>, vector<2x16x88xf32>
      tpu.vector_store %arg3[%c0_46, %c0_47, %c0_48], %109 {strides = array<i32>} : memref<2x16x88xf32, #tpu.memory_space<vmem>>, vector<2x16x88xf32>,
    } else {
    }
    %c15_i32 = arith.constant 15 : i32
    %3 = arith.subi %c15_i32, %arg0 : i32
    %c2_i32 = arith.constant 2 : i32
    %c0_i32_1 = arith.constant 0 : i32
    %4 = arith.cmpi eq, %c2_i32, %c0_i32_1 : i32
    %c1_i32 = arith.constant 1 : i32
    %5 = arith.select %4, %c1_i32, %c2_i32 : i32
    %6 = arith.remsi %3, %5 : i32
    %c0_i32_2 = arith.constant 0 : i32
    %7 = arith.cmpi ne, %6, %c0_i32_2 : i32
    %c0_i32_3 = arith.constant 0 : i32
    %8 = arith.cmpi slt, %6, %c0_i32_3 : i32
    %c0_i32_4 = arith.constant 0 : i32
    %9 = arith.cmpi slt, %5, %c0_i32_4 : i32
    %10 = arith.xori %8, %9 : i1
    %11 = arith.andi %10, %7 : i1
    %12 = arith.addi %6, %5 : i32
    %13 = arith.select %11, %12, %6 : i32
    %c0_i32_5 = arith.constant 0 : i32
    %14 = arith.cmpi eq, %13, %c0_i32_5 : i32
    %c0 = arith.constant 0 : index
    %c0_6 = arith.constant 0 : index
    %c0_7 = arith.constant 0 : index
    %15 = vector.load %arg3[%c0, %c0_6, %c0_7] : memref<2x16x88xf32, #tpu.memory_space<vmem>>, vector<1x16x88xf32>
    %16 = vector.shape_cast %15 : vector<1x16x88xf32> to vector<16x88xf32>
    %c1 = arith.constant 1 : index
    %c0_8 = arith.constant 0 : index
    %c0_9 = arith.constant 0 : index
    %17 = vector.load %arg3[%c1, %c0_8, %c0_9] : memref<2x16x88xf32, #tpu.memory_space<vmem>>, vector<1x16x88xf32>
    %18 = vector.shape_cast %17 : vector<1x16x88xf32> to vector<16x88xf32>
    %19 = arith.select %14, %18, %16 : vector<16x88xf32>
    %20 = arith.select %14, %16, %18 : vector<16x88xf32>
    %21 = arith.truncf %19 : vector<16x88xf32> to vector<16x88xbf16>
    %c0_10 = arith.constant 0 : index
    %c1408 = arith.constant 1408 : index
    %c0_11 = arith.constant 0 : index
    %22 = vector.load %arg2[%c0_10, %c1408, %c0_11] : memref<1x1424x512xbf16, #tpu.memory_space<vmem>>, vector<1x6x512xbf16>
    %23 = vector.shape_cast %22 : vector<1x6x512xbf16> to vector<6x512xbf16>
    %24 = arith.extf %23 : vector<6x512xbf16> to vector<6x512xf32>
    %25 = vector.extract_strided_slice %24 {offsets = [0, 0], sizes = [1, 512], strides = [1, 1]} : vector<6x512xf32> to vector<1x512xf32>
    %26 = vector.shape_cast %25 : vector<1x512xf32> to vector<512xf32>
    %27 = vector.extract_strided_slice %24 {offsets = [2, 0], sizes = [1, 512], strides = [1, 1]} : vector<6x512xf32> to vector<1x512xf32>
    %28 = vector.shape_cast %27 : vector<1x512xf32> to vector<512xf32>
    %29 = vector.extract_strided_slice %24 {offsets = [4, 0], sizes = [1, 88], strides = [1, 1]} : vector<6x512xf32> to vector<1x88xf32>
    %30 = vector.shape_cast %29 : vector<1x88xf32> to vector<88xf32>
    %c0_12 = arith.constant 0 : index
    %c0_13 = arith.constant 0 : index
    %c0_14 = arith.constant 0 : index
    %31 = vector.load %arg2[%c0_12, %c0_13, %c0_14] : memref<1x1424x512xbf16, #tpu.memory_space<vmem>>, vector<1x88x512xbf16>
    %32 = vector.shape_cast %31 : vector<1x88x512xbf16> to vector<88x512xbf16>
    %cst = arith.constant dense<0.000000e+00> : vector<16x512xf32>
    %33 = tpu.matmul %21, %32, %cst {dimension_numbers = #tpu.dot_dimension_numbers<[1], [0], [0], [1], [0, 0, 1, 1], [], []>} : vector<16x88xbf16>, vector<88x512xbf16>, vector<16x512xf32> -> vector<16x512xf32>
    %34 = vector.shape_cast %26 : vector<512xf32> to vector<1x512xf32>
    %35 = vector.broadcast %34 : vector<1x512xf32> to vector<16x512xf32>
    %36 = arith.addf %33, %35 : vector<16x512xf32>
    %cst_15 = arith.constant 0.000000e+00 : f32
    %37 = vector.broadcast %cst_15 : f32 to vector<16x512xf32>
    %38 = arith.cmpf oge, %36, %37 : vector<16x512xf32>
    %cst_16 = arith.constant 0.00999999977 : f32
    %39 = vector.broadcast %cst_16 : f32 to vector<16x512xf32>
    %40 = arith.mulf %39, %36 : vector<16x512xf32>
    %41 = arith.select %38, %36, %40 : vector<16x512xi1>, vector<16x512xf32>
    %42 = arith.truncf %41 : vector<16x512xf32> to vector<16x512xbf16>
    %c0_17 = arith.constant 0 : index
    %c192 = arith.constant 192 : index
    %c0_18 = arith.constant 0 : index
    %43 = vector.load %arg2[%c0_17, %c192, %c0_18] : memref<1x1424x512xbf16, #tpu.memory_space<vmem>>, vector<1x512x512xbf16>
    %44 = vector.shape_cast %43 : vector<1x512x512xbf16> to vector<512x512xbf16>
    %cst_19 = arith.constant dense<0.000000e+00> : vector<16x512xf32>
    %45 = tpu.matmul %42, %44, %cst_19 {dimension_numbers = #tpu.dot_dimension_numbers<[1], [0], [0], [1], [0, 0, 1, 1], [], []>} : vector<16x512xbf16>, vector<512x512xbf16>, vector<16x512xf32> -> vector<16x512xf32>
    %46 = vector.shape_cast %28 : vector<512xf32> to vector<1x512xf32>
    %47 = vector.broadcast %46 : vector<1x512xf32> to vector<16x512xf32>
    %48 = arith.addf %45, %47 : vector<16x512xf32>
    %cst_20 = arith.constant 0.000000e+00 : f32
    %49 = vector.broadcast %cst_20 : f32 to vector<16x512xf32>
    %50 = arith.cmpf oge, %48, %49 : vector<16x512xf32>
    %cst_21 = arith.constant 0.00999999977 : f32
    %51 = vector.broadcast %cst_21 : f32 to vector<16x512xf32>
    %52 = arith.mulf %51, %48 : vector<16x512xf32>
    %53 = arith.select %50, %48, %52 : vector<16x512xi1>, vector<16x512xf32>
    %54 = arith.truncf %53 : vector<16x512xf32> to vector<16x512xbf16>
    %c0_22 = arith.constant 0 : index
    %c1216 = arith.constant 1216 : index
    %c0_23 = arith.constant 0 : index
    %55 = vector.load %arg2[%c0_22, %c1216, %c0_23] : memref<1x1424x512xbf16, #tpu.memory_space<vmem>>, vector<1x88x512xbf16>
    %56 = vector.shape_cast %55 : vector<1x88x512xbf16> to vector<88x512xbf16>
    %cst_24 = arith.constant dense<0.000000e+00> : vector<16x88xf32>
    %57 = tpu.matmul %54, %56, %cst_24 {dimension_numbers = #tpu.dot_dimension_numbers<[1], [1], [0], [0], [0, 0, 1, 0], [], []>} : vector<16x512xbf16>, vector<88x512xbf16>, vector<16x88xf32> -> vector<16x88xf32>
    %58 = vector.shape_cast %30 : vector<88xf32> to vector<1x88xf32>
    %59 = vector.broadcast %58 : vector<1x88xf32> to vector<16x88xf32>
    %60 = arith.addf %57, %59 : vector<16x88xf32>
    %61 = math.tanh %60 : vector<16x88xf32>
    %62 = vector.extract_strided_slice %24 {offsets = [1, 0], sizes = [1, 512], strides = [1, 1]} : vector<6x512xf32> to vector<1x512xf32>
    %63 = vector.shape_cast %62 : vector<1x512xf32> to vector<512xf32>
    %64 = vector.extract_strided_slice %24 {offsets = [3, 0], sizes = [1, 512], strides = [1, 1]} : vector<6x512xf32> to vector<1x512xf32>
    %65 = vector.shape_cast %64 : vector<1x512xf32> to vector<512xf32>
    %66 = vector.extract_strided_slice %24 {offsets = [5, 0], sizes = [1, 88], strides = [1, 1]} : vector<6x512xf32> to vector<1x88xf32>
    %67 = vector.shape_cast %66 : vector<1x88xf32> to vector<88xf32>
    %c0_25 = arith.constant 0 : index
    %c96 = arith.constant 96 : index
    %c0_26 = arith.constant 0 : index
    %68 = vector.load %arg2[%c0_25, %c96, %c0_26] : memref<1x1424x512xbf16, #tpu.memory_space<vmem>>, vector<1x88x512xbf16>
    %69 = vector.shape_cast %68 : vector<1x88x512xbf16> to vector<88x512xbf16>
    %cst_27 = arith.constant dense<0.000000e+00> : vector<16x512xf32>
    %70 = tpu.matmul %21, %69, %cst_27 {dimension_numbers = #tpu.dot_dimension_numbers<[1], [0], [0], [1], [0, 0, 1, 1], [], []>} : vector<16x88xbf16>, vector<88x512xbf16>, vector<16x512xf32> -> vector<16x512xf32>
    %71 = vector.shape_cast %63 : vector<512xf32> to vector<1x512xf32>
    %72 = vector.broadcast %71 : vector<1x512xf32> to vector<16x512xf32>
    %73 = arith.addf %70, %72 : vector<16x512xf32>
    %cst_28 = arith.constant 0.000000e+00 : f32
    %74 = vector.broadcast %cst_28 : f32 to vector<16x512xf32>
    %75 = arith.cmpf oge, %73, %74 : vector<16x512xf32>
    %cst_29 = arith.constant 0.00999999977 : f32
    %76 = vector.broadcast %cst_29 : f32 to vector<16x512xf32>
    %77 = arith.mulf %76, %73 : vector<16x512xf32>
    %78 = arith.select %75, %73, %77 : vector<16x512xi1>, vector<16x512xf32>
    %79 = arith.truncf %78 : vector<16x512xf32> to vector<16x512xbf16>
    %c0_30 = arith.constant 0 : index
    %c704 = arith.constant 704 : index
    %c0_31 = arith.constant 0 : index
    %80 = vector.load %arg2[%c0_30, %c704, %c0_31] : memref<1x1424x512xbf16, #tpu.memory_space<vmem>>, vector<1x512x512xbf16>
    %81 = vector.shape_cast %80 : vector<1x512x512xbf16> to vector<512x512xbf16>
    %cst_32 = arith.constant dense<0.000000e+00> : vector<16x512xf32>
    %82 = tpu.matmul %79, %81, %cst_32 {dimension_numbers = #tpu.dot_dimension_numbers<[1], [0], [0], [1], [0, 0, 1, 1], [], []>} : vector<16x512xbf16>, vector<512x512xbf16>, vector<16x512xf32> -> vector<16x512xf32>
    %83 = vector.shape_cast %65 : vector<512xf32> to vector<1x512xf32>
    %84 = vector.broadcast %83 : vector<1x512xf32> to vector<16x512xf32>
    %85 = arith.addf %82, %84 : vector<16x512xf32>
    %cst_33 = arith.constant 0.000000e+00 : f32
    %86 = vector.broadcast %cst_33 : f32 to vector<16x512xf32>
    %87 = arith.cmpf oge, %85, %86 : vector<16x512xf32>
    %cst_34 = arith.constant 0.00999999977 : f32
    %88 = vector.broadcast %cst_34 : f32 to vector<16x512xf32>
    %89 = arith.mulf %88, %85 : vector<16x512xf32>
    %90 = arith.select %87, %85, %89 : vector<16x512xi1>, vector<16x512xf32>
    %91 = arith.truncf %90 : vector<16x512xf32> to vector<16x512xbf16>
    %c0_35 = arith.constant 0 : index
    %c1312 = arith.constant 1312 : index
    %c0_36 = arith.constant 0 : index
    %92 = vector.load %arg2[%c0_35, %c1312, %c0_36] : memref<1x1424x512xbf16, #tpu.memory_space<vmem>>, vector<1x88x512xbf16>
    %93 = vector.shape_cast %92 : vector<1x88x512xbf16> to vector<88x512xbf16>
    %cst_37 = arith.constant dense<0.000000e+00> : vector<16x88xf32>
    %94 = tpu.matmul %91, %93, %cst_37 {dimension_numbers = #tpu.dot_dimension_numbers<[1], [1], [0], [0], [0, 0, 1, 0], [], []>} : vector<16x512xbf16>, vector<88x512xbf16>, vector<16x88xf32> -> vector<16x88xf32>
    %95 = vector.shape_cast %67 : vector<88xf32> to vector<1x88xf32>
    %96 = vector.broadcast %95 : vector<1x88xf32> to vector<16x88xf32>
    %97 = arith.addf %94, %96 : vector<16x88xf32>
    %98 = arith.subf %20, %97 : vector<16x88xf32>
    %cst_38 = arith.constant 0.000000e+00 : f32
    %99 = vector.broadcast %cst_38 : f32 to vector<16x88xf32>
    %100 = arith.subf %99, %61 : vector<16x88xf32>
    %101 = math.exp %100 : vector<16x88xf32>
    %102 = arith.mulf %98, %101 : vector<16x88xf32>
    %c0_i32_39 = arith.constant 0 : i32
    %103 = arith.cmpi eq, %13, %c0_i32_39 : i32
    %104 = arith.extui %103 : i1 to i32
    %c0_i32_40 = arith.constant 0 : i32
    %105 = arith.cmpi ne, %104, %c0_i32_40 : i32
    scf.if %105 {
      %c0_43 = arith.constant 0 : index
      %c0_44 = arith.constant 0 : index
      %c0_45 = arith.constant 0 : index
      %109 = vector.load %arg3[%c0_43, %c0_44, %c0_45] : memref<2x16x88xf32, #tpu.memory_space<vmem>>, vector<1x16x88xf32>
      %110 = vector.shape_cast %109 : vector<1x16x88xf32> to vector<16x88xf32>
      %111 = vector.shape_cast %102 : vector<16x88xf32> to vector<1x16x88xf32>
      tpu.vector_store %arg3[%c0_43, %c0_44, %c0_45], %111 {strides = array<i32>} : memref<2x16x88xf32, #tpu.memory_space<vmem>>, vector<1x16x88xf32>,
    } else {
    }
    %c1_i32_41 = arith.constant 1 : i32
    %106 = arith.cmpi eq, %13, %c1_i32_41 : i32
    %107 = arith.extui %106 : i1 to i32
    %c0_i32_42 = arith.constant 0 : i32
    %108 = arith.cmpi ne, %107, %c0_i32_42 : i32
    scf.if %108 {
      %c1_43 = arith.constant 1 : index
      %c0_44 = arith.constant 0 : index
      %c0_45 = arith.constant 0 : index
      %109 = vector.load %arg3[%c1_43, %c0_44, %c0_45] : memref<2x16x88xf32, #tpu.memory_space<vmem>>, vector<1x16x88xf32>
      %110 = vector.shape_cast %109 : vector<1x16x88xf32> to vector<16x88xf32>
      %111 = vector.shape_cast %102 : vector<16x88xf32> to vector<1x16x88xf32>
      tpu.vector_store %arg3[%c1_43, %c0_44, %c0_45], %111 {strides = array<i32>} : memref<2x16x88xf32, #tpu.memory_space<vmem>>, vector<1x16x88xf32>,
    } else {
    }
    return
  }
  func.func @transform_0(%arg0: i32) -> (i32, i32, i32) {
    %c0_i32 = arith.constant 0 : i32
    %c0_i32_0 = arith.constant 0 : i32
    %c0_i32_1 = arith.constant 0 : i32
    %c0_i32_2 = arith.constant 0 : i32
    return %c0_i32, %c0_i32_0, %c0_i32_1 : i32, i32, i32
  }
  func.func @transform_1(%arg0: i32) -> (i32, i32, i32) {
    %c15_i32 = arith.constant 15 : i32
    %0 = arith.subi %c15_i32, %arg0 : i32
    %c0_i32 = arith.constant 0 : i32
    %c0_i32_0 = arith.constant 0 : i32
    %c0_i32_1 = arith.constant 0 : i32
    return %0, %c0_i32, %c0_i32_0 : i32, i32, i32
  }
  func.func @transform_2(%arg0: i32) -> (i32, i32, i32) {
    %c0_i32 = arith.constant 0 : i32
    %c0_i32_0 = arith.constant 0 : i32
    %c0_i32_1 = arith.constant 0 : i32
    %c0_i32_2 = arith.constant 0 : i32
    return %c0_i32, %c0_i32_0, %c0_i32_1 : i32, i32, i32
  }
}

</mosaic_0001>

<bundles_post_ra>
// kernel: run_realnvp.1
= control target key start
LH: loop header
LB: loop body
LE: loop exit
PB: predicated region body
PF: predicated region fallthrough
CT: control target
= control target key end

     0   :  { %7 = vsyncpa [#allocation3], 0  ;;  %s5993_s0 = inlined_call_operand.vmem [shape: f32[2,16,88], index: 0, kind: input, shape index: {}]   ;;  %s5994_s1 = inlined_call_operand.hbm [shape: bf16[16,1424,512], index: 1, kind: input, shape index: {}]   ;;  %s5995_s2 = inlined_call_operand.vmem [shape: f32[2,16,88], index: 2, kind: output, shape index: {}]  }
   0x1   :  { %9 = vsyncpa [#allocation3 + $0x1], 0  ;;  %s5011_s9 = smov 0   ;;  %s5013_s10 = smov 0  }
   0x2   :  { %s5015_s11 = smov 0   ;;  %s5017_s12 = smov 0  }
   0x3 LB: > { %s5030_s13 = sadd.s32 4294967295, %s4992_s12   ;;  %s5033_s14 = sadd.s32 1, %s4992_s12   ;;  %s4992_s12 = sphi %s5017_s12, %s6003_s12   ;;  %s4988_s11 = sphi %s5015_s11, %s6002_s11   ;;  %s4984_s10 = sphi %s5013_s10, %s6001_s10   ;;  %s4980_s9 = sphi %s5011_s9, %s6000_s9  }
   0x4   : > { %s40_s15 = ssub.s32 15, %s4992_s12  ;;  %s41_s16 = ssub.s32 15, %s5033_s14 }
   0x5   : > { %s42_s17 = ssub.s32 %s40_s15, %s41_s16  ;;  %s45_s18 = sadd.s32 1, %s4988_s11 }
   0x6   : > { %p43_p0 = scmp.eq.s32.totalorder %s42_s17, 0  ;;  %p52_p1 = scmp.ne.s32.totalorder %s4988_s11, %s4984_s10 }
   0x7   : > { %p53_p2 = scmp.eq.s32.totalorder %s4992_s12, 0  ;;  %p58_p3 = scmp.ne.s32.totalorder %s4984_s10, %s4980_s9 }
   0x8   : > { %s5043_s19 = scalar_select %p43_p0, %s4988_s11, %s45_s18  }
   0x9   : > { %p54_p4 = por %p53_p2, %p52_p1  ;;  %p59_p5 = scmp.eq.s32.totalorder %s5030_s13, 0 }
   0xa   : > { %p4881_p6 = scmp.lt.s32.totalorder %s4992_s12, 16  ;;  %s106_s21 = sand.u32 1, %s4988_s11  }
   0xb   : > { %p5047_p7 = por %p59_p5, %p58_p3  ;;  %s4872_s22 = smul.u32 2848, %s106_s21 }
   0xc   : > { %s4873_s23 = smul.u32 2848, %s40_s15  ;;  %p5052_p8 = pnand %p4881_p6, %p54_p4 }
   0xd   : > { %s110_s28 = scalar_lea.vmem [#allocation2], %s4872_s22  ;;  %p3171_p9 = scmp.ge.s32.totalorder %s4992_s12, 1 }
   0xe   : > { %s116_s27 = scalar_lea.hbm %s5994_s1, %s4873_s23  ;;  %s119_s29 = sshll.u32 %s110_s28, 4  ;;  %s120_s29 = int_to_ptr.vmem [resolvable:$true] %s119_s29 }
   0xf   : > { %s117_s30 = sshll.u32 %s116_s27, 4  ;;  %s107_s3 = scalar_lea.sflag [#allocation3], %s106_s21  ;;  %s118_s30 = int_to_ptr.hbm [resolvable:$true] %s117_s30 }
  0x10   : > { %s4928_s4 = sshra.s32 %s118_s30, 4  ;;  %p4932_p11 = pneg %p5052_p8  ;;  %s4929_s4 = int_to_ptr.hbm [resolvable:$true] %s4928_s4 }
  0x11   : > { %s4930_s5 = scalar_lea.hbm %s4929_s4, 2848  ;;  %s4935_s8 = scalar_lea.hbm %s5994_s1, 45568 }
  0x12   : > { %p4931_p10 = scmp.ne.s32.totalorder %s4929_s4, %s4930_s5  ;;  %p4936_p0 = scmp.lt.s32.totalorder %s4929_s4, %s5994_s1 }
  0x13   : > { %p4937_p1 = scmp.lt.s32.totalorder %s4935_s8, %s4930_s5 }
  0x14   : > { %p4933_p12 = pnand %p4932_p11, %p4931_p10 }
  0x15   : > { %p4938_p2 = por %p4937_p1, %p4936_p0 }
  0x16   : > { %p4934_p13 = pneg %p4933_p12 }
  0x18   : > { %p4939_p3 = pnand %p4938_p2, %p4934_p13 }
  0x1a   : > { %4942 = shalt.err (!%p4939_p3)
}
  0x1b   : > { %s4994_s16 = smov 256   ;;  %s4995_s17 = smov 16  }
  0x1c   : > { %4880 = dma.hbm_to_vmem [thread:$0]  (!%p5052_p8), %s118_s30, 45568, %s120_s29, %s107_s3, %s4994_s16, %s4994_s16, %s4995_s17  }
  0x1d   : > { %p127_p4 = scmp.lt.s32.totalorder %s4992_s12, 17 }
  0x1f   : > { %p128_p5 = pnand %p3171_p9, %p127_p4 }
  0x20   : > { %s133_s18 = sand.u32 (!%p128_p5), 1, %s4984_s10  }
  0x21   : > { %131 = sbr.rel (%p128_p5) target bundleno = 973 (0x3cd), region = 28  ;;  %s134_s22 = scalar_lea.sflag (!%p128_p5), [#allocation3], %s133_s18 }
  0x22   : > { %s4874_s21 = smul.u32 (!%p128_p5), 2848, %s133_s18 }
  0x24   : > { %s5074_s23 = scalar_lea.vmem (!%p128_p5), [#allocation2], %s4874_s21 }
  0x26   : > { %4975 = dma.done.wait (%p5047_p7), %s134_s22, 45568  }
  0x27   : > { %4977 = vsyncadd (%p5047_p7), %s134_s22, 4294921728  ;;  %p3172_p6 = scmp.ne.s32.totalorder %s5030_s13, 0 }
  0x29   : > { %159 = sbr.rel (%p3172_p6) target bundleno = 51 (0x33), region = 36 }
  0x2e   : > { %v160_v0 = vld [vmem:[%s5993_s0] sm:$0xff]  ;;  %vm164_vm0 = vcmask 719872   ;;  %v161_v1 = vld [vmem:[%s5993_s0 + $0x8] sm:$0xff]  ;;  %v162_v2 = vld [vmem:[%s5993_s0 + $0x10] sm:$0xff] }
  0x2f   : > { %165 = vst.msk [vmem:[%s5995_s2] sm:$0xff] %vm164_vm0, %v160_v0  ;;  %v163_v3 = vld [vmem:[%s5993_s0 + $0x18] sm:$0xff] }
  0x30   : > { %166 = vst.msk [vmem:[%s5995_s2 + $0x8] sm:$0xff] %vm164_vm0, %v161_v1 }
  0x31   : > { %167 = vst.msk [vmem:[%s5995_s2 + $0x10] sm:$0xff] %vm164_vm0, %v162_v2 }
  0x32   : > { %168 = vst.msk [vmem:[%s5995_s2 + $0x18] sm:$0xff] %vm164_vm0, %v163_v3 }
  0x33 PF: > { %v222_v4 = vld [vmem:[%s5074_s23 + $0xa0] sm:$0xff]  ;;  %v223_v5 = vld [vmem:[%s5074_s23 + $0xa8] sm:$0xff]  ;;  %vm342_vm1 = vcmask 1043456   ;;  %v4554_v11 = vld [vmem:[%s5074_s23 + $0x8c] sm:$0xf0]  ;;  %s5130_s15 = ssub.s32 15, %s5030_s13 }
  0x34   : > { %v290_v6 = vunpack.c.l.b16 %v222_v4  ;;  %v291_v7 = vunpack.c.h.b16 %v222_v4  ;;  %v292_v8 = vunpack.c.l.b16 %v223_v5  ;;  %v293_v9 = vunpack.c.h.b16 %v223_v5  ;;  %v3244_v10 = vld [vmem:[%s5074_s23 + $0x80] sm:$0xf]  ;;  %v4552_v16 = vld [vmem:[%s5074_s23 + $0x84] sm:$0xf]  ;;  %v3246_v17 = vld [vmem:[%s5074_s23 + $0x90] sm:$0xf0] }
  0x35   : > { %v3252_v18 = vld [vmem:[%s5074_s23 + $0x88] sm:$0xf]  ;;  %v4555_v19 = vld [vmem:[%s5074_s23 + $0x94] sm:$0xf0]  ;;  %v4553_v20 = vld [vmem:[%s5074_s23 + $0x8c] sm:$0xf]  ;;  %v3245_v26 = vor.u32 %v4554_v11, %v3244_v10  ;;  %v3249_v27 = vor.u32 %v4552_v16, %v3246_v17 }
  0x36   : > { %v314_v12 = vpack.c.b16 %v290_v6, %v290_v6  ;;  %v315_v13 = vpack.c.b16 %v291_v7, %v291_v7  ;;  %v316_v14 = vpack.c.b16 %v292_v8, %v292_v8  ;;  %v317_v15 = vpack.c.b16 %v293_v9, %v293_v9  ;;  %v3254_v21 = vld [vmem:[%s5074_s23 + $0x98] sm:$0xf0]  ;;  %v3228_v28 = vld [vmem:[%s5074_s23 + $0x60] sm:$0xf]  ;;  %v4550_v29 = vld [vmem:[%s5074_s23 + $0x6c] sm:$0xf0] }
  0x37   : > { %v3253_v30 = vor.u32 %v4555_v19, %v3252_v18  ;;  %v3257_v31 = vor.u32 %v4553_v20, %v3254_v21  ;;  %v4548_v32 = vld [vmem:[%s5074_s23 + $0x64] sm:$0xf]  ;;  %v3230_v33 = vld [vmem:[%s5074_s23 + $0x70] sm:$0xf0]  ;;  %v3236_v34 = vld [vmem:[%s5074_s23 + $0x68] sm:$0xf]  ;;  %v3229_v38 = vor.u32 %v4550_v29, %v3228_v28 }
  0x38   : > { %v344_v22 = vsel %vm342_vm1, %v314_v12, 0  ;;  %v347_v23 = vsel %vm342_vm1, %v315_v13, 0  ;;  %v350_v24 = vsel %vm342_vm1, %v316_v14, 0  ;;  %v353_v25 = vsel %vm342_vm1, %v317_v15, 0  ;;  %v4551_v35 = vld [vmem:[%s5074_s23 + $0x74] sm:$0xf0] }
  0x39   : > { %357 = vmatpush.bf16.msra.mxu0 %v344_v22  ;;  %371 = vmatpush.bf16.msra.mxu1 %v347_v23  ;;  %v4549_v36 = vld [vmem:[%s5074_s23 + $0x6c] sm:$0xf]  ;;  %v3238_v37 = vld [vmem:[%s5074_s23 + $0x78] sm:$0xf0]  ;;  %v3233_v39 = vor.u32 %v4548_v32, %v3230_v33  ;;  %v3212_v40 = vld [vmem:[%s5074_s23 + $0x40] sm:$0xf]  ;;  %v3237_v42 = vor.u32 %v4551_v35, %v3236_v34 }
  0x3a   : > { %385 = vmatpush.bf16.msra.mxu2 %v350_v24  ;;  %399 = vmatpush.bf16.msra.mxu3 %v353_v25  ;;  %v4546_v41 = vld [vmem:[%s5074_s23 + $0x4c] sm:$0xf0]  ;;  %v3241_v43 = vor.u32 %v4549_v36, %v3238_v37  ;;  %v4544_v44 = vld [vmem:[%s5074_s23 + $0x44] sm:$0xf]  ;;  %v3214_v45 = vld [vmem:[%s5074_s23 + $0x50] sm:$0xf0] }
  0x3b   : > { %v3220_v46 = vld [vmem:[%s5074_s23 + $0x48] sm:$0xf]  ;;  %v4547_v47 = vld [vmem:[%s5074_s23 + $0x54] sm:$0xf0]  ;;  %v4545_v48 = vld [vmem:[%s5074_s23 + $0x4c] sm:$0xf]  ;;  %v3213_v51 = vor.u32 %v4546_v41, %v3212_v40  ;;  %v3217_v52 = vor.u32 %v4544_v44, %v3214_v45 }
  0x3c   : > { %v3222_v49 = vld [vmem:[%s5074_s23 + $0x58] sm:$0xf0]  ;;  %v3196_v50 = vld [vmem:[%s5074_s23 + $0x20] sm:$0xf]  ;;  %v4542_v53 = vld [vmem:[%s5074_s23 + $0x2c] sm:$0xf0]  ;;  %v3221_v55 = vor.u32 %v4547_v47, %v3220_v46 }
  0x3d   : > { %358 = vmatpush.bf16.msra.mxu0 %v3245_v26  ;;  %372 = vmatpush.bf16.msra.mxu1 %v3249_v27  ;;  %v4540_v54 = vld [vmem:[%s5074_s23 + $0x24] sm:$0xf]  ;;  %p170_p7 = scmp.lt.s32.totalorder %s5130_s15, 0  ;;  %s171_s13 = ssub.s32 0, %s5130_s15  ;;  %v3225_v56 = vor.u32 %v4545_v48, %v3222_v49  ;;  %v3198_v57 = vld [vmem:[%s5074_s23 + $0x30] sm:$0xf0]  ;;  %v3197_v0 = vor.u32 %v4542_v53, %v3196_v50 }
  0x3e   : > { %386 = vmatpush.bf16.msra.mxu2 %v3253_v30  ;;  %400 = vmatpush.bf16.msra.mxu3 %v3257_v31  ;;  %v3204_v58 = vld [vmem:[%s5074_s23 + $0x28] sm:$0xf]  ;;  %v4543_v59 = vld [vmem:[%s5074_s23 + $0x34] sm:$0xf0]  ;;  %s3173_s16 = smin.u32 %s171_s13, %s5130_s15  ;;  %v4541_v60 = vld [vmem:[%s5074_s23 + $0x2c] sm:$0xf]  ;;  %v3201_v1 = vor.u32 %v4540_v54, %v3198_v57 }
  0x3f   : > { %v3206_v61 = vld [vmem:[%s5074_s23 + $0x38] sm:$0xf0]  ;;  %s173_s17 = sand.u32 1, %s3173_s16   ;;  %v3180_v62 = vld [vmem:[%s5074_s23] sm:$0xf]  ;;  %v3205_v5 = vor.u32 %v4543_v59, %v3204_v58  ;;  %v184_v31 = vld [vmem:[%s5995_s2 + $0x8] sm:$0xff] }
  0x40   : > { %v4538_v63 = vld [vmem:[%s5074_s23 + $0xc] sm:$0xf0]  ;;  %s174_s18 = ssub.s32 0, %s173_s17  ;;  %v4536_v2 = vld [vmem:[%s5074_s23 + $0x4] sm:$0xf]  ;;  %v3209_v6 = vor.u32 %v4541_v60, %v3206_v61  ;;  %v3177_v33 = vld [vmem:[%s5995_s2 + $0x18] sm:$0xff] }
  0x41   : > { %359 = vmatpush.bf16.msra.mxu0 %v3229_v38  ;;  %373 = vmatpush.bf16.msra.mxu1 %v3233_v39  ;;  %v3182_v3 = vld [vmem:[%s5074_s23 + $0x10] sm:$0xf0]  ;;  %v3188_v4 = vld [vmem:[%s5074_s23 + $0x8] sm:$0xf]  ;;  %s6005_s18 = smov (!%p170_p7, %s174_s18), %s173_s17  ;;  %v4539_v7 = vld [vmem:[%s5074_s23 + $0x14] sm:$0xf0]  ;;  %v3181_v15 = vor.u32 %v4538_v63, %v3180_v62 }
  0x42   : > { %387 = vmatpush.bf16.msra.mxu2 %v3237_v42  ;;  %401 = vmatpush.bf16.msra.mxu3 %v3241_v43  ;;  %v4537_v8 = vld [vmem:[%s5074_s23 + $0xc] sm:$0xf]  ;;  %v3190_v9 = vld [vmem:[%s5074_s23 + $0x18] sm:$0xf0]  ;;  %p3175_p8 = scmp.lt.s32.totalorder %s6005_s18, 0  ;;  %s180_s21 = sadd.s32 2, %s6005_s18  ;;  %v3185_v16 = vor.u32 %v4536_v2, %v3182_v3  ;;  %v3189_v20 = vor.u32 %v4539_v7, %v3188_v4 }
  0x43   : > { %v3376_v10 = vld [vmem:[%s5074_s23 + $0x260] sm:$0xf]  ;;  %v4586_v11 = vld [vmem:[%s5074_s23 + $0x26c] sm:$0xf0]  ;;  %v3193_v21 = vor.u32 %v4537_v8, %v3190_v9  ;;  %vm338_vm3 = vcmask 719872  }
  0x44   : > { %v3504_v12 = vld [vmem:[%s5074_s23 + $0x360] sm:$0xf]  ;;  %v4618_v13 = vld [vmem:[%s5074_s23 + $0x36c] sm:$0xf0]  ;;  %s6007_s21 = smov (!%p3175_p8, %s180_s21), %s6005_s18  ;;  %v3377_v22 = vor.u32 %v4586_v11, %v3376_v10 }
  0x45   : > { %360 = vmatpush.bf16.msra.mxu0 %v3213_v51  ;;  %374 = vmatpush.bf16.msra.mxu1 %v3217_v52  ;;  %v3632_v14 = vld [vmem:[%s5074_s23 + $0x460] sm:$0xf]  ;;  %v4650_v17 = vld [vmem:[%s5074_s23 + $0x46c] sm:$0xf0]  ;;  %p182_p9 = scmp.eq.s32.totalorder %s6007_s21, 0  ;;  %v3505_v23 = vor.u32 %v4618_v13, %v3504_v12  ;;  %p4530_p10 = scmp.ne.s32.totalorder %s6007_s21, 0 }
  0x46   : > { %388 = vmatpush.bf16.msra.mxu2 %v3221_v55  ;;  %402 = vmatpush.bf16.msra.mxu3 %v3225_v56  ;;  %v3760_v18 = vld [vmem:[%s5074_s23 + $0x560] sm:$0xf]  ;;  %v4682_v19 = vld [vmem:[%s5074_s23 + $0x56c] sm:$0xf0]  ;;  %v3633_v29 = vor.u32 %v4650_v17, %v3632_v14 }
  0x47   : > { %v3360_v24 = vld [vmem:[%s5074_s23 + $0x240] sm:$0xf]  ;;  %v4582_v26 = vld [vmem:[%s5074_s23 + $0x24c] sm:$0xf0]  ;;  %v3761_v30 = vor.u32 %v4682_v19, %v3760_v18  ;;  %s188_s30 = scalar_select %p182_p9, 1, 0 }
  0x48   : > { %v183_v25 = vld [vmem:[%s5995_s2] sm:$0xff]  ;;  %v4614_v28 = vld [vmem:[%s5074_s23 + $0x34c] sm:$0xf0]  ;;  %v3361_v38 = vor.u32 %v4582_v26, %v3360_v24 }
  0x49   : > { %361 = vmatpush.bf16.msra.mxu0 %v3197_v0  ;;  %375 = vmatpush.bf16.msra.mxu1 %v3201_v1  ;;  %v3488_v27 = vld [vmem:[%s5074_s23 + $0x340] sm:$0xf]  ;;  %v3176_v32 = vld [vmem:[%s5995_s2 + $0x10] sm:$0xff]  ;;  %v189_v37 = vstv %s188_s30 }
  0x4a   : > { %389 = vmatpush.bf16.msra.mxu2 %v3205_v5  ;;  %403 = vmatpush.bf16.msra.mxu3 %v3209_v6  ;;  %v3344_v34 = vld [vmem:[%s5074_s23 + $0x220] sm:$0xf]  ;;  %v4578_v35 = vld [vmem:[%s5074_s23 + $0x22c] sm:$0xf0]  ;;  %v3489_v39 = vor.u32 %v4614_v28, %v3488_v27  ;;  %vm5194_vm2 = vcmp.eq.s32.totalorder %v189_v37, 1 }
  0x4b   : > { %v3616_v36 = vld [vmem:[%s5074_s23 + $0x440] sm:$0xf]  ;;  %v4646_v40 = vld [vmem:[%s5074_s23 + $0x44c] sm:$0xf0]  ;;  %v191_v46 = vsel %vm5194_vm2, %v3176_v32, %v183_v25  ;;  %v192_v47 = vsel %vm5194_vm2, %v3177_v33, %v184_v31  ;;  %v3345_v53 = vor.u32 %v4578_v35, %v3344_v34 }
  0x4c   : > { %v3744_v41 = vld [vmem:[%s5074_s23 + $0x540] sm:$0xf]  ;;  %v4678_v42 = vld [vmem:[%s5074_s23 + $0x54c] sm:$0xf0]  ;;  %v5204_v48 = vpack.c.bf16 %v192_v47, %v191_v46  ;;  %v3617_v49 = vor.u32 %v4646_v40, %v3616_v36  ;;  %v4584_v46 = vld [vmem:[%s5074_s23 + $0x264] sm:$0xf] }
  0x4d   : > { %362 = vmatpush.bf16.msra.mxu0 %v3181_v15  ;;  %376 = vmatpush.bf16.msra.mxu1 %v3185_v16  ;;  %v3472_v44 = vld [vmem:[%s5074_s23 + $0x320] sm:$0xf]  ;;  %v4610_v45 = vld [vmem:[%s5074_s23 + $0x32c] sm:$0xf0]  ;;  %v3745_v50 = vor.u32 %v4678_v42, %v3744_v41  ;;  %v3378_v47 = vld [vmem:[%s5074_s23 + $0x270] sm:$0xf0] }
  0x4e   : > { %390 = vmatpush.bf16.msra.mxu2 %v3189_v20  ;;  %404 = vmatpush.bf16.msra.mxu3 %v3193_v21  ;;  %v3328_v51 = vld [vmem:[%s5074_s23 + $0x200] sm:$0xf]  ;;  %v3473_v54 = vor.u32 %v4610_v45, %v3472_v44  ;;  %v4642_v55 = vld [vmem:[%s5074_s23 + $0x42c] sm:$0xf0] }
  0x4f   : > { %v3600_v52 = vld [vmem:[%s5074_s23 + $0x420] sm:$0xf]  ;;  %v4674_v57 = vld [vmem:[%s5074_s23 + $0x52c] sm:$0xf0] }
  0x50   : > { %v3728_v56 = vld [vmem:[%s5074_s23 + $0x520] sm:$0xf]  ;;  %3258 = vmatmul.msk.bf16.vlgmr.msra.gmra.mxu0 %vm338_vm3, %v5204_v48  ;;  %3259 = vmatmul.msk.bf16.vlgmr.msra.gmra.mxu1 %vm338_vm3, %v5204_v48  ;;  %v4574_v58 = vld [vmem:[%s5074_s23 + $0x20c] sm:$0xf0]  ;;  %v3601_v61 = vor.u32 %v4642_v55, %v3600_v52 }
  0x51   : > { %1211 = vmatpush.bf16.msrb.mxu0 %v3377_v22  ;;  %1225 = vmatpush.bf16.msrb.mxu1 %v3505_v23  ;;  %v3456_v59 = vld [vmem:[%s5074_s23 + $0x300] sm:$0xf]  ;;  %v4606_v60 = vld [vmem:[%s5074_s23 + $0x30c] sm:$0xf0]  ;;  %v3729_v62 = vor.u32 %v4674_v57, %v3728_v56  ;;  %v3329_v1 = vor.u32 %v4574_v58, %v3328_v51  ;;  %v4580_v57 = vld [vmem:[%s5074_s23 + $0x244] sm:$0xf] }
  0x52   : > { %1239 = vmatpush.bf16.msrb.mxu2 %v3633_v29  ;;  %1253 = vmatpush.bf16.msrb.mxu3 %v3761_v30  ;;  %v3312_v63 = vld [vmem:[%s5074_s23 + $0x1e0] sm:$0xf]  ;;  %v3457_v2 = vor.u32 %v4606_v60, %v3456_v59  ;;  %v4638_v3 = vld [vmem:[%s5074_s23 + $0x40c] sm:$0xf0]  ;;  %v4648_v60 = vld [vmem:[%s5074_s23 + $0x464] sm:$0xf] }
  0x53   : > { %3260 = vmatmul.msk.bf16.vlgmr.msra.gmra.mxu2 %vm338_vm3, %v5204_v48  ;;  %3261 = vmatmul.msk.bf16.vlgmr.msra.gmra.mxu3 %vm338_vm3, %v5204_v48  ;;  %v3584_v0 = vld [vmem:[%s5074_s23 + $0x400] sm:$0xf]  ;;  %v4670_v5 = vld [vmem:[%s5074_s23 + $0x50c] sm:$0xf0] }
  0x54   : > { %v3712_v4 = vld [vmem:[%s5074_s23 + $0x500] sm:$0xf]  ;;  %v4570_v6 = vld [vmem:[%s5074_s23 + $0x1ec] sm:$0xf0]  ;;  %v3585_v9 = vor.u32 %v4638_v3, %v3584_v0  ;;  %v4680_v0 = vld [vmem:[%s5074_s23 + $0x564] sm:$0xf] }
  0x55   : > { %1212 = vmatpush.bf16.msrb.mxu0 %v3361_v38  ;;  %1226 = vmatpush.bf16.msrb.mxu1 %v3489_v39  ;;  %v3440_v7 = vld [vmem:[%s5074_s23 + $0x2e0] sm:$0xf]  ;;  %v4602_v8 = vld [vmem:[%s5074_s23 + $0x2ec] sm:$0xf0]  ;;  %v3713_v10 = vor.u32 %v4670_v5, %v3712_v4  ;;  %v3313_v13 = vor.u32 %v4570_v6, %v3312_v63  ;;  %v3634_v63 = vld [vmem:[%s5074_s23 + $0x470] sm:$0xf0] }
  0x56   : > { %1240 = vmatpush.bf16.msrb.mxu2 %v3617_v49  ;;  %1254 = vmatpush.bf16.msrb.mxu3 %v3745_v50  ;;  %v3296_v11 = vld [vmem:[%s5074_s23 + $0x1c0] sm:$0xf]  ;;  %v3441_v14 = vor.u32 %v4602_v8, %v3440_v7  ;;  %v4634_v15 = vld [vmem:[%s5074_s23 + $0x3ec] sm:$0xf0]  ;;  %v4616_v49 = vld [vmem:[%s5074_s23 + $0x364] sm:$0xf]  ;;  %v3637_v7 = vor.u32 %v4648_v60, %v3634_v63 }
  0x57   : > { %v3568_v12 = vld [vmem:[%s5074_s23 + $0x3e0] sm:$0xf]  ;;  %v4666_v17 = vld [vmem:[%s5074_s23 + $0x4ec] sm:$0xf0]  ;;  %v3506_v50 = vld [vmem:[%s5074_s23 + $0x370] sm:$0xf0] }
  0x58   : > { %v3696_v16 = vld [vmem:[%s5074_s23 + $0x4e0] sm:$0xf]  ;;  %v4566_v18 = vld [vmem:[%s5074_s23 + $0x1cc] sm:$0xf0]  ;;  %v3569_v21 = vor.u32 %v4634_v15, %v3568_v12  ;;  %v4612_v3 = vld [vmem:[%s5074_s23 + $0x344] sm:$0xf] }
  0x59   : > { %1213 = vmatpush.bf16.msrb.mxu0 %v3345_v53  ;;  %1227 = vmatpush.bf16.msrb.mxu1 %v3473_v54  ;;  %v3424_v19 = vld [vmem:[%s5074_s23 + $0x2c0] sm:$0xf]  ;;  %v4598_v20 = vld [vmem:[%s5074_s23 + $0x2cc] sm:$0xf0]  ;;  %v3697_v22 = vor.u32 %v4666_v17, %v3696_v16  ;;  %v3297_v25 = vor.u32 %v4566_v18, %v3296_v11  ;;  %v3490_v4 = vld [vmem:[%s5074_s23 + $0x350] sm:$0xf0] }
  0x5a   : > { %1241 = vmatpush.bf16.msrb.mxu2 %v3601_v61  ;;  %1255 = vmatpush.bf16.msrb.mxu3 %v3729_v62  ;;  %v3280_v23 = vld [vmem:[%s5074_s23 + $0x1a0] sm:$0xf]  ;;  %v3425_v26 = vor.u32 %v4598_v20, %v3424_v19  ;;  %v4630_v27 = vld [vmem:[%s5074_s23 + $0x3cc] sm:$0xf0]  ;;  %v3381_v61 = vor.u32 %v4584_v46, %v3378_v47  ;;  %v3509_v62 = vor.u32 %v4616_v49, %v3506_v50  ;;  %v3746_v15 = vld [vmem:[%s5074_s23 + $0x550] sm:$0xf0] }
  0x5b   : > { %v3552_v24 = vld [vmem:[%s5074_s23 + $0x3c0] sm:$0xf]  ;;  %v4662_v29 = vld [vmem:[%s5074_s23 + $0x4cc] sm:$0xf0]  ;;  %v3493_v12 = vor.u32 %v4612_v3, %v3490_v4  ;;  %v3346_v16 = vld [vmem:[%s5074_s23 + $0x230] sm:$0xf0] }
  0x5c   : > { %v3680_v28 = vld [vmem:[%s5074_s23 + $0x4c0] sm:$0xf]  ;;  %v4562_v30 = vld [vmem:[%s5074_s23 + $0x1ac] sm:$0xf0]  ;;  %v3553_v33 = vor.u32 %v4630_v27, %v3552_v24  ;;  %v4608_v17 = vld [vmem:[%s5074_s23 + $0x324] sm:$0xf] }
  0x5d   : > { %1214 = vmatpush.bf16.msrb.mxu0 %v3329_v1  ;;  %1228 = vmatpush.bf16.msrb.mxu1 %v3457_v2  ;;  %v3408_v31 = vld [vmem:[%s5074_s23 + $0x2a0] sm:$0xf]  ;;  %v4594_v32 = vld [vmem:[%s5074_s23 + $0x2ac] sm:$0xf0]  ;;  %v3681_v34 = vor.u32 %v4662_v29, %v3680_v28  ;;  %v3281_v38 = vor.u32 %v4562_v30, %v3280_v23  ;;  %v3762_v1 = vld [vmem:[%s5074_s23 + $0x570] sm:$0xf0] }
  0x5e   : > { %1242 = vmatpush.bf16.msrb.mxu2 %v3585_v9  ;;  %1256 = vmatpush.bf16.msrb.mxu3 %v3713_v10  ;;  %v3264_v35 = vld [vmem:[%s5074_s23 + $0x180] sm:$0xf]  ;;  %v4558_v36 = vld [vmem:[%s5074_s23 + $0x18c] sm:$0xf0]  ;;  %v3409_v39 = vor.u32 %v4594_v32, %v3408_v31  ;;  %v3362_v2 = vld [vmem:[%s5074_s23 + $0x250] sm:$0xf0]  ;;  %v3765_v8 = vor.u32 %v4680_v0, %v3762_v1 }
  0x5f   : > { %v3536_v37 = vld [vmem:[%s5074_s23 + $0x3a0] sm:$0xf]  ;;  %v4626_v40 = vld [vmem:[%s5074_s23 + $0x3ac] sm:$0xf0]  ;;  %v3265_v55 = vor.u32 %v4558_v36, %v3264_v35  ;;  %v4576_v9 = vld [vmem:[%s5074_s23 + $0x224] sm:$0xf]  ;;  %v3365_v11 = vor.u32 %v4580_v57, %v3362_v2 }
  0x60   : > { %v3664_v41 = vld [vmem:[%s5074_s23 + $0x4a0] sm:$0xf]  ;;  %v4658_v42 = vld [vmem:[%s5074_s23 + $0x4ac] sm:$0xf0]  ;;  %v3537_v51 = vor.u32 %v4626_v40, %v3536_v37  ;;  %v4644_v10 = vld [vmem:[%s5074_s23 + $0x444] sm:$0xf] }
  0x61   : > { %1215 = vmatpush.bf16.msrb.mxu0 %v3313_v13  ;;  %1229 = vmatpush.bf16.msrb.mxu1 %v3441_v14  ;;  %v3392_v44 = vld [vmem:[%s5074_s23 + $0x280] sm:$0xf]  ;;  %v4590_v45 = vld [vmem:[%s5074_s23 + $0x28c] sm:$0xf0]  ;;  %v3665_v52 = vor.u32 %v4658_v42, %v3664_v41  ;;  %v3618_v13 = vld [vmem:[%s5074_s23 + $0x450] sm:$0xf0] }
  0x62   : > { %1243 = vmatpush.bf16.msrb.mxu2 %v3569_v21  ;;  %1257 = vmatpush.bf16.msrb.mxu3 %v3697_v22  ;;  %v3520_v53 = vld [vmem:[%s5074_s23 + $0x380] sm:$0xf]  ;;  %v4622_v54 = vld [vmem:[%s5074_s23 + $0x38c] sm:$0xf0]  ;;  %v3393_v56 = vor.u32 %v4590_v45, %v3392_v44  ;;  %v4676_v14 = vld [vmem:[%s5074_s23 + $0x544] sm:$0xf]  ;;  %v3621_v19 = vor.u32 %v4644_v10, %v3618_v13  ;;  %v3349_v21 = vor.u32 %v4576_v9, %v3346_v16 }
  0x63   : > { %v3648_v58 = vld [vmem:[%s5074_s23 + $0x480] sm:$0xf]  ;;  %v4654_v59 = vld [vmem:[%s5074_s23 + $0x48c] sm:$0xf0]  ;;  %v3521_v5 = vor.u32 %v4622_v54, %v3520_v53  ;;  %v3474_v18 = vld [vmem:[%s5074_s23 + $0x330] sm:$0xf0]  ;;  %v3749_v20 = vor.u32 %v4676_v14, %v3746_v15 }
  0x64   : > { %v3649_v6 = vor.u32 %v4654_v59, %v3648_v58  ;;  %v3477_v22 = vor.u32 %v4608_v17, %v3474_v18  ;;  %v4572_v23 = vld [vmem:[%s5074_s23 + $0x204] sm:$0xf]  ;;  %v3330_v24 = vld [vmem:[%s5074_s23 + $0x210] sm:$0xf0] }
  0x65   : > { %1216 = vmatpush.bf16.msrb.mxu0 %v3297_v25  ;;  %1230 = vmatpush.bf16.msrb.mxu1 %v3425_v26  ;;  %v4604_v25 = vld [vmem:[%s5074_s23 + $0x304] sm:$0xf]  ;;  %v3458_v26 = vld [vmem:[%s5074_s23 + $0x310] sm:$0xf0]  ;;  %v3333_v27 = vor.u32 %v4572_v23, %v3330_v24 }
  0x66   : > { %1244 = vmatpush.bf16.msrb.mxu2 %v3553_v33  ;;  %1258 = vmatpush.bf16.msrb.mxu3 %v3681_v34  ;;  %v3461_v28 = vor.u32 %v4604_v25, %v3458_v26  ;;  %v4640_v29 = vld [vmem:[%s5074_s23 + $0x424] sm:$0xf]  ;;  %v3602_v30 = vld [vmem:[%s5074_s23 + $0x430] sm:$0xf0] }
  0x67   : > { %v4672_v31 = vld [vmem:[%s5074_s23 + $0x524] sm:$0xf]  ;;  %v3605_v32 = vor.u32 %v4640_v29, %v3602_v30  ;;  %v3730_v33 = vld [vmem:[%s5074_s23 + $0x530] sm:$0xf0] }
  0x68   : > { %v3733_v34 = vor.u32 %v4672_v31, %v3730_v33  ;;  %v4568_v35 = vld [vmem:[%s5074_s23 + $0x1e4] sm:$0xf]  ;;  %v3314_v36 = vld [vmem:[%s5074_s23 + $0x1f0] sm:$0xf0] }
  0x69   : > { %1217 = vmatpush.bf16.msrb.mxu0 %v3281_v38  ;;  %1231 = vmatpush.bf16.msrb.mxu1 %v3409_v39  ;;  %v4600_v37 = vld [vmem:[%s5074_s23 + $0x2e4] sm:$0xf]  ;;  %v3317_v38 = vor.u32 %v4568_v35, %v3314_v36  ;;  %v3442_v39 = vld [vmem:[%s5074_s23 + $0x2f0] sm:$0xf0] }
  0x6a   : > { %1245 = vmatpush.bf16.msrb.mxu2 %v3537_v51  ;;  %1259 = vmatpush.bf16.msrb.mxu3 %v3665_v52  ;;  %v3445_v40 = vor.u32 %v4600_v37, %v3442_v39  ;;  %v4636_v41 = vld [vmem:[%s5074_s23 + $0x404] sm:$0xf]  ;;  %v3586_v42 = vld [vmem:[%s5074_s23 + $0x410] sm:$0xf0] }
  0x6b   : > { %v4668_v44 = vld [vmem:[%s5074_s23 + $0x504] sm:$0xf]  ;;  %v3589_v45 = vor.u32 %v4636_v41, %v3586_v42  ;;  %v3714_v46 = vld [vmem:[%s5074_s23 + $0x510] sm:$0xf0] }
  0x6c   : > { %v3717_v47 = vor.u32 %v4668_v44, %v3714_v46  ;;  %v4564_v49 = vld [vmem:[%s5074_s23 + $0x1c4] sm:$0xf]  ;;  %v3298_v50 = vld [vmem:[%s5074_s23 + $0x1d0] sm:$0xf0] }
  0x6d   : > { %1218 = vmatpush.bf16.msrb.mxu0 %v3265_v55  ;;  %1232 = vmatpush.bf16.msrb.mxu1 %v3393_v56  ;;  %v4596_v51 = vld [vmem:[%s5074_s23 + $0x2c4] sm:$0xf]  ;;  %v3301_v52 = vor.u32 %v4564_v49, %v3298_v50  ;;  %v3426_v53 = vld [vmem:[%s5074_s23 + $0x2d0] sm:$0xf0] }
  0x6e   : > { %1246 = vmatpush.bf16.msrb.mxu2 %v3521_v5  ;;  %1260 = vmatpush.bf16.msrb.mxu3 %v3649_v6  ;;  %v3429_v54 = vor.u32 %v4596_v51, %v3426_v53  ;;  %v4632_v55 = vld [vmem:[%s5074_s23 + $0x3e4] sm:$0xf]  ;;  %v3570_v56 = vld [vmem:[%s5074_s23 + $0x3f0] sm:$0xf0]  ;;  %v3384_v51 = vld [vmem:[%s5074_s23 + $0x268] sm:$0xf] }
  0x6f   : > { %v4664_v57 = vld [vmem:[%s5074_s23 + $0x4e4] sm:$0xf]  ;;  %v3698_v58 = vld [vmem:[%s5074_s23 + $0x4f0] sm:$0xf0]  ;;  %v3573_v59 = vor.u32 %v4632_v55, %v3570_v56  ;;  %v4619_v55 = vld [vmem:[%s5074_s23 + $0x374] sm:$0xf0] }
  0x70   : > { %v3701_v60 = vor.u32 %v4664_v57, %v3698_v58  ;;  %v4592_v63 = vld [vmem:[%s5074_s23 + $0x2a4] sm:$0xf]  ;;  %v3410_v1 = vld [vmem:[%s5074_s23 + $0x2b0] sm:$0xf0] }
  0x71   : > { %1267 = vmatpush.bf16.msra.mxu0 %v3381_v61  ;;  %1281 = vmatpush.bf16.msra.mxu1 %v3509_v62  ;;  %v4560_v61 = vld [vmem:[%s5074_s23 + $0x1a4] sm:$0xf]  ;;  %v3282_v62 = vld [vmem:[%s5074_s23 + $0x1b0] sm:$0xf0]  ;;  %v3413_v2 = vor.u32 %v4592_v63, %v3410_v1  ;;  %v3368_v1 = vld [vmem:[%s5074_s23 + $0x248] sm:$0xf] }
  0x72   : > { %1295 = vmatpush.bf16.msra.mxu2 %v3637_v7  ;;  %1309 = vmatpush.bf16.msra.mxu3 %v3765_v8  ;;  %v3285_v0 = vor.u32 %v4560_v61, %v3282_v62  ;;  %v4628_v3 = vld [vmem:[%s5074_s23 + $0x3c4] sm:$0xf]  ;;  %v3554_v4 = vld [vmem:[%s5074_s23 + $0x3d0] sm:$0xf0] }
  0x73   : > { %v4660_v5 = vld [vmem:[%s5074_s23 + $0x4c4] sm:$0xf]  ;;  %v3557_v6 = vor.u32 %v4628_v3, %v3554_v4  ;;  %v3682_v7 = vld [vmem:[%s5074_s23 + $0x4d0] sm:$0xf0]  ;;  %v3496_v3 = vld [vmem:[%s5074_s23 + $0x348] sm:$0xf] }
  0x74   : > { %v3685_v8 = vor.u32 %v4660_v5, %v3682_v7  ;;  %v4556_v9 = vld [vmem:[%s5074_s23 + $0x184] sm:$0xf]  ;;  %v3266_v10 = vld [vmem:[%s5074_s23 + $0x190] sm:$0xf0]  ;;  %v3640_v7 = vld [vmem:[%s5074_s23 + $0x468] sm:$0xf] }
  0x75   : > { %1268 = vmatpush.bf16.msra.mxu0 %v3365_v11  ;;  %1282 = vmatpush.bf16.msra.mxu1 %v3493_v12  ;;  %v4588_v11 = vld [vmem:[%s5074_s23 + $0x284] sm:$0xf]  ;;  %v3269_v12 = vor.u32 %v4556_v9, %v3266_v10  ;;  %v3394_v13 = vld [vmem:[%s5074_s23 + $0x290] sm:$0xf0] }
  0x76   : > { %1296 = vmatpush.bf16.msra.mxu2 %v3621_v19  ;;  %1310 = vmatpush.bf16.msra.mxu3 %v3749_v20  ;;  %v3397_v14 = vor.u32 %v4588_v11, %v3394_v13  ;;  %v4624_v15 = vld [vmem:[%s5074_s23 + $0x3a4] sm:$0xf]  ;;  %v3538_v16 = vld [vmem:[%s5074_s23 + $0x3b0] sm:$0xf0]  ;;  %v3768_v11 = vld [vmem:[%s5074_s23 + $0x568] sm:$0xf] }
  0x77   : > { %v4656_v17 = vld [vmem:[%s5074_s23 + $0x4a4] sm:$0xf]  ;;  %v3666_v18 = vld [vmem:[%s5074_s23 + $0x4b0] sm:$0xf0]  ;;  %v3541_v19 = vor.u32 %v4624_v15, %v3538_v16  ;;  %v3352_v13 = vld [vmem:[%s5074_s23 + $0x228] sm:$0xf] }
  0x78   : > { %v3669_v20 = vor.u32 %v4656_v17, %v3666_v18  ;;  %v4652_v24 = vld [vmem:[%s5074_s23 + $0x484] sm:$0xf]  ;;  %v3650_v25 = vld [vmem:[%s5074_s23 + $0x490] sm:$0xf0]  ;;  %v4579_v18 = vld [vmem:[%s5074_s23 + $0x234] sm:$0xf0] }
  0x79   : > { %1269 = vmatpush.bf16.msra.mxu0 %v3349_v21  ;;  %1283 = vmatpush.bf16.msra.mxu1 %v3477_v22  ;;  %v4620_v21 = vld [vmem:[%s5074_s23 + $0x384] sm:$0xf]  ;;  %v3522_v22 = vld [vmem:[%s5074_s23 + $0x390] sm:$0xf0]  ;;  %v3653_v26 = vor.u32 %v4652_v24, %v3650_v25 }
  0x7a   : > { %1297 = vmatpush.bf16.msra.mxu2 %v3605_v32  ;;  %1311 = vmatpush.bf16.msra.mxu3 %v3733_v34  ;;  %v3525_v23 = vor.u32 %v4620_v21, %v3522_v22  ;;  %v197_v34 = vld [vmem:[%s5074_s23 + $0xb08] sm:$0x77]  ;;  %v4611_v22 = vld [vmem:[%s5074_s23 + $0x334] sm:$0xf0] }
  0x7b   : > { %v5330_v36 = vunpack.c.l.bf16 %v197_v34  ;;  %v5332_v37 = vunpack.c.h.bf16 %v197_v34  ;;  %v3480_v21 = vld [vmem:[%s5074_s23 + $0x328] sm:$0xf] }
  0x7c   : > { %v3624_v34 = vld [vmem:[%s5074_s23 + $0x448] sm:$0xf] }
  0x7d   : > { %1270 = vmatpush.bf16.msra.mxu0 %v3333_v27  ;;  %1284 = vmatpush.bf16.msra.mxu1 %v3461_v28  ;;  %v196_v27 = vld [vmem:[%s5074_s23 + $0xb00] sm:$0x77]  ;;  %v226_v42 = vperm.slane %v5330_v36, 0  ;;  %v227_v44 = vperm.slane %v5332_v37, 0 }
  0x7e   : > { %1298 = vmatpush.bf16.msra.mxu2 %v3589_v45  ;;  %1312 = vmatpush.bf16.msra.mxu3 %v3717_v47  ;;  %v5323_v28 = vunpack.c.h.bf16 %v196_v27  ;;  %v5325_v29 = vunpack.c.l.bf16 %v196_v27  ;;  %v3353_v27 = vor.u32 %v4579_v18, %v3352_v13  ;;  %v3576_v13 = vld [vmem:[%s5074_s23 + $0x3e8] sm:$0xf] }
  0x80   : > { %v225_v30 = vperm.slane %v5323_v28, 0  ;;  %v224_v33 = vperm.slane %v5325_v29, 0 }
  0x81   : > { %1271 = vmatpush.bf16.msra.mxu0 %v3317_v38  ;;  %1285 = vmatpush.bf16.msra.mxu1 %v3445_v40 }
  0x82   : > { %1299 = vmatpush.bf16.msra.mxu2 %v3573_v59  ;;  %1313 = vmatpush.bf16.msra.mxu3 %v3701_v60 }
  0x85   : > { %1272 = vmatpush.bf16.msra.mxu0 %v3301_v52  ;;  %1286 = vmatpush.bf16.msra.mxu1 %v3429_v54  ;;  %v4587_v52 = vld [vmem:[%s5074_s23 + $0x274] sm:$0xf0]  ;;  %v3512_v54 = vld [vmem:[%s5074_s23 + $0x368] sm:$0xf] }
  0x86   : > { %1300 = vmatpush.bf16.msra.mxu2 %v3557_v6  ;;  %1314 = vmatpush.bf16.msra.mxu3 %v3685_v8  ;;  %v3385_v60 = vor.u32 %v4587_v52, %v3384_v51  ;;  %v4615_v6 = vld [vmem:[%s5074_s23 + $0x354] sm:$0xf0]  ;;  %v3608_v51 = vld [vmem:[%s5074_s23 + $0x428] sm:$0xf] }
  0x87   : > { %v4651_v8 = vld [vmem:[%s5074_s23 + $0x474] sm:$0xf0] }
  0x88   : > { %v3641_v25 = vor.u32 %v4651_v8, %v3640_v7  ;;  %v3304_v7 = vld [vmem:[%s5074_s23 + $0x1c8] sm:$0xf]  ;;  %v4567_v8 = vld [vmem:[%s5074_s23 + $0x1d4] sm:$0xf0] }
  0x89   : > { %1273 = vmatpush.bf16.msra.mxu0 %v3285_v0  ;;  %1287 = vmatpush.bf16.msra.mxu1 %v3413_v2  ;;  %v3513_v0 = vor.u32 %v4619_v55, %v3512_v54  ;;  %v4583_v2 = vld [vmem:[%s5074_s23 + $0x254] sm:$0xf0]  ;;  %v3736_v55 = vld [vmem:[%s5074_s23 + $0x528] sm:$0xf] }
  0x8a   : > { %1301 = vmatpush.bf16.msra.mxu2 %v3541_v19  ;;  %1315 = vmatpush.bf16.msra.mxu3 %v3669_v20  ;;  %v3369_v19 = vor.u32 %v4583_v2, %v3368_v1  ;;  %v3497_v20 = vor.u32 %v4615_v6, %v3496_v3  ;;  %v4643_v54 = vld [vmem:[%s5074_s23 + $0x434] sm:$0xf0]  ;;  %v3720_v1 = vld [vmem:[%s5074_s23 + $0x508] sm:$0xf] }
  0x8b   : > { %v4671_v2 = vld [vmem:[%s5074_s23 + $0x514] sm:$0xf0] }
  0x8d   : > { %1274 = vmatpush.bf16.msra.mxu0 %v3269_v12  ;;  %1288 = vmatpush.bf16.msra.mxu1 %v3397_v14  ;;  %v4683_v12 = vld [vmem:[%s5074_s23 + $0x574] sm:$0xf0] }
  0x8e   : > { %1302 = vmatpush.bf16.msra.mxu2 %v3525_v23  ;;  %1316 = vmatpush.bf16.msra.mxu3 %v3653_v26  ;;  %v3769_v26 = vor.u32 %v4683_v12, %v3768_v11  ;;  %v3721_v12 = vor.u32 %v4671_v2, %v3720_v1  ;;  %v3656_v1 = vld [vmem:[%s5074_s23 + $0x488] sm:$0xf]  ;;  %v4655_v2 = vld [vmem:[%s5074_s23 + $0x494] sm:$0xf0] }
  0xcd   : > { %v364_v31 = vpop.f32.mrf.mxu0  ;;  %v378_v32 = vpop.f32.mrf.mxu1 }
  0xce   : > { %v379_v35 = vadd.f32 %v378_v32, %v225_v30  ;;  %v365_v38 = vadd.f32 %v364_v31, %v224_v33 }
  0xd0   : > { %v420_v39 = vmul.f32 0.01, %v379_v35  ;;  %vm412_vm4 = vcmp.ge.f32.partialorder %v379_v35, 0.0  ;;  %v419_v47 = vmul.f32 0.01, %v365_v38  ;;  %vm411_vm5 = vcmp.ge.f32.partialorder %v365_v38, 0.0 }
  0xd2   : > { %v428_v53 = vsel %vm412_vm4, %v379_v35, %v420_v39  ;;  %v427_v61 = vsel %vm411_vm5, %v365_v38, %v419_v47  ;;  %v4647_v35 = vld [vmem:[%s5074_s23 + $0x454] sm:$0xf0] }
  0xd3   : > { %v4607_v47 = vld [vmem:[%s5074_s23 + $0x314] sm:$0xf0] }
  0xd5   : > { %v366_v45 = vpop.f32.mrf.mxu0  ;;  %v380_v46 = vpop.f32.mrf.mxu1 }
  0xd6   : > { %v392_v40 = vpop.f32.mrf.mxu2  ;;  %v406_v41 = vpop.f32.mrf.mxu3  ;;  %v367_v49 = vadd.f32 %v366_v45, %v224_v33  ;;  %v381_v50 = vadd.f32 %v380_v46, %v225_v30  ;;  %v4575_v45 = vld [vmem:[%s5074_s23 + $0x214] sm:$0xf0]  ;;  %v3464_v46 = vld [vmem:[%s5074_s23 + $0x308] sm:$0xf] }
  0xd7   : > { %v393_v58 = vadd.f32 %v392_v40, %v226_v42  ;;  %v407_v59 = vadd.f32 %v406_v41, %v227_v44  ;;  %v3481_v40 = vor.u32 %v4611_v22, %v3480_v21  ;;  %v3752_v41 = vld [vmem:[%s5074_s23 + $0x548] sm:$0xf]  ;;  %v4595_v22 = vld [vmem:[%s5074_s23 + $0x2b4] sm:$0xf0] }
  0xd8   : > { %vm415_vm6 = vcmp.ge.f32.partialorder %v367_v49, 0.0  ;;  %v423_v56 = vmul.f32 0.01, %v367_v49  ;;  %vm416_vm7 = vcmp.ge.f32.partialorder %v381_v50, 0.0  ;;  %v424_v57 = vmul.f32 0.01, %v381_v50 }
  0xd9   : > { %v421_v14 = vmul.f32 0.01, %v393_v58  ;;  %v422_v15 = vmul.f32 0.01, %v407_v59  ;;  %vm413_vm8 = vcmp.ge.f32.partialorder %v393_v58, 0.0  ;;  %vm414_vm9 = vcmp.ge.f32.partialorder %v407_v59, 0.0 }
  0xda   : > { %v431_v62 = vsel %vm415_vm6, %v367_v49, %v423_v56  ;;  %v432_v63 = vsel %vm416_vm7, %v381_v50, %v424_v57  ;;  %v3625_v49 = vor.u32 %v4647_v35, %v3624_v34  ;;  %v4675_v56 = vld [vmem:[%s5074_s23 + $0x534] sm:$0xf0]  ;;  %v3320_v57 = vld [vmem:[%s5074_s23 + $0x1e8] sm:$0xf] }
  0xdb   : > { %v5343_v4 = vpack.c.bf16 %v431_v62, %v427_v61  ;;  %v5345_v5 = vpack.c.bf16 %v432_v63, %v428_v53  ;;  %v429_v30 = vsel %vm413_vm8, %v393_v58, %v421_v14  ;;  %v430_v31 = vsel %vm414_vm9, %v407_v59, %v422_v15  ;;  %v4571_v58 = vld [vmem:[%s5074_s23 + $0x1f4] sm:$0xf0]  ;;  %v3448_v59 = vld [vmem:[%s5074_s23 + $0x2e8] sm:$0xf] }
  0xdc   : > { %v3465_v53 = vor.u32 %v4607_v47, %v3464_v46  ;;  %v3609_v61 = vor.u32 %v4643_v54, %v3608_v51  ;;  %v3737_v62 = vor.u32 %v4675_v56, %v3736_v55  ;;  %v3592_v63 = vld [vmem:[%s5074_s23 + $0x408] sm:$0xf]  ;;  %v3321_v3 = vor.u32 %v4571_v58, %v3320_v57  ;;  %v4635_v14 = vld [vmem:[%s5074_s23 + $0x3f4] sm:$0xf0]  ;;  %v4617_v46 = vld [vmem:[%s5074_s23 + $0x36c] sm:$0xf] }
  0xdd   : > { %1219 = vmatmul.bf16.vlgmr.msrb.gmra.mxu0 %v5343_v4  ;;  %1233 = vmatmul.bf16.vlgmr.msrb.gmra.mxu1 %v5345_v5  ;;  %v3704_v15 = vld [vmem:[%s5074_s23 + $0x4e8] sm:$0xf]  ;;  %v4559_v34 = vld [vmem:[%s5074_s23 + $0x194] sm:$0xf0]  ;;  %v3514_v47 = vld [vmem:[%s5074_s23 + $0x378] sm:$0xf0] }
  0xde   : > { %v394_v9 = vpop.f32.mrf.mxu2  ;;  %v408_v10 = vpop.f32.mrf.mxu3  ;;  %1323 = vmatpush.bf16.msrb.mxu0 %v3385_v60  ;;  %1337 = vmatpush.bf16.msrb.mxu1 %v3513_v0  ;;  %v4603_v60 = vld [vmem:[%s5074_s23 + $0x2f4] sm:$0xf0]  ;;  %v3416_v21 = vld [vmem:[%s5074_s23 + $0x2a8] sm:$0xf]  ;;  %v3517_v56 = vor.u32 %v4617_v46, %v3514_v47  ;;  %v4581_v57 = vld [vmem:[%s5074_s23 + $0x24c] sm:$0xf] }
  0xdf   : > { %v395_v16 = vadd.f32 %v394_v9, %v226_v42  ;;  %v409_v17 = vadd.f32 %v408_v10, %v227_v44  ;;  %v4679_v42 = vld [vmem:[%s5074_s23 + $0x554] sm:$0xf0]  ;;  %v3336_v44 = vld [vmem:[%s5074_s23 + $0x208] sm:$0xf]  ;;  %v3449_v6 = vor.u32 %v4603_v60, %v3448_v59  ;;  %v3370_v58 = vld [vmem:[%s5074_s23 + $0x258] sm:$0xf0] }
  0xe0   : > { %v3753_v50 = vor.u32 %v4679_v42, %v3752_v41  ;;  %v3337_v52 = vor.u32 %v4575_v45, %v3336_v44  ;;  %v4639_v0 = vld [vmem:[%s5074_s23 + $0x414] sm:$0xf0]  ;;  %v3432_v9 = vld [vmem:[%s5074_s23 + $0x2c8] sm:$0xf]  ;;  %v4585_v41 = vld [vmem:[%s5074_s23 + $0x26c] sm:$0xf] }
  0xe1   : > { %vm417_vm10 = vcmp.ge.f32.partialorder %v395_v16, 0.0  ;;  %v425_v23 = vmul.f32 0.01, %v395_v16  ;;  %vm418_vm11 = vcmp.ge.f32.partialorder %v409_v17, 0.0  ;;  %v426_v24 = vmul.f32 0.01, %v409_v17 }
  0xe2   : > { %1324 = vmatpush.bf16.msrb.mxu0 %v3369_v19  ;;  %1338 = vmatpush.bf16.msrb.mxu1 %v3497_v20  ;;  %v4599_v10 = vld [vmem:[%s5074_s23 + $0x2d4] sm:$0xf0]  ;;  %v3593_v11 = vor.u32 %v4639_v0, %v3592_v63  ;;  %v3288_v19 = vld [vmem:[%s5074_s23 + $0x1a8] sm:$0xf]  ;;  %v3386_v42 = vld [vmem:[%s5074_s23 + $0x278] sm:$0xf0] }
  0xe3   : > { %v433_v32 = vsel %vm417_vm10, %v395_v16, %v425_v23  ;;  %v434_v33 = vsel %vm418_vm11, %v409_v17, %v426_v24  ;;  %v4667_v16 = vld [vmem:[%s5074_s23 + $0x4f4] sm:$0xf0]  ;;  %v3305_v17 = vor.u32 %v4567_v8, %v3304_v7  ;;  %v3433_v18 = vor.u32 %v4599_v10, %v3432_v9  ;;  %v3400_v35 = vld [vmem:[%s5074_s23 + $0x288] sm:$0xf]  ;;  %v4613_v59 = vld [vmem:[%s5074_s23 + $0x34c] sm:$0xf] }
  0xe4   : > { %v5360_v38 = vpack.c.bf16 %v433_v32, %v429_v30  ;;  %v5362_v39 = vpack.c.bf16 %v434_v33, %v430_v31  ;;  %v4563_v20 = vld [vmem:[%s5074_s23 + $0x1b4] sm:$0xf0]  ;;  %v3577_v23 = vor.u32 %v4635_v14, %v3576_v13  ;;  %v3705_v24 = vor.u32 %v4667_v16, %v3704_v15  ;;  %v3272_v33 = vld [vmem:[%s5074_s23 + $0x188] sm:$0xf]  ;;  %v4681_v7 = vld [vmem:[%s5074_s23 + $0x56c] sm:$0xf] }
  0xe5   : > { %v4663_v30 = vld [vmem:[%s5074_s23 + $0x4d4] sm:$0xf0]  ;;  %v3289_v31 = vor.u32 %v4563_v20, %v3288_v19  ;;  %v3417_v32 = vor.u32 %v4595_v22, %v3416_v21  ;;  %v3672_v51 = vld [vmem:[%s5074_s23 + $0x4a8] sm:$0xf]  ;;  %v3389_v55 = vor.u32 %v4585_v41, %v3386_v42  ;;  %v3770_v8 = vld [vmem:[%s5074_s23 + $0x578] sm:$0xf0]  ;;  %v3373_v9 = vor.u32 %v4581_v57, %v3370_v58 }
  0xe6   : > { %1247 = vmatmul.bf16.vlgmr.msrb.gmra.mxu2 %v5360_v38  ;;  %1261 = vmatmul.bf16.vlgmr.msrb.gmra.mxu3 %v5362_v39  ;;  %v3528_v63 = vld [vmem:[%s5074_s23 + $0x388] sm:$0xf]  ;;  %v4623_v0 = vld [vmem:[%s5074_s23 + $0x394] sm:$0xf0]  ;;  %v3657_v13 = vor.u32 %v4655_v2, %v3656_v1  ;;  %v3354_v14 = vld [vmem:[%s5074_s23 + $0x238] sm:$0xf0] }
  0xe7   : > { %1351 = vmatpush.bf16.msrb.mxu2 %v3641_v25  ;;  %1365 = vmatpush.bf16.msrb.mxu3 %v3769_v26  ;;  %v3560_v25 = vld [vmem:[%s5074_s23 + $0x3c8] sm:$0xf]  ;;  %v4631_v26 = vld [vmem:[%s5074_s23 + $0x3d4] sm:$0xf0]  ;;  %v4609_v15 = vld [vmem:[%s5074_s23 + $0x32c] sm:$0xf] }
  0xe8   : > { %1325 = vmatpush.bf16.msrb.mxu0 %v3353_v27  ;;  %1339 = vmatpush.bf16.msrb.mxu1 %v3481_v40  ;;  %v3688_v27 = vld [vmem:[%s5074_s23 + $0x4c8] sm:$0xf]  ;;  %v4591_v40 = vld [vmem:[%s5074_s23 + $0x294] sm:$0xf0]  ;;  %v3561_v44 = vor.u32 %v4631_v26, %v3560_v25  ;;  %v3482_v16 = vld [vmem:[%s5074_s23 + $0x338] sm:$0xf0] }
  0xe9   : > { %v3689_v45 = vor.u32 %v4663_v30, %v3688_v27  ;;  %v3401_v54 = vor.u32 %v4591_v40, %v3400_v35  ;;  %v4645_v19 = vld [vmem:[%s5074_s23 + $0x44c] sm:$0xf]  ;;  %v3626_v20 = vld [vmem:[%s5074_s23 + $0x458] sm:$0xf0] }
  0xea   : > { %v4677_v21 = vld [vmem:[%s5074_s23 + $0x54c] sm:$0xf]  ;;  %v3754_v22 = vld [vmem:[%s5074_s23 + $0x558] sm:$0xf0] }
  0xeb   : > { %1352 = vmatpush.bf16.msrb.mxu2 %v3625_v49  ;;  %1366 = vmatpush.bf16.msrb.mxu3 %v3753_v50  ;;  %v3544_v49 = vld [vmem:[%s5074_s23 + $0x3a8] sm:$0xf]  ;;  %v4627_v50 = vld [vmem:[%s5074_s23 + $0x3b4] sm:$0xf0]  ;;  %v4573_v25 = vld [vmem:[%s5074_s23 + $0x20c] sm:$0xf] }
  0xec   : > { %1326 = vmatpush.bf16.msrb.mxu0 %v3337_v52  ;;  %1340 = vmatpush.bf16.msrb.mxu1 %v3465_v53  ;;  %v4659_v52 = vld [vmem:[%s5074_s23 + $0x4b4] sm:$0xf0]  ;;  %v3273_v53 = vor.u32 %v4559_v34, %v3272_v33  ;;  %v3545_v60 = vor.u32 %v4627_v50, %v3544_v49  ;;  %v3338_v26 = vld [vmem:[%s5074_s23 + $0x218] sm:$0xf0]  ;;  %v4605_v27 = vld [vmem:[%s5074_s23 + $0x30c] sm:$0xf] }
  0xed   : > { %1275 = vmatmul.bf16.vlgmr.msra.gmra.mxu0 %v5343_v4  ;;  %1289 = vmatmul.bf16.vlgmr.msra.gmra.mxu1 %v5345_v5  ;;  %v3466_v30 = vld [vmem:[%s5074_s23 + $0x318] sm:$0xf0]  ;;  %v4641_v33 = vld [vmem:[%s5074_s23 + $0x42c] sm:$0xf]  ;;  %v3341_v41 = vor.u32 %v4573_v25, %v3338_v26 }
  0xee   : > { %v3610_v34 = vld [vmem:[%s5074_s23 + $0x438] sm:$0xf0]  ;;  %v4673_v35 = vld [vmem:[%s5074_s23 + $0x52c] sm:$0xf]  ;;  %v3469_v42 = vor.u32 %v4605_v27, %v3466_v30 }
  0xef   : > { %1353 = vmatpush.bf16.msrb.mxu2 %v3609_v61  ;;  %1367 = vmatpush.bf16.msrb.mxu3 %v3737_v62  ;;  %v3673_v61 = vor.u32 %v4659_v52, %v3672_v51  ;;  %v3498_v62 = vld [vmem:[%s5074_s23 + $0x358] sm:$0xf0]  ;;  %v4601_v46 = vld [vmem:[%s5074_s23 + $0x2ec] sm:$0xf]  ;;  %v3613_v49 = vor.u32 %v4641_v33, %v3610_v34 }
  0xf0   : > { %1327 = vmatpush.bf16.msrb.mxu0 %v3321_v3  ;;  %1341 = vmatpush.bf16.msrb.mxu1 %v3449_v6  ;;  %v4649_v3 = vld [vmem:[%s5074_s23 + $0x46c] sm:$0xf]  ;;  %v3642_v6 = vld [vmem:[%s5074_s23 + $0x478] sm:$0xf0]  ;;  %v3501_v10 = vor.u32 %v4613_v59, %v3498_v62 }
  0xf1   : > { %v3738_v40 = vld [vmem:[%s5074_s23 + $0x538] sm:$0xf0]  ;;  %v4637_v51 = vld [vmem:[%s5074_s23 + $0x40c] sm:$0xf] }
  0xf2   : > { %v3450_v47 = vld [vmem:[%s5074_s23 + $0x2f8] sm:$0xf0]  ;;  %v3741_v50 = vor.u32 %v4673_v35, %v3738_v40  ;;  %v4565_v57 = vld [vmem:[%s5074_s23 + $0x1cc] sm:$0xf] }
  0xf3   : > { %1354 = vmatpush.bf16.msrb.mxu2 %v3593_v11  ;;  %1368 = vmatpush.bf16.msrb.mxu3 %v3721_v12  ;;  %v4577_v11 = vld [vmem:[%s5074_s23 + $0x22c] sm:$0xf]  ;;  %v3529_v12 = vor.u32 %v4623_v0, %v3528_v63  ;;  %v3594_v52 = vld [vmem:[%s5074_s23 + $0x418] sm:$0xf0] }
  0xf4   : > { %1328 = vmatpush.bf16.msrb.mxu0 %v3305_v17  ;;  %1342 = vmatpush.bf16.msrb.mxu1 %v3433_v18  ;;  %v3645_v17 = vor.u32 %v4649_v3, %v3642_v6  ;;  %v3773_v18 = vor.u32 %v4681_v7, %v3770_v8  ;;  %v3306_v58 = vld [vmem:[%s5074_s23 + $0x1d8] sm:$0xf0]  ;;  %v4597_v59 = vld [vmem:[%s5074_s23 + $0x2cc] sm:$0xf] }
  0xf5   : > { %v4633_v63 = vld [vmem:[%s5074_s23 + $0x3ec] sm:$0xf]  ;;  %v3578_v0 = vld [vmem:[%s5074_s23 + $0x3f8] sm:$0xf0]  ;;  %v3309_v3 = vor.u32 %v4565_v57, %v3306_v58  ;;  %v4694_v57 = vld [vmem:[%s5074_s23 + $0x9cc] sm:$0xf0] }
  0xf6   : > { %1303 = vmatmul.bf16.vlgmr.msra.gmra.mxu2 %v5360_v38  ;;  %1317 = vmatmul.bf16.vlgmr.msra.gmra.mxu3 %v5362_v39  ;;  %v4665_v1 = vld [vmem:[%s5074_s23 + $0x4ec] sm:$0xf]  ;;  %v3706_v2 = vld [vmem:[%s5074_s23 + $0x4f8] sm:$0xf0]  ;;  %v4700_v58 = vld [vmem:[%s5074_s23 + $0xa04] sm:$0xf] }
  0xf7   : > { %1355 = vmatpush.bf16.msrb.mxu2 %v3577_v23  ;;  %1369 = vmatpush.bf16.msrb.mxu3 %v3705_v24  ;;  %v3357_v23 = vor.u32 %v4577_v11, %v3354_v14  ;;  %v3485_v24 = vor.u32 %v4609_v15, %v3482_v16  ;;  %v4561_v7 = vld [vmem:[%s5074_s23 + $0x1ac] sm:$0xf]  ;;  %v3290_v8 = vld [vmem:[%s5074_s23 + $0x1b8] sm:$0xf0]  ;;  %v3581_v11 = vor.u32 %v4633_v63, %v3578_v0  ;;  %v1483_v14 = vld [vmem:[%s5074_s23 + $0xa20] sm:$0xff] }
  0xf8   : > { %1329 = vmatpush.bf16.msrb.mxu0 %v3289_v31  ;;  %1343 = vmatpush.bf16.msrb.mxu1 %v3417_v32  ;;  %v3629_v31 = vor.u32 %v4645_v19, %v3626_v20  ;;  %v3757_v32 = vor.u32 %v4677_v21, %v3754_v22  ;;  %v3562_v15 = vld [vmem:[%s5074_s23 + $0x3d8] sm:$0xf0]  ;;  %v4661_v16 = vld [vmem:[%s5074_s23 + $0x4cc] sm:$0xf]  ;;  %v1549_v25 = vunpack.c.h.b16 %v1483_v14  ;;  %v4690_v63 = vld [vmem:[%s5074_s23 + $0x9ac] sm:$0xf0] }
  0xf9   : > { %v4557_v20 = vld [vmem:[%s5074_s23 + $0x18c] sm:$0xf]  ;;  %v3274_v21 = vld [vmem:[%s5074_s23 + $0x198] sm:$0xf0]  ;;  %v4696_v0 = vld [vmem:[%s5074_s23 + $0x9e4] sm:$0xf] }
  0xfa   : > { %v4589_v22 = vld [vmem:[%s5074_s23 + $0x28c] sm:$0xf]  ;;  %v3674_v33 = vld [vmem:[%s5074_s23 + $0x4b8] sm:$0xf0]  ;;  %v3277_v34 = vor.u32 %v4557_v20, %v3274_v21  ;;  %v3920_v20 = vld [vmem:[%s5074_s23 + $0x140] sm:$0xf] }
  0xfb   : > { %1356 = vmatpush.bf16.msrb.mxu2 %v3561_v44  ;;  %1370 = vmatpush.bf16.msrb.mxu3 %v3689_v45  ;;  %v4569_v44 = vld [vmem:[%s5074_s23 + $0x1ec] sm:$0xf]  ;;  %v3322_v45 = vld [vmem:[%s5074_s23 + $0x1f8] sm:$0xf0]  ;;  %v4722_v21 = vld [vmem:[%s5074_s23 + $0x14c] sm:$0xf0] }
  0xfc   : > { %1330 = vmatpush.bf16.msrb.mxu0 %v3273_v53  ;;  %1344 = vmatpush.bf16.msrb.mxu1 %v3401_v54  ;;  %v4669_v53 = vld [vmem:[%s5074_s23 + $0x50c] sm:$0xf]  ;;  %v3722_v54 = vld [vmem:[%s5074_s23 + $0x518] sm:$0xf0] }
  0xfd   : > { %v3725_v62 = vor.u32 %v4669_v53, %v3722_v54  ;;  %v4625_v30 = vld [vmem:[%s5074_s23 + $0x3ac] sm:$0xf]  ;;  %v4702_v53 = vld [vmem:[%s5074_s23 + $0xa0c] sm:$0xf0] }
  0xff   : > { %1357 = vmatpush.bf16.msrb.mxu2 %v3545_v60  ;;  %1371 = vmatpush.bf16.msrb.mxu3 %v3673_v61  ;;  %v3434_v60 = vld [vmem:[%s5074_s23 + $0x2d8] sm:$0xf0]  ;;  %v3597_v61 = vor.u32 %v4637_v51, %v3594_v52  ;;  %v3840_v52 = vld [vmem:[%s5074_s23 + $0xa00] sm:$0xf] }
 0x100   : > { %1379 = vmatpush.bf16.msra.mxu0 %v3389_v55  ;;  %1393 = vmatpush.bf16.msra.mxu1 %v3517_v56  ;;  %v3325_v55 = vor.u32 %v4569_v44, %v3322_v45  ;;  %v3453_v56 = vor.u32 %v4601_v46, %v3450_v47  ;;  %v3437_v6 = vor.u32 %v4597_v59, %v3434_v60  ;;  %v4621_v45 = vld [vmem:[%s5074_s23 + $0x38c] sm:$0xf]  ;;  %v3530_v46 = vld [vmem:[%s5074_s23 + $0x398] sm:$0xf0]  ;;  %v3842_v60 = vld [vmem:[%s5074_s23 + $0xa10] sm:$0xf0] }
 0x101   : > { %1331 = vmatmul.bf16.vlgmr.msrb.gmra.mxu0 %v5343_v4  ;;  %1345 = vmatmul.bf16.vlgmr.msrb.gmra.mxu1 %v5345_v5  ;;  %v4653_v47 = vld [vmem:[%s5074_s23 + $0x48c] sm:$0xf]  ;;  %v3841_v54 = vor.u32 %v4702_v53, %v3840_v52  ;;  %v3872_v52 = vld [vmem:[%s5074_s23 + $0xe0] sm:$0xf]  ;;  %v4710_v53 = vld [vmem:[%s5074_s23 + $0xec] sm:$0xf0] }
 0x103   : > { %1358 = vmatpush.bf16.msrb.mxu2 %v3529_v12  ;;  %1372 = vmatpush.bf16.msrb.mxu3 %v3657_v13  ;;  %v3709_v12 = vor.u32 %v4665_v1, %v3706_v2  ;;  %v4629_v13 = vld [vmem:[%s5074_s23 + $0x3cc] sm:$0xf]  ;;  %v3826_v2 = vld [vmem:[%s5074_s23 + $0x9f0] sm:$0xf0] }
 0x104   : > { %1380 = vmatpush.bf16.msra.mxu0 %v3373_v9  ;;  %1394 = vmatpush.bf16.msra.mxu1 %v3501_v10  ;;  %v4593_v9 = vld [vmem:[%s5074_s23 + $0x2ac] sm:$0xf]  ;;  %v3418_v10 = vld [vmem:[%s5074_s23 + $0x2b8] sm:$0xf0]  ;;  %v3565_v26 = vor.u32 %v4629_v13, %v3562_v15  ;;  %v3810_v13 = vld [vmem:[%s5074_s23 + $0x9d0] sm:$0xf0] }
 0x105   : > { %v3421_v19 = vor.u32 %v4593_v9, %v3418_v10  ;;  %v3776_v9 = vld [vmem:[%s5074_s23 + $0x980] sm:$0xf]  ;;  %v4686_v10 = vld [vmem:[%s5074_s23 + $0x98c] sm:$0xf0]  ;;  %v4703_v15 = vld [vmem:[%s5074_s23 + $0xa14] sm:$0xf0] }
 0x106   : > { %1359 = vmatmul.bf16.vlgmr.msrb.gmra.mxu2 %v5360_v38  ;;  %1373 = vmatmul.bf16.vlgmr.msrb.gmra.mxu3 %v5362_v39 }
 0x107   : > { %1407 = vmatpush.bf16.msra.mxu2 %v3645_v17  ;;  %1421 = vmatpush.bf16.msra.mxu3 %v3773_v18  ;;  %v3690_v17 = vld [vmem:[%s5074_s23 + $0x4d8] sm:$0xf0]  ;;  %v3293_v18 = vor.u32 %v4561_v7, %v3290_v8  ;;  %v1678_v7 = vld [vmem:[%s5074_s23 + $0x160] sm:$0xff] }
 0x108   : > { %1381 = vmatpush.bf16.msra.mxu0 %v3357_v23  ;;  %1395 = vmatpush.bf16.msra.mxu1 %v3485_v24  ;;  %v3402_v23 = vld [vmem:[%s5074_s23 + $0x298] sm:$0xf0]  ;;  %v1548_v24 = vunpack.c.l.b16 %v1483_v14  ;;  %v3693_v27 = vor.u32 %v4661_v16, %v3690_v17  ;;  %v1746_v8 = vunpack.c.l.b16 %v1678_v7  ;;  %v3848_v14 = vld [vmem:[%s5074_s23 + $0xa08] sm:$0xf] }
 0x109   : > { %v3405_v35 = vor.u32 %v4589_v22, %v3402_v23  ;;  %v3921_v22 = vor.u32 %v4722_v21, %v3920_v20  ;;  %v4688_v23 = vld [vmem:[%s5074_s23 + $0x9a4] sm:$0xf]  ;;  %v5545_v20 = vld [vmem:[%s5074_s23 + $0x168] sm:$0xff] }
 0x10a   : > { %v1572_v40 = vpack.c.b16 %v1548_v24, %v1548_v24  ;;  %v1770_v16 = vpack.c.b16 %v1746_v8, %v1746_v8  ;;  %v3794_v24 = vld [vmem:[%s5074_s23 + $0x9b0] sm:$0xf0] }
 0x10b   : > { %1408 = vmatpush.bf16.msra.mxu2 %v3629_v31  ;;  %1422 = vmatpush.bf16.msra.mxu3 %v3757_v32  ;;  %v3546_v31 = vld [vmem:[%s5074_s23 + $0x3b8] sm:$0xf0]  ;;  %v4657_v32 = vld [vmem:[%s5074_s23 + $0x4ac] sm:$0xf] }
 0x10c   : > { %1382 = vmatpush.bf16.msra.mxu0 %v3341_v41  ;;  %1396 = vmatpush.bf16.msra.mxu1 %v3469_v42  ;;  %v1573_v41 = vpack.c.b16 %v1549_v25, %v1549_v25  ;;  %v3549_v42 = vor.u32 %v4625_v30, %v3546_v31  ;;  %v3677_v44 = vor.u32 %v4657_v32, %v3674_v33  ;;  %v3832_v25 = vld [vmem:[%s5074_s23 + $0x9e8] sm:$0xf]  ;;  %v3904_v30 = vld [vmem:[%s5074_s23 + $0x120] sm:$0xf]  ;;  %v4718_v31 = vld [vmem:[%s5074_s23 + $0x12c] sm:$0xf0] }
 0x10d   : > { %v3905_v33 = vor.u32 %v4718_v31, %v3904_v30  ;;  %v4687_v30 = vld [vmem:[%s5074_s23 + $0x994] sm:$0xf0]  ;;  %v568_v31 = vperm.slane %v5323_v28, 2 }
 0x10f   : > { %1409 = vmatpush.bf16.msra.mxu2 %v3613_v49  ;;  %1423 = vmatpush.bf16.msra.mxu3 %v3741_v50  ;;  %v3658_v49 = vld [vmem:[%s5074_s23 + $0x498] sm:$0xf0]  ;;  %v3533_v50 = vor.u32 %v4621_v45, %v3530_v46  ;;  %v1747_v45 = vunpack.c.h.b16 %v1678_v7  ;;  %v4684_v46 = vld [vmem:[%s5074_s23 + $0x984] sm:$0xf] }
 0x110   : > { %1383 = vmatpush.bf16.msra.mxu0 %v3325_v55  ;;  %1397 = vmatpush.bf16.msra.mxu1 %v3453_v56  ;;  %v3661_v51 = vor.u32 %v4653_v47, %v3658_v49  ;;  %v3824_v55 = vld [vmem:[%s5074_s23 + $0x9e0] sm:$0xf]  ;;  %v3778_v47 = vld [vmem:[%s5074_s23 + $0x990] sm:$0xf0]  ;;  %v3816_v49 = vld [vmem:[%s5074_s23 + $0x9c8] sm:$0xf] }
 0x113   : > { %1410 = vmatpush.bf16.msra.mxu2 %v3597_v61  ;;  %1424 = vmatpush.bf16.msra.mxu3 %v3725_v62  ;;  %v3845_v61 = vor.u32 %v4700_v58, %v3842_v60  ;;  %v3792_v62 = vld [vmem:[%s5074_s23 + $0x9a0] sm:$0xf] }
 0x114   : > { %1384 = vmatpush.bf16.msra.mxu0 %v3309_v3  ;;  %1398 = vmatpush.bf16.msra.mxu1 %v3437_v6  ;;  %v3793_v1 = vor.u32 %v4690_v63, %v3792_v62  ;;  %v3829_v6 = vor.u32 %v4696_v0, %v3826_v2  ;;  %v3856_v60 = vld [vmem:[%s5074_s23 + $0xc0] sm:$0xf]  ;;  %v3922_v63 = vld [vmem:[%s5074_s23 + $0x150] sm:$0xf0] }
 0x117   : > { %1411 = vmatpush.bf16.msra.mxu2 %v3581_v11  ;;  %1425 = vmatpush.bf16.msra.mxu3 %v3709_v12  ;;  %v4692_v11 = vld [vmem:[%s5074_s23 + $0x9c4] sm:$0xf]  ;;  %v3777_v12 = vor.u32 %v4686_v10, %v3776_v9  ;;  %v3906_v10 = vld [vmem:[%s5074_s23 + $0x130] sm:$0xf0] }
 0x118   : > { %1385 = vmatpush.bf16.msra.mxu0 %v3293_v18  ;;  %1399 = vmatpush.bf16.msra.mxu1 %v3421_v19  ;;  %v3813_v17 = vor.u32 %v4692_v11, %v3810_v13  ;;  %v3849_v18 = vor.u32 %v4703_v15, %v3848_v14  ;;  %v1795_v19 = vsel %vm342_vm1, %v1770_v16, 0  ;;  %v4716_v9 = vld [vmem:[%s5074_s23 + $0x124] sm:$0xf]  ;;  %v4701_v15 = vld [vmem:[%s5074_s23 + $0xa0c] sm:$0xf] }
 0x119   : > { %v3909_v11 = vor.u32 %v4716_v9, %v3906_v10  ;;  %v3850_v16 = vld [vmem:[%s5074_s23 + $0xa18] sm:$0xf0]  ;;  %v4715_v10 = vld [vmem:[%s5074_s23 + $0x114] sm:$0xf0] }
 0x11b   : > { %1412 = vmatpush.bf16.msra.mxu2 %v3565_v26  ;;  %1426 = vmatpush.bf16.msra.mxu3 %v3693_v27  ;;  %v3797_v26 = vor.u32 %v4688_v23, %v3794_v24  ;;  %v4699_v27 = vld [vmem:[%s5074_s23 + $0x9f4] sm:$0xf0]  ;;  %v1748_v24 = vunpack.c.l.b16 %v5545_v20 }
 0x11c   : > { %1386 = vmatpush.bf16.msra.mxu0 %v3277_v34  ;;  %1400 = vmatpush.bf16.msra.mxu1 %v3405_v35  ;;  %v3833_v32 = vor.u32 %v4699_v27, %v3832_v25  ;;  %v3784_v27 = vld [vmem:[%s5074_s23 + $0x988] sm:$0xf] }
 0x11f   : > { %1413 = vmatpush.bf16.msra.mxu2 %v3549_v42  ;;  %1427 = vmatpush.bf16.msra.mxu3 %v3677_v44  ;;  %v567_v44 = vperm.slane %v5325_v29, 2 }
 0x120   : > { %1602 = vmatpush.bf16.xpose.msrb.mxu0 %v1572_v40  ;;  %1616 = vmatpush.bf16.xpose.msrb.mxu1 %v1573_v41  ;;  %v3888_v40 = vld [vmem:[%s5074_s23 + $0x100] sm:$0xf]  ;;  %v4714_v41 = vld [vmem:[%s5074_s23 + $0x10c] sm:$0xf0] }
 0x121   : > { %1387 = vmatmul.bf16.vlgmr.msra.gmra.mxu0 %v5343_v4  ;;  %1401 = vmatmul.bf16.vlgmr.msra.gmra.mxu1 %v5345_v5  ;;  %v4698_v4 = vld [vmem:[%s5074_s23 + $0x9ec] sm:$0xf0]  ;;  %v3808_v5 = vld [vmem:[%s5074_s23 + $0x9c0] sm:$0xf]  ;;  %v3889_v42 = vor.u32 %v4714_v41, %v3888_v40  ;;  %v3874_v40 = vld [vmem:[%s5074_s23 + $0xf0] sm:$0xf0]  ;;  %v1772_v41 = vpack.c.b16 %v1748_v24, %v1748_v24 }
 0x122   : > { %v3825_v56 = vor.u32 %v4698_v4, %v3824_v55  ;;  %v3809_v59 = vor.u32 %v4694_v57, %v3808_v5  ;;  %v3873_v4 = vor.u32 %v4710_v53, %v3872_v52 }
 0x123   : > { %1414 = vmatpush.bf16.msra.mxu2 %v3533_v50  ;;  %1428 = vmatpush.bf16.msra.mxu3 %v3661_v51  ;;  %v3781_v50 = vor.u32 %v4684_v46, %v3778_v47  ;;  %v4695_v51 = vld [vmem:[%s5074_s23 + $0x9d4] sm:$0xf0]  ;;  %v1801_v46 = vsel %vm342_vm1, %v1772_v41, 0 }
 0x124   : > { %v3817_v55 = vor.u32 %v4695_v51, %v3816_v49  ;;  %v4697_v49 = vld [vmem:[%s5074_s23 + $0x9ec] sm:$0xf] }
 0x126   : > { %1415 = vmatmul.bf16.vlgmr.msra.gmra.mxu2 %v5360_v38  ;;  %1429 = vmatmul.bf16.vlgmr.msra.gmra.mxu3 %v5362_v39  ;;  %v5498_v38 = vld [vmem:[%s5074_s23 + $0xa28] sm:$0xff] }
 0x127   : > { %v1550_v39 = vunpack.c.l.b16 %v5498_v38  ;;  %v1551_v57 = vunpack.c.h.b16 %v5498_v38 }
 0x128   : > { %1603 = vmatpush.bf16.xpose.msrb.mxu0 %v3841_v54  ;;  %1617 = vmatpush.bf16.xpose.msrb.mxu1 %v3845_v61  ;;  %v1771_v54 = vpack.c.b16 %v1747_v45, %v1747_v45  ;;  %v4706_v61 = vld [vmem:[%s5074_s23 + $0xcc] sm:$0xf0] }
 0x129   : > { %v1574_v3 = vpack.c.b16 %v1550_v39, %v1550_v39  ;;  %v4720_v39 = vld [vmem:[%s5074_s23 + $0x144] sm:$0xf]  ;;  %v3857_v62 = vor.u32 %v4706_v61, %v3856_v60 }
 0x12a   : > { %v1798_v5 = vsel %vm342_vm1, %v1771_v54, 0  ;;  %v4704_v54 = vld [vmem:[%s5074_s23 + $0xc4] sm:$0xf] }
 0x12b   : > { %1630 = vmatpush.bf16.xpose.msrb.mxu2 %v1574_v3  ;;  %v3800_v3 = vld [vmem:[%s5074_s23 + $0x9a8] sm:$0xf] }
 0x130   : > { %1604 = vmatpush.bf16.xpose.msrb.mxu0 %v3825_v56  ;;  %1618 = vmatpush.bf16.xpose.msrb.mxu1 %v3829_v6  ;;  %v4691_v6 = vld [vmem:[%s5074_s23 + $0x9b4] sm:$0xf0] }
 0x131   : > { %v3801_v8 = vor.u32 %v4691_v6, %v3800_v3  ;;  %v4693_v6 = vld [vmem:[%s5074_s23 + $0x9cc] sm:$0xf] }
 0x133   : > { %1631 = vmatpush.bf16.xpose.msrb.mxu2 %v3849_v18  ;;  %v4712_v18 = vld [vmem:[%s5074_s23 + $0x104] sm:$0xf] }
 0x138   : > { %1605 = vmatpush.bf16.xpose.msrb.mxu0 %v3809_v59  ;;  %1619 = vmatpush.bf16.xpose.msrb.mxu1 %v3813_v17  ;;  %v1575_v59 = vpack.c.b16 %v1551_v57, %v1551_v57  ;;  %v3853_v17 = vor.u32 %v4701_v15, %v3850_v16 }
 0x13a   : > { %1644 = vmatpush.bf16.xpose.msrb.mxu3 %v1575_v59 }
 0x13b   : > { %1632 = vmatpush.bf16.xpose.msrb.mxu2 %v3833_v32 }
 0x140   : > { %1606 = vmatpush.bf16.xpose.msrb.mxu0 %v3793_v1  ;;  %1620 = vmatpush.bf16.xpose.msrb.mxu1 %v3797_v26  ;;  %v3925_v1 = vor.u32 %v4720_v39, %v3922_v63  ;;  %v3912_v63 = vld [vmem:[%s5074_s23 + $0x128] sm:$0xf] }
 0x142   : > { %1645 = vmatpush.bf16.xpose.msrb.mxu3 %v3853_v17 }
 0x143   : > { %1633 = vmatpush.bf16.xpose.msrb.mxu2 %v3817_v55  ;;  %v3858_v55 = vld [vmem:[%s5074_s23 + $0xd0] sm:$0xf0] }
 0x148   : > { %1607 = vmatpush.bf16.xpose.msrb.mxu0 %v3777_v12  ;;  %1621 = vmatpush.bf16.xpose.msrb.mxu1 %v3781_v50  ;;  %v3834_v50 = vld [vmem:[%s5074_s23 + $0x9f8] sm:$0xf0] }
 0x149   : > { %v3837_v53 = vor.u32 %v4697_v49, %v3834_v50  ;;  %v1749_v49 = vunpack.c.h.b16 %v5545_v20  ;;  %v3930_v20 = vld [vmem:[%s5074_s23 + $0x158] sm:$0xf0] }
 0x14b   : > { %1634 = vmatpush.bf16.xpose.msrb.mxu2 %v3801_v8  ;;  %1646 = vmatpush.bf16.xpose.msrb.mxu3 %v3837_v53  ;;  %v3896_v8 = vld [vmem:[%s5074_s23 + $0x108] sm:$0xf]  ;;  %v3786_v53 = vld [vmem:[%s5074_s23 + $0x998] sm:$0xf0] }
 0x150   : > { %1808 = vmatpush.bf16.msra.mxu0 %v1795_v19  ;;  %1822 = vmatpush.bf16.msra.mxu1 %v1798_v5  ;;  %v3890_v19 = vld [vmem:[%s5074_s23 + $0x110] sm:$0xf0] }
 0x151   : > { %v3893_v23 = vor.u32 %v4712_v18, %v3890_v19  ;;  %v3880_v18 = vld [vmem:[%s5074_s23 + $0xe8] sm:$0xf]  ;;  %v4711_v19 = vld [vmem:[%s5074_s23 + $0xf4] sm:$0xf0] }
 0x154   : > { %1809 = vmatpush.bf16.msra.mxu0 %v3921_v22  ;;  %1823 = vmatpush.bf16.msra.mxu1 %v3925_v1 }
 0x158   : > { %1810 = vmatpush.bf16.msra.mxu0 %v3905_v33  ;;  %1824 = vmatpush.bf16.msra.mxu1 %v3909_v11 }
 0x15a   : > { %v1220_v34 = vpop.f32.mrf.mxu0  ;;  %v1234_v35 = vpop.f32.mrf.mxu1 }
 0x15b   : > { %v1221_v58 = vadd.f32 %v1220_v34, %v567_v44  ;;  %v3785_v34 = vor.u32 %v4687_v30, %v3784_v27 }
 0x15c   : > { %1811 = vmatpush.bf16.msra.mxu0 %v3889_v42  ;;  %1825 = vmatpush.bf16.msra.mxu1 %v3893_v23 }
 0x15d   : > { %v1235_v7 = vadd.f32 %v1234_v35, %v1221_v58  ;;  %v4708_v35 = vld [vmem:[%s5074_s23 + $0xe4] sm:$0xf]  ;;  %1635 = vmatpush.bf16.xpose.msrb.mxu2 %v3785_v34  ;;  %v3861_v58 = vor.u32 %v4704_v54, %v3858_v55  ;;  %v4707_v34 = vld [vmem:[%s5074_s23 + $0xd4] sm:$0xf0]  ;;  %v1773_v55 = vpack.c.b16 %v1749_v49, %v1749_v49 }
 0x15e   : > { %v3877_v42 = vor.u32 %v4708_v35, %v3874_v40 }
 0x160   : > { %1812 = vmatpush.bf16.msra.mxu0 %v3873_v4  ;;  %1826 = vmatpush.bf16.msra.mxu1 %v3877_v42  ;;  %v3928_v4 = vld [vmem:[%s5074_s23 + $0x148] sm:$0xf] }
 0x162   : > { %v1222_v56 = vpop.f32.mrf.mxu0  ;;  %v1236_v0 = vpop.f32.mrf.mxu1 }
 0x163   : > { %v1223_v12 = vadd.f32 %v1222_v56, %v567_v44  ;;  %v4723_v56 = vld [vmem:[%s5074_s23 + $0x154] sm:$0xf0] }
 0x164   : > { %1813 = vmatpush.bf16.msra.mxu0 %v3857_v62  ;;  %v3929_v59 = vor.u32 %v4723_v56, %v3928_v4  ;;  %1827 = vmatpush.bf16.msra.mxu1 %v3861_v58  ;;  %v1804_v56 = vsel %vm342_vm1, %v1773_v55, 0  ;;  %v4004_v55 = vld [vmem:[%s5074_s23 + $0x600] sm:$0xf] }
 0x165   : > { %v1237_v21 = vadd.f32 %v1236_v0, %v1223_v12  ;;  %1836 = vmatpush.bf16.msra.mxu2 %v1801_v46  ;;  %v4719_v0 = vld [vmem:[%s5074_s23 + $0x134] sm:$0xf0]  ;;  %v3897_v12 = vor.u32 %v4715_v10, %v3896_v8 }
 0x166   : > { %v3913_v1 = vor.u32 %v4719_v0, %v3912_v63  ;;  %v4717_v0 = vld [vmem:[%s5074_s23 + $0x12c] sm:$0xf] }
 0x169   : > { %v1248_v38 = vpop.f32.mrf.mxu2  ;;  %v1262_v2 = vpop.f32.mrf.mxu3  ;;  %1837 = vmatpush.bf16.msra.mxu2 %v3929_v59  ;;  %v4721_v59 = vld [vmem:[%s5074_s23 + $0x14c] sm:$0xf] }
 0x16a   : > { %v1249_v13 = vadd.f32 %v1248_v38, %v1235_v7  ;;  %v1276_v14 = vpop.f32.mrf.mxu0  ;;  %v1290_v32 = vpop.f32.mrf.mxu1  ;;  %v3818_v7 = vld [vmem:[%s5074_s23 + $0x9d8] sm:$0xf0] }
 0x16b   : > { %v1277_v51 = vadd.f32 %v1276_v14, %v568_v31  ;;  %v3821_v9 = vor.u32 %v4693_v6, %v3818_v7  ;;  %v3898_v6 = vld [vmem:[%s5074_s23 + $0x118] sm:$0xf0] }
 0x16c   : > { %v1263_v22 = vadd.f32 %v1262_v2, %v1249_v13 }
 0x16d   : > { %v1291_v62 = vadd.f32 %v1290_v32, %v1277_v51  ;;  %1838 = vmatpush.bf16.msra.mxu2 %v3913_v1  ;;  %1647 = vmatpush.bf16.xpose.msrb.mxu3 %v3821_v9  ;;  %v3864_v32 = vld [vmem:[%s5074_s23 + $0xc8] sm:$0xf]  ;;  %v3914_v1 = vld [vmem:[%s5074_s23 + $0x138] sm:$0xf0] }
 0x16e   : > { %v1443_v44 = vmul.f32 0.01, %v1263_v22  ;;  %vm1435_vm12 = vcmp.ge.f32.partialorder %v1263_v22, 0.0  ;;  %v3865_v41 = vor.u32 %v4707_v34, %v3864_v32  ;;  %v4750_v34 = vld [vmem:[%s5074_s23 + $0x64c] sm:$0xf0] }
 0x170   : > { %v1451_v5 = vsel %vm1435_vm12, %v1263_v22, %v1443_v44  ;;  %v3881_v22 = vor.u32 %v4711_v19, %v3880_v18 }
 0x171   : > { %v1250_v25 = vpop.f32.mrf.mxu2  ;;  %v1264_v26 = vpop.f32.mrf.mxu3  ;;  %1839 = vmatpush.bf16.msra.mxu2 %v3897_v12  ;;  %v3882_v12 = vld [vmem:[%s5074_s23 + $0xf8] sm:$0xf0] }
 0x172   : > { %v1251_v33 = vadd.f32 %v1250_v25, %v1237_v21  ;;  %v1278_v47 = vpop.f32.mrf.mxu0  ;;  %v1292_v2 = vpop.f32.mrf.mxu1  ;;  %v569_v21 = vperm.slane %v5330_v36, 2  ;;  %v4689_v25 = vld [vmem:[%s5074_s23 + $0x9ac] sm:$0xf] }
 0x173   : > { %v1279_v38 = vadd.f32 %v1278_v47, %v568_v31 }
 0x174   : > { %v1265_v45 = vadd.f32 %v1264_v26, %v1251_v33  ;;  %v3802_v26 = vld [vmem:[%s5074_s23 + $0x9b8] sm:$0xf0] }
 0x175   : > { %v1293_v13 = vadd.f32 %v1292_v2, %v1279_v38  ;;  %1840 = vmatpush.bf16.msra.mxu2 %v3881_v22  ;;  %v3805_v31 = vor.u32 %v4689_v25, %v3802_v26  ;;  %v3917_v2 = vor.u32 %v4717_v0, %v3914_v1  ;;  %v4052_v26 = vld [vmem:[%s5074_s23 + $0x660] sm:$0xf] }
 0x176   : > { %vm1439_vm13 = vcmp.ge.f32.partialorder %v1265_v45, 0.0  ;;  %v1447_v52 = vmul.f32 0.01, %v1265_v45 }
 0x177   : > { %1648 = vmatpush.bf16.xpose.msrb.mxu3 %v3805_v31 }
 0x178   : > { %v1455_v57 = vsel %vm1439_vm13, %v1265_v45, %v1447_v52  ;;  %v4685_v52 = vld [vmem:[%s5074_s23 + $0x98c] sm:$0xf] }
 0x179   : > { %v1459_v60 = vpack.c.bf16 %v1455_v57, %v1451_v5  ;;  %v1304_v61 = vpop.f32.mrf.mxu2  ;;  %v1318_v39 = vpop.f32.mrf.mxu3  ;;  %1841 = vmatpush.bf16.msra.mxu2 %v3865_v41  ;;  %v3789_v54 = vor.u32 %v4685_v52, %v3786_v53 }
 0x17a   : > { %v1305_v3 = vadd.f32 %v1304_v61, %v1291_v62  ;;  %v3933_v61 = vor.u32 %v4721_v59, %v3930_v20 }
 0x17b   : > { %1608 = vmatmul.bf16.vlgmr.msrb.gmra.mxu0 %v1459_v60 }
 0x17c   : > { %v1319_v14 = vadd.f32 %v1318_v39, %v1305_v3  ;;  %v4713_v3 = vld [vmem:[%s5074_s23 + $0x10c] sm:$0xf] }
 0x17d   : > { %v3901_v9 = vor.u32 %v4713_v3, %v3898_v6  ;;  %v3972_v3 = vld [vmem:[%s5074_s23 + $0x5c0] sm:$0xf]  ;;  %v4734_v6 = vld [vmem:[%s5074_s23 + $0x5cc] sm:$0xf0] }
 0x17e   : > { %v1332_v11 = vpop.f32.mrf.mxu0  ;;  %v1444_v23 = vmul.f32 0.01, %v1319_v14  ;;  %vm1436_vm14 = vcmp.ge.f32.partialorder %v1319_v14, 0.0  ;;  %v1346_v27 = vpop.f32.mrf.mxu1 }
 0x17f   : > { %v1333_v33 = vadd.f32 %v1332_v11, %v569_v21  ;;  %1649 = vmatpush.bf16.xpose.msrb.mxu3 %v3789_v54  ;;  %v4709_v11 = vld [vmem:[%s5074_s23 + $0xec] sm:$0xf] }
 0x180   : > { %v1452_v35 = vsel %vm1436_vm14, %v1319_v14, %v1444_v23  ;;  %v3885_v14 = vor.u32 %v4709_v11, %v3882_v12  ;;  %v3940_v11 = vld [vmem:[%s5074_s23 + $0x580] sm:$0xf]  ;;  %v4726_v12 = vld [vmem:[%s5074_s23 + $0x58c] sm:$0xf0] }
 0x181   : > { %v1306_v15 = vpop.f32.mrf.mxu2  ;;  %v1320_v16 = vpop.f32.mrf.mxu3  ;;  %v1347_v47 = vadd.f32 %v1346_v27, %v1333_v33  ;;  %v4754_v27 = vld [vmem:[%s5074_s23 + $0x66c] sm:$0xf0] }
 0x182   : > { %v1307_v17 = vadd.f32 %v1306_v15, %v1293_v13  ;;  %v4705_v15 = vld [vmem:[%s5074_s23 + $0xcc] sm:$0xf]  ;;  %v4053_v33 = vor.u32 %v4754_v27, %v4052_v26  ;;  %v4100_v26 = vld [vmem:[%s5074_s23 + $0x6c0] sm:$0xf]  ;;  %v4766_v27 = vld [vmem:[%s5074_s23 + $0x6cc] sm:$0xf0] }
 0x184   : > { %v1321_v24 = vadd.f32 %v1320_v16, %v1307_v17  ;;  %v3866_v16 = vld [vmem:[%s5074_s23 + $0xd8] sm:$0xf0]  ;;  %v570_v17 = vperm.slane %v5332_v37, 2  ;;  %2662 = vmatpush.bf16.msrb.mxu0 %v4053_v33  ;;  %v4308_v33 = vld [vmem:[%s5074_s23 + $0x860] sm:$0xf] }
 0x185   : > { %v3869_v18 = vor.u32 %v4705_v15, %v3866_v16  ;;  %v4774_v15 = vld [vmem:[%s5074_s23 + $0x70c] sm:$0xf0]  ;;  %v4752_v16 = vld [vmem:[%s5074_s23 + $0x664] sm:$0xf] }
 0x186   : > { %vm1440_vm15 = vcmp.ge.f32.partialorder %v1321_v24, 0.0  ;;  %v1448_v30 = vmul.f32 0.01, %v1321_v24  ;;  %v1334_v44 = vpop.f32.mrf.mxu0  ;;  %v1348_v4 = vpop.f32.mrf.mxu1 }
 0x187   : > { %v1335_v50 = vadd.f32 %v1334_v44, %v569_v21  ;;  %1850 = vmatpush.bf16.msra.mxu3 %v1804_v56  ;;  %v4180_v44 = vld [vmem:[%s5074_s23 + $0x760] sm:$0xf] }
 0x188   : > { %v1456_v40 = vsel %vm1440_vm15, %v1321_v24, %v1448_v30  ;;  %v4036_v30 = vld [vmem:[%s5074_s23 + $0x640] sm:$0xf] }
 0x189   : > { %v1460_v42 = vpack.c.bf16 %v1456_v40, %v1452_v35  ;;  %v1360_v45 = vpop.f32.mrf.mxu2  ;;  %v1374_v46 = vpop.f32.mrf.mxu3  ;;  %v1349_v5 = vadd.f32 %v1348_v4, %v1335_v50  ;;  %v4037_v35 = vor.u32 %v4750_v34, %v4036_v30  ;;  %v4020_v40 = vld [vmem:[%s5074_s23 + $0x620] sm:$0xf]  ;;  %v4101_v30 = vor.u32 %v4766_v27, %v4100_v26  ;;  %v4118_v26 = vld [vmem:[%s5074_s23 + $0x6f0] sm:$0xf0] }
 0x18a   : > { %v1361_v51 = vadd.f32 %v1360_v45, %v1347_v47  ;;  %v4786_v45 = vld [vmem:[%s5074_s23 + $0x76c] sm:$0xf0]  ;;  %v4164_v50 = vld [vmem:[%s5074_s23 + $0x740] sm:$0xf] }
 0x18b   : > { %1622 = vmatmul.bf16.vlgmr.msrb.gmra.mxu1 %v1460_v42  ;;  %3934 = vmatmul.msk.bf16.vlgmr.msra.gmra.mxu0 %vm338_vm3, %v5204_v48  ;;  %v4746_v42 = vld [vmem:[%s5074_s23 + $0x62c] sm:$0xf0]  ;;  %v4181_v49 = vor.u32 %v4786_v45, %v4180_v44  ;;  %v4740_v44 = vld [vmem:[%s5074_s23 + $0x604] sm:$0xf]  ;;  %v4006_v45 = vld [vmem:[%s5074_s23 + $0x610] sm:$0xf0] }
 0x18c   : > { %v1375_v57 = vadd.f32 %v1374_v46, %v1361_v51  ;;  %1851 = vmatpush.bf16.msra.mxu3 %v3933_v61  ;;  %v4782_v51 = vld [vmem:[%s5074_s23 + $0x74c] sm:$0xf0]  ;;  %2663 = vmatpush.bf16.msrb.mxu0 %v4037_v35  ;;  %v4021_v54 = vor.u32 %v4746_v42, %v4020_v40  ;;  %v4084_v40 = vld [vmem:[%s5074_s23 + $0x6a0] sm:$0xf] }
 0x18d   : > { %2676 = vmatpush.bf16.msrb.mxu1 %v4181_v49  ;;  %v4165_v4 = vor.u32 %v4782_v51, %v4164_v50  ;;  %v4818_v35 = vld [vmem:[%s5074_s23 + $0x86c] sm:$0xf0]  ;;  %v4292_v49 = vld [vmem:[%s5074_s23 + $0x840] sm:$0xf] }
 0x18e   : > { %v1445_v62 = vmul.f32 0.01, %v1375_v57  ;;  %vm1437_vm0 = vcmp.ge.f32.partialorder %v1375_v57, 0.0  ;;  %v4309_v42 = vor.u32 %v4818_v35, %v4308_v33  ;;  %v4814_v50 = vld [vmem:[%s5074_s23 + $0x84c] sm:$0xf0] }
 0x18f   : > { %v4293_v51 = vor.u32 %v4814_v50, %v4292_v49  ;;  %v4764_v33 = vld [vmem:[%s5074_s23 + $0x6c4] sm:$0xf]  ;;  %v4310_v50 = vld [vmem:[%s5074_s23 + $0x870] sm:$0xf0] }
 0x190   : > { %v1453_v7 = vsel %vm1437_vm0, %v1375_v57, %v1445_v62  ;;  %1852 = vmatpush.bf16.msra.mxu3 %v3917_v2  ;;  %v4148_v57 = vld [vmem:[%s5074_s23 + $0x720] sm:$0xf]  ;;  %2664 = vmatpush.bf16.msrb.mxu0 %v4021_v54  ;;  %v4816_v49 = vld [vmem:[%s5074_s23 + $0x864] sm:$0xf] }
 0x191   : > { %v1362_v58 = vpop.f32.mrf.mxu2  ;;  %v1376_v39 = vpop.f32.mrf.mxu3  ;;  %2677 = vmatpush.bf16.msrb.mxu1 %v4165_v4  ;;  %v3988_v62 = vld [vmem:[%s5074_s23 + $0x5e0] sm:$0xf]  ;;  %v3990_v4 = vld [vmem:[%s5074_s23 + $0x5f0] sm:$0xf0] }
 0x192   : > { %v1363_v60 = vadd.f32 %v1362_v58, %v1349_v5  ;;  %v4742_v5 = vld [vmem:[%s5074_s23 + $0x60c] sm:$0xf0] }
 0x193   : > { %v4778_v58 = vld [vmem:[%s5074_s23 + $0x72c] sm:$0xf0]  ;;  %v4005_v61 = vor.u32 %v4742_v5, %v4004_v55  ;;  %v4736_v55 = vld [vmem:[%s5074_s23 + $0x5e4] sm:$0xf] }
 0x194   : > { %v1377_v63 = vadd.f32 %v1376_v39, %v1363_v60  ;;  %1853 = vmatpush.bf16.msra.mxu3 %v3901_v9  ;;  %v4149_v39 = vor.u32 %v4778_v58, %v4148_v57  ;;  %v4730_v9 = vld [vmem:[%s5074_s23 + $0x5ac] sm:$0xf0]  ;;  %v4784_v5 = vld [vmem:[%s5074_s23 + $0x764] sm:$0xf]  ;;  %v4182_v57 = vld [vmem:[%s5074_s23 + $0x770] sm:$0xf0] }
 0x195   : > { %2665 = vmatpush.bf16.msrb.mxu0 %v4005_v61  ;;  %v4276_v58 = vld [vmem:[%s5074_s23 + $0x820] sm:$0xf]  ;;  %v4732_v61 = vld [vmem:[%s5074_s23 + $0x5c4] sm:$0xf] }
 0x196   : > { %vm1441_vm1 = vcmp.ge.f32.partialorder %v1377_v63, 0.0  ;;  %v1449_v38 = vmul.f32 0.01, %v1377_v63  ;;  %2678 = vmatpush.bf16.msrb.mxu1 %v4149_v39  ;;  %v3974_v39 = vld [vmem:[%s5074_s23 + $0x5d0] sm:$0xf0] }
 0x198   : > { %v1457_v8 = vsel %vm1441_vm1, %v1377_v63, %v1449_v38  ;;  %1854 = vmatpush.bf16.msra.mxu3 %v3885_v14  ;;  %v4738_v63 = vld [vmem:[%s5074_s23 + $0x5ec] sm:$0xf0]  ;;  %v3941_v14 = vor.u32 %v4726_v12, %v3940_v11  ;;  %v4244_v11 = vld [vmem:[%s5074_s23 + $0x7e0] sm:$0xf] }
 0x199   : > { %v1461_v10 = vpack.c.bf16 %v1457_v8, %v1453_v7  ;;  %v3989_v2 = vor.u32 %v4738_v63, %v3988_v62  ;;  %v3973_v7 = vor.u32 %v4734_v6, %v3972_v3  ;;  %v3956_v8 = vld [vmem:[%s5074_s23 + $0x5a0] sm:$0xf]  ;;  %v4780_v62 = vld [vmem:[%s5074_s23 + $0x744] sm:$0xf]  ;;  %v3977_v63 = vor.u32 %v4732_v61, %v3974_v39  ;;  %v4802_v12 = vld [vmem:[%s5074_s23 + $0x7ec] sm:$0xf0] }
 0x19a   : > { %v4728_v6 = vld [vmem:[%s5074_s23 + $0x5a4] sm:$0xf]  ;;  %v4404_v39 = vld [vmem:[%s5074_s23 + $0x920] sm:$0xf] }
 0x19b   : > { %3935 = vmatmul.msk.bf16.vlgmr.msra.gmra.mxu1 %vm338_vm3, %v5204_v48  ;;  %1636 = vmatmul.bf16.vlgmr.msrb.gmra.mxu2 %v1461_v10  ;;  %v3957_v10 = vor.u32 %v4730_v9, %v3956_v8  ;;  %v4776_v8 = vld [vmem:[%s5074_s23 + $0x724] sm:$0xf] }
 0x19c   : > { %1855 = vmatpush.bf16.msra.mxu3 %v3869_v18  ;;  %2666 = vmatpush.bf16.msrb.mxu0 %v3989_v2 }
 0x19d   : > { %2690 = vmatpush.bf16.msrb.mxu2 %v4309_v42  ;;  %v4436_v42 = vld [vmem:[%s5074_s23 + $0x960] sm:$0xf] }
 0x19e   : > { %v1388_v13 = vpop.f32.mrf.mxu0  ;;  %v1402_v19 = vpop.f32.mrf.mxu1 }
 0x19f   : > { %v1389_v21 = vadd.f32 %v1388_v13, %v570_v17  ;;  %v4132_v13 = vld [vmem:[%s5074_s23 + $0x700] sm:$0xf] }
 0x1a0   : > { %2667 = vmatpush.bf16.msrb.mxu0 %v3973_v7  ;;  %v4133_v18 = vor.u32 %v4774_v15, %v4132_v13  ;;  %v3958_v7 = vld [vmem:[%s5074_s23 + $0x5b0] sm:$0xf0]  ;;  %v4724_v15 = vld [vmem:[%s5074_s23 + $0x584] sm:$0xf] }
 0x1a1   : > { %v1403_v25 = vadd.f32 %v1402_v19, %v1389_v21  ;;  %v4116_v21 = vld [vmem:[%s5074_s23 + $0x6e0] sm:$0xf]  ;;  %2691 = vmatpush.bf16.msrb.mxu2 %v4293_v51  ;;  %v3961_v9 = vor.u32 %v4728_v6, %v3958_v7  ;;  %v4313_v51 = vor.u32 %v4816_v49, %v4310_v50  ;;  %v4278_v6 = vld [vmem:[%s5074_s23 + $0x830] sm:$0xf0]  ;;  %v4751_v49 = vld [vmem:[%s5074_s23 + $0x654] sm:$0xf0] }
 0x1a2   : > { %2679 = vmatpush.bf16.msrb.mxu1 %v4133_v18 }
 0x1a4   : > { %2668 = vmatpush.bf16.msrb.mxu0 %v3957_v10  ;;  %v4150_v10 = vld [vmem:[%s5074_s23 + $0x730] sm:$0xf0] }
 0x1a5   : > { %v4153_v13 = vor.u32 %v4776_v8, %v4150_v10  ;;  %v4838_v10 = vld [vmem:[%s5074_s23 + $0x90c] sm:$0xf0] }
 0x1a6   : > { %v1390_v22 = vpop.f32.mrf.mxu0  ;;  %v1404_v41 = vpop.f32.mrf.mxu1 }
 0x1a7   : > { %v1391_v31 = vadd.f32 %v1390_v22, %v570_v17  ;;  %v4054_v17 = vld [vmem:[%s5074_s23 + $0x670] sm:$0xf0]  ;;  %v4770_v22 = vld [vmem:[%s5074_s23 + $0x6ec] sm:$0xf0] }
 0x1a8   : > { %v4057_v19 = vor.u32 %v4752_v16, %v4054_v17  ;;  %2669 = vmatpush.bf16.msrb.mxu0 %v3941_v14  ;;  %v4245_v14 = vor.u32 %v4802_v12, %v4244_v11  ;;  %v3942_v16 = vld [vmem:[%s5074_s23 + $0x590] sm:$0xf0]  ;;  %v4772_v17 = vld [vmem:[%s5074_s23 + $0x704] sm:$0xf] }
 0x1a9   : > { %v1416_v23 = vpop.f32.mrf.mxu2  ;;  %v1430_v24 = vpop.f32.mrf.mxu3  ;;  %v1405_v46 = vadd.f32 %v1404_v41, %v1391_v31  ;;  %v4744_v31 = vld [vmem:[%s5074_s23 + $0x624] sm:$0xf]  ;;  %v4762_v41 = vld [vmem:[%s5074_s23 + $0x6ac] sm:$0xf0]  ;;  %v3945_v18 = vor.u32 %v4724_v15, %v3942_v16  ;;  %v4372_v16 = vld [vmem:[%s5074_s23 + $0x8e0] sm:$0xf] }
 0x1aa   : > { %v1417_v32 = vadd.f32 %v1416_v23, %v1403_v25  ;;  %v4748_v23 = vld [vmem:[%s5074_s23 + $0x644] sm:$0xf] }
 0x1ab   : > { %3936 = vmatmul.msk.bf16.vlgmr.msra.gmra.mxu2 %vm338_vm3, %v5204_v48 }
 0x1ac   : > { %v1431_v47 = vadd.f32 %v1430_v24, %v1417_v32  ;;  %2718 = vmatpush.bf16.msra.mxu0 %v4057_v19  ;;  %v4117_v24 = vor.u32 %v4770_v22, %v4116_v21  ;;  %v4022_v32 = vld [vmem:[%s5074_s23 + $0x630] sm:$0xf0]  ;;  %v4228_v21 = vld [vmem:[%s5074_s23 + $0x7c0] sm:$0xf] }
 0x1ad   : > { %v4025_v34 = vor.u32 %v4744_v31, %v4022_v32  ;;  %v4134_v19 = vld [vmem:[%s5074_s23 + $0x710] sm:$0xf0]  ;;  %v4794_v31 = vld [vmem:[%s5074_s23 + $0x7ac] sm:$0xf0] }
 0x1ae   : > { %v1446_v59 = vmul.f32 0.01, %v1431_v47  ;;  %vm1438_vm4 = vcmp.ge.f32.partialorder %v1431_v47, 0.0  ;;  %2680 = vmatpush.bf16.msrb.mxu1 %v4117_v24  ;;  %v4137_v22 = vor.u32 %v4772_v17, %v4134_v19  ;;  %v4834_v17 = vld [vmem:[%s5074_s23 + $0x8ec] sm:$0xf0] }
 0x1b0   : > { %v1454_v0 = vsel %vm1438_vm4, %v1431_v47, %v1446_v59  ;;  %v4009_v47 = vor.u32 %v4740_v44, %v4006_v45  ;;  %v4185_v59 = vor.u32 %v4784_v5, %v4182_v57  ;;  %v4850_v45 = vld [vmem:[%s5074_s23 + $0x96c] sm:$0xf0]  ;;  %v4812_v57 = vld [vmem:[%s5074_s23 + $0x844] sm:$0xf] }
 0x1b1   : > { %v1418_v52 = vpop.f32.mrf.mxu2  ;;  %v1432_v56 = vpop.f32.mrf.mxu3 }
 0x1b2   : > { %v1419_v53 = vadd.f32 %v1418_v52, %v1405_v46  ;;  %2681 = vmatpush.bf16.msrb.mxu1 %v4101_v30  ;;  %v4085_v46 = vor.u32 %v4762_v41, %v4084_v40  ;;  %v4068_v52 = vld [vmem:[%s5074_s23 + $0x680] sm:$0xf]  ;;  %v4790_v41 = vld [vmem:[%s5074_s23 + $0x78c] sm:$0xf0] }
 0x1b3   : > { %v4212_v30 = vld [vmem:[%s5074_s23 + $0x7a0] sm:$0xf] }
 0x1b4   : > { %v1433_v20 = vadd.f32 %v1432_v56, %v1419_v53  ;;  %v4758_v53 = vld [vmem:[%s5074_s23 + $0x68c] sm:$0xf0]  ;;  %v3993_v56 = vor.u32 %v4736_v55, %v3990_v4  ;;  %v4213_v32 = vor.u32 %v4794_v31, %v4212_v30  ;;  %v4196_v40 = vld [vmem:[%s5074_s23 + $0x780] sm:$0xf]  ;;  %v4755_v31 = vld [vmem:[%s5074_s23 + $0x674] sm:$0xf0] }
 0x1b5   : > { %v4069_v54 = vor.u32 %v4758_v53, %v4068_v52  ;;  %v4197_v44 = vor.u32 %v4790_v41, %v4196_v40  ;;  %v4760_v52 = vld [vmem:[%s5074_s23 + $0x6a4] sm:$0xf]  ;;  %v4086_v53 = vld [vmem:[%s5074_s23 + $0x6b0] sm:$0xf0]  ;;  %v4420_v55 = vld [vmem:[%s5074_s23 + $0x940] sm:$0xf] }
 0x1b6   : > { %vm1442_vm5 = vcmp.ge.f32.partialorder %v1433_v20, 0.0  ;;  %v1450_v60 = vmul.f32 0.01, %v1433_v20  ;;  %2682 = vmatpush.bf16.msrb.mxu1 %v4085_v46  ;;  %v4846_v4 = vld [vmem:[%s5074_s23 + $0x94c] sm:$0xf0] }
 0x1b7   : > { %v4421_v5 = vor.u32 %v4846_v4, %v4420_v55  ;;  %v4796_v41 = vld [vmem:[%s5074_s23 + $0x7c4] sm:$0xf]  ;;  %v4214_v4 = vld [vmem:[%s5074_s23 + $0x7b0] sm:$0xf0] }
 0x1b8   : > { %v1458_v1 = vsel %vm1442_vm5, %v1433_v20, %v1450_v60  ;;  %v4810_v20 = vld [vmem:[%s5074_s23 + $0x82c] sm:$0xf0]  ;;  %v4792_v55 = vld [vmem:[%s5074_s23 + $0x7a4] sm:$0xf] }
 0x1b9   : > { %v1462_v38 = vpack.c.bf16 %v1458_v1, %v1454_v0  ;;  %v4277_v60 = vor.u32 %v4810_v20, %v4276_v58  ;;  %v4166_v0 = vld [vmem:[%s5074_s23 + $0x750] sm:$0xf0]  ;;  %v4260_v1 = vld [vmem:[%s5074_s23 + $0x800] sm:$0xf]  ;;  %v4756_v20 = vld [vmem:[%s5074_s23 + $0x684] sm:$0xf] }
 0x1ba   : > { %2683 = vmatpush.bf16.msrb.mxu1 %v4069_v54  ;;  %v4169_v2 = vor.u32 %v4780_v62, %v4166_v0  ;;  %v4089_v54 = vor.u32 %v4760_v52, %v4086_v53  ;;  %v4294_v58 = vld [vmem:[%s5074_s23 + $0x850] sm:$0xf0]  ;;  %v4842_v62 = vld [vmem:[%s5074_s23 + $0x92c] sm:$0xf0]  ;;  %v1680_v0 = vperm.slane %v5325_v29, 1  ;;  %v1681_v53 = vperm.slane %v5323_v28, 1 }
 0x1bb   : > { %1650 = vmatmul.bf16.vlgmr.msrb.gmra.mxu3 %v1462_v38  ;;  %2692 = vmatpush.bf16.msrb.mxu2 %v4277_v60  ;;  %v4806_v38 = vld [vmem:[%s5074_s23 + $0x80c] sm:$0xf0]  ;;  %v4070_v60 = vld [vmem:[%s5074_s23 + $0x690] sm:$0xf0] }
 0x1bc   : > { %v4261_v3 = vor.u32 %v4806_v38, %v4260_v1  ;;  %v4073_v61 = vor.u32 %v4756_v20, %v4070_v60  ;;  %v4405_v1 = vor.u32 %v4842_v62, %v4404_v39  ;;  %v4826_v52 = vld [vmem:[%s5074_s23 + $0x8ac] sm:$0xf0]  ;;  %v4324_v20 = vld [vmem:[%s5074_s23 + $0x880] sm:$0xf]  ;;  %v4788_v62 = vld [vmem:[%s5074_s23 + $0x784] sm:$0xf] }
 0x1bd   : > { %v4822_v60 = vld [vmem:[%s5074_s23 + $0x88c] sm:$0xf0] }
 0x1be   : > { %2732 = vmatpush.bf16.msra.mxu1 %v4185_v59  ;;  %v4297_v59 = vor.u32 %v4812_v57, %v4294_v58  ;;  %v4028_v58 = vld [vmem:[%s5074_s23 + $0x628] sm:$0xf]  ;;  %v4325_v39 = vor.u32 %v4822_v60, %v4324_v20  ;;  %v4775_v20 = vld [vmem:[%s5074_s23 + $0x714] sm:$0xf0] }
 0x1bf   : > { %2693 = vmatpush.bf16.msrb.mxu2 %v4261_v3  ;;  %v4808_v3 = vld [vmem:[%s5074_s23 + $0x824] sm:$0xf] }
 0x1c0   : > { %v4281_v8 = vor.u32 %v4808_v3, %v4278_v6  ;;  %v4012_v3 = vld [vmem:[%s5074_s23 + $0x608] sm:$0xf]  ;;  %v4743_v6 = vld [vmem:[%s5074_s23 + $0x614] sm:$0xf0] }
 0x1c2   : > { %2733 = vmatpush.bf16.msra.mxu1 %v4169_v2 }
 0x1c3   : > { %2694 = vmatpush.bf16.msrb.mxu2 %v4245_v14  ;;  %v4262_v14 = vld [vmem:[%s5074_s23 + $0x810] sm:$0xf0] }
 0x1c6   : > { %2734 = vmatpush.bf16.msra.mxu1 %v4153_v13  ;;  %v4804_v13 = vld [vmem:[%s5074_s23 + $0x804] sm:$0xf] }
 0x1c7   : > { %v4265_v15 = vor.u32 %v4804_v13, %v4262_v14  ;;  %v4844_v13 = vld [vmem:[%s5074_s23 + $0x944] sm:$0xf]  ;;  %v4422_v14 = vld [vmem:[%s5074_s23 + $0x950] sm:$0xf0] }
 0x1ca   : > { %2735 = vmatpush.bf16.msra.mxu1 %v4137_v22 }
 0x1cb   : > { %3937 = vmatmul.msk.bf16.vlgmr.msra.gmra.mxu3 %vm338_vm3, %v5204_v48  ;;  %v4038_v48 = vld [vmem:[%s5074_s23 + $0x650] sm:$0xf0] }
 0x1cc   : > { %v4041_v25 = vor.u32 %v4748_v23, %v4038_v48  ;;  %v4798_v23 = vld [vmem:[%s5074_s23 + $0x7cc] sm:$0xf0] }
 0x1cd   : > { %v4229_v24 = vor.u32 %v4798_v23, %v4228_v21  ;;  %v4373_v21 = vor.u32 %v4834_v17, %v4372_v16  ;;  %v4013_v16 = vor.u32 %v4743_v6, %v4012_v3  ;;  %v3996_v17 = vld [vmem:[%s5074_s23 + $0x5e8] sm:$0xf] }
 0x1ce   : > { %2719 = vmatpush.bf16.msra.mxu0 %v4041_v25  ;;  %v4768_v25 = vld [vmem:[%s5074_s23 + $0x6e4] sm:$0xf]  ;;  %v4124_v6 = vld [vmem:[%s5074_s23 + $0x6e8] sm:$0xf] }
 0x1cf   : > { %2695 = vmatpush.bf16.msrb.mxu2 %v4229_v24  ;;  %v4121_v27 = vor.u32 %v4768_v25, %v4118_v26  ;;  %v4246_v24 = vld [vmem:[%s5074_s23 + $0x7f0] sm:$0xf0] }
 0x1d1   : > { %2736 = vmatpush.bf16.msra.mxu1 %v4121_v27  ;;  %v4060_v27 = vld [vmem:[%s5074_s23 + $0x668] sm:$0xf] }
 0x1d2   : > { %2720 = vmatpush.bf16.msra.mxu0 %v4025_v34  ;;  %v4102_v34 = vld [vmem:[%s5074_s23 + $0x6d0] sm:$0xf0] }
 0x1d3   : > { %2696 = vmatpush.bf16.msrb.mxu2 %v4213_v32  ;;  %v4105_v35 = vor.u32 %v4764_v33, %v4102_v34  ;;  %v4356_v32 = vld [vmem:[%s5074_s23 + $0x8c0] sm:$0xf]  ;;  %v4830_v33 = vld [vmem:[%s5074_s23 + $0x8cc] sm:$0xf0] }
 0x1d4   : > { %v4357_v40 = vor.u32 %v4830_v33, %v4356_v32  ;;  %v4735_v33 = vld [vmem:[%s5074_s23 + $0x5d4] sm:$0xf0] }
 0x1d5   : > { %2737 = vmatpush.bf16.msra.mxu1 %v4105_v35 }
 0x1d6   : > { %2721 = vmatpush.bf16.msra.mxu0 %v4009_v47  ;;  %v4437_v47 = vor.u32 %v4850_v45, %v4436_v42  ;;  %v4044_v45 = vld [vmem:[%s5074_s23 + $0x648] sm:$0xf] }
 0x1d7   : > { %2697 = vmatpush.bf16.msrb.mxu2 %v4197_v44  ;;  %v4061_v44 = vor.u32 %v4755_v31, %v4060_v27  ;;  %v4045_v57 = vor.u32 %v4751_v49, %v4044_v45  ;;  %v3980_v31 = vld [vmem:[%s5074_s23 + $0x5c8] sm:$0xf]  ;;  %v4390_v45 = vld [vmem:[%s5074_s23 + $0x910] sm:$0xf0] }
 0x1d8   : > { %2704 = vmatpush.bf16.msrb.mxu3 %v4437_v47 }
 0x1d9   : > { %2738 = vmatpush.bf16.msra.mxu1 %v4089_v54 }
 0x1da   : > { %2722 = vmatpush.bf16.msra.mxu0 %v3993_v56  ;;  %v1485_v56 = vperm.slane %v5325_v29, 4 }
 0x1db   : > { %2746 = vmatpush.bf16.msra.mxu2 %v4313_v51  ;;  %v4340_v51 = vld [vmem:[%s5074_s23 + $0x8a0] sm:$0xf] }
 0x1dc   : > { %2705 = vmatpush.bf16.msrb.mxu3 %v4421_v5  ;;  %v4341_v54 = vor.u32 %v4826_v52, %v4340_v51  ;;  %v4217_v5 = vor.u32 %v4792_v55, %v4214_v4  ;;  %v4731_v51 = vld [vmem:[%s5074_s23 + $0x5b4] sm:$0xf0]  ;;  %v4156_v52 = vld [vmem:[%s5074_s23 + $0x728] sm:$0xf]  ;;  %v4374_v55 = vld [vmem:[%s5074_s23 + $0x8f0] sm:$0xf0] }
 0x1dd   : > { %2739 = vmatpush.bf16.msra.mxu1 %v4073_v61  ;;  %v1682_v4 = vperm.slane %v5330_v36, 1 }
 0x1de   : > { %2723 = vmatpush.bf16.msra.mxu0 %v3977_v63 }
 0x1df   : > { %2747 = vmatpush.bf16.msra.mxu2 %v4297_v59  ;;  %v4747_v59 = vld [vmem:[%s5074_s23 + $0x634] sm:$0xf0] }
 0x1e0   : > { %2706 = vmatpush.bf16.msrb.mxu3 %v4405_v1  ;;  %v4029_v1 = vor.u32 %v4747_v59, %v4028_v58  ;;  %v4727_v58 = vld [vmem:[%s5074_s23 + $0x594] sm:$0xf0]  ;;  %v4140_v59 = vld [vmem:[%s5074_s23 + $0x708] sm:$0xf] }
 0x1e2   : > { %2724 = vmatpush.bf16.msra.mxu0 %v3961_v9  ;;  %v4388_v9 = vld [vmem:[%s5074_s23 + $0x900] sm:$0xf] }
 0x1e3   : > { %v4389_v11 = vor.u32 %v4838_v10, %v4388_v9  ;;  %2748 = vmatpush.bf16.msra.mxu2 %v4281_v8 }
 0x1e5   : > { %2707 = vmatpush.bf16.msrb.mxu3 %v4389_v11 }
 0x1e6   : > { %2725 = vmatpush.bf16.msra.mxu0 %v3945_v18 }
 0x1e7   : > { %2749 = vmatpush.bf16.msra.mxu2 %v4265_v15 }
 0x1e9   : > { %2708 = vmatpush.bf16.msrb.mxu3 %v4373_v21  ;;  %v4188_v21 = vld [vmem:[%s5074_s23 + $0x768] sm:$0xf] }
 0x1ed   : > { %2709 = vmatpush.bf16.msrb.mxu3 %v4357_v40 }
 0x1f1   : > { %2710 = vmatpush.bf16.msrb.mxu3 %v4341_v54  ;;  %v4832_v54 = vld [vmem:[%s5074_s23 + $0x8e4] sm:$0xf] }
 0x1f2   : > { %v4377_v60 = vor.u32 %v4832_v54, %v4374_v55  ;;  %v4300_v54 = vld [vmem:[%s5074_s23 + $0x848] sm:$0xf]  ;;  %v4815_v55 = vld [vmem:[%s5074_s23 + $0x854] sm:$0xf0] }
 0x1f5   : > { %2711 = vmatpush.bf16.msrb.mxu3 %v4325_v39  ;;  %v4753_v39 = vld [vmem:[%s5074_s23 + $0x66c] sm:$0xf] }
 0x1f8   : > { %v1609_v48 = vpop.f32.mrf.mxu0 }
 0x1f9   : > { %v1610_v63 = vadd.f32 %v1609_v48, %v1485_v56  ;;  %v4800_v48 = vld [vmem:[%s5074_s23 + $0x7e4] sm:$0xf] }
 0x1fa   : > { %v4249_v30 = vor.u32 %v4800_v48, %v4246_v24  ;;  %v4840_v48 = vld [vmem:[%s5074_s23 + $0x924] sm:$0xf]  ;;  %v4406_v24 = vld [vmem:[%s5074_s23 + $0x930] sm:$0xf0] }
 0x1fb   : > { %v4409_v40 = vor.u32 %v4840_v48, %v4406_v24  ;;  %v4820_v24 = vld [vmem:[%s5074_s23 + $0x884] sm:$0xf] }
 0x1fc   : > { %2750 = vmatpush.bf16.msra.mxu2 %v4249_v30 }
 0x200   : > { %v1611_v46 = vpop.f32.mrf.mxu0 }
 0x201   : > { %v1612_v18 = vadd.f32 %v1611_v46, %v1485_v56  ;;  %v4230_v46 = vld [vmem:[%s5074_s23 + $0x7d0] sm:$0xf0] }
 0x202   : > { %v4233_v50 = vor.u32 %v4796_v41, %v4230_v46  ;;  %v3981_v46 = vor.u32 %v4735_v33, %v3980_v31  ;;  %v4316_v31 = vld [vmem:[%s5074_s23 + $0x868] sm:$0xf]  ;;  %v4819_v33 = vld [vmem:[%s5074_s23 + $0x874] sm:$0xf0] }
 0x204   : > { %2751 = vmatpush.bf16.msra.mxu2 %v4233_v50  ;;  %v3964_v50 = vld [vmem:[%s5074_s23 + $0x5a8] sm:$0xf] }
 0x208   : > { %v1623_v38 = vpop.f32.mrf.mxu1  ;;  %v1815_v2 = vpop.f32.mrf.mxu0  ;;  %2752 = vmatpush.bf16.msra.mxu2 %v4217_v5 }
 0x209   : > { %v5690_v7 = vadd.f32 %v1623_v38, %v1610_v63  ;;  %v1816_v12 = vadd.f32 %v1815_v2, %v1680_v0  ;;  %v4198_v63 = vld [vmem:[%s5074_s23 + $0x790] sm:$0xf0] }
 0x20a   : > { %v4201_v38 = vor.u32 %v4788_v62, %v4198_v63  ;;  %v4438_v2 = vld [vmem:[%s5074_s23 + $0x970] sm:$0xf0]  ;;  %v4062_v62 = vld [vmem:[%s5074_s23 + $0x678] sm:$0xf0]  ;;  %v4828_v63 = vld [vmem:[%s5074_s23 + $0x8c4] sm:$0xf] }
 0x20b   : > { %v1870_v19 = vmul.f32 0.01, %v1816_v12  ;;  %vm1862_vm6 = vcmp.ge.f32.partialorder %v1816_v12, 0.0  ;;  %v4065_v3 = vor.u32 %v4753_v39, %v4062_v62  ;;  %v4811_v39 = vld [vmem:[%s5074_s23 + $0x834] sm:$0xf0] }
 0x20c   : > { %2753 = vmatpush.bf16.msra.mxu2 %v4201_v38  ;;  %v4141_v38 = vor.u32 %v4775_v20, %v4140_v59  ;;  %v4190_v59 = vld [vmem:[%s5074_s23 + $0x778] sm:$0xf0]  ;;  %v4301_v20 = vor.u32 %v4815_v55, %v4300_v54  ;;  %v4204_v55 = vld [vmem:[%s5074_s23 + $0x788] sm:$0xf] }
 0x20d   : > { %v1878_v34 = vsel %vm1862_vm6, %v1816_v12, %v1870_v19  ;;  %v4739_v19 = vld [vmem:[%s5074_s23 + $0x5f4] sm:$0xf0]  ;;  %v4110_v54 = vld [vmem:[%s5074_s23 + $0x6d8] sm:$0xf0] }
 0x20e   : > { %v3997_v27 = vor.u32 %v4739_v19, %v3996_v17  ;;  %v4767_v17 = vld [vmem:[%s5074_s23 + $0x6d4] sm:$0xf0] }
 0x210   : > { %v1625_v22 = vpop.f32.mrf.mxu1  ;;  %v1817_v23 = vpop.f32.mrf.mxu0 }
 0x211   : > { %v5700_v25 = vadd.f32 %v1625_v22, %v1612_v18  ;;  %v1818_v26 = vadd.f32 %v1817_v23, %v1680_v0  ;;  %v4848_v0 = vld [vmem:[%s5074_s23 + $0x964] sm:$0xf]  ;;  %v4425_v18 = vor.u32 %v4844_v13, %v4422_v14  ;;  %v4342_v14 = vld [vmem:[%s5074_s23 + $0x8b0] sm:$0xf0] }
 0x212   : > { %v4441_v8 = vor.u32 %v4848_v0, %v4438_v2  ;;  %v4358_v0 = vld [vmem:[%s5074_s23 + $0x8d0] sm:$0xf0]  ;;  %v4824_v13 = vld [vmem:[%s5074_s23 + $0x8a4] sm:$0xf] }
 0x213   : > { %vm1866_vm7 = vcmp.ge.f32.partialorder %v1818_v26, 0.0  ;;  %v1874_v35 = vmul.f32 0.01, %v1818_v26 }
 0x214   : > { %2760 = vmatpush.bf16.msra.mxu3 %v4441_v8  ;;  %v4771_v8 = vld [vmem:[%s5074_s23 + $0x6f4] sm:$0xf0] }
 0x215   : > { %v1882_v42 = vsel %vm1866_vm7, %v1818_v26, %v1874_v35  ;;  %v4783_v35 = vld [vmem:[%s5074_s23 + $0x754] sm:$0xf0] }
 0x216   : > { %v5709_v47 = vpack.c.bf16 %v1882_v42, %v1878_v34  ;;  %v4172_v34 = vld [vmem:[%s5074_s23 + $0x748] sm:$0xf] }
 0x217   : > { %v4173_v49 = vor.u32 %v4783_v35, %v4172_v34  ;;  %v4092_v34 = vld [vmem:[%s5074_s23 + $0x6a8] sm:$0xf] }
 0x218   : > { %v1829_v56 = vpop.f32.mrf.mxu1  ;;  %2670 = vmatmul.bf16.vlgmr.msrb.gmra.mxu0 %v5709_v47  ;;  %2761 = vmatpush.bf16.msra.mxu3 %v4425_v18 }
 0x219   : > { %2774 = vmatpush.bf16.msrb.mxu0 %v4061_v44  ;;  %v1830_v61 = vadd.f32 %v1829_v56, %v1681_v53  ;;  %v4836_v44 = vld [vmem:[%s5074_s23 + $0x904] sm:$0xf]  ;;  %v3965_v56 = vor.u32 %v4731_v51, %v3964_v50 }
 0x21b   : > { %v1871_v9 = vmul.f32 0.01, %v1830_v61  ;;  %vm1863_vm8 = vcmp.ge.f32.partialorder %v1830_v61, 0.0 }
 0x21c   : > { %2762 = vmatpush.bf16.msra.mxu3 %v4409_v40 }
 0x21d   : > { %2775 = vmatpush.bf16.msrb.mxu0 %v4045_v57  ;;  %v1879_v22 = vsel %vm1863_vm8, %v1830_v61, %v1871_v9  ;;  %v3948_v57 = vld [vmem:[%s5074_s23 + $0x588] sm:$0xf]  ;;  %v4361_v9 = vor.u32 %v4828_v63, %v4358_v0  ;;  %v4733_v0 = vld [vmem:[%s5074_s23 + $0x5cc] sm:$0xf] }
 0x21e   : > { %v1637_v10 = vpop.f32.mrf.mxu2 }
 0x21f   : > { %v5729_v11 = vadd.f32 %v1637_v10, %v5690_v7  ;;  %v4787_v7 = vld [vmem:[%s5074_s23 + $0x774] sm:$0xf0]  ;;  %v4749_v10 = vld [vmem:[%s5074_s23 + $0x64c] sm:$0xf] }
 0x220   : > { %v1831_v12 = vpop.f32.mrf.mxu1  ;;  %v4189_v30 = vor.u32 %v4787_v7, %v4188_v21  ;;  %v4745_v21 = vld [vmem:[%s5074_s23 + $0x62c] sm:$0xf]  ;;  %v4030_v7 = vld [vmem:[%s5074_s23 + $0x638] sm:$0xf0] }
 0x221   : > { %v1832_v15 = vadd.f32 %v1831_v12, %v1681_v53  ;;  %2776 = vmatpush.bf16.msrb.mxu0 %v4029_v1  ;;  %v4393_v53 = vor.u32 %v4836_v44, %v4390_v45  ;;  %v3949_v1 = vor.u32 %v4727_v58, %v3948_v57  ;;  %v4046_v12 = vld [vmem:[%s5074_s23 + $0x658] sm:$0xf0]  ;;  %v4737_v57 = vld [vmem:[%s5074_s23 + $0x5ec] sm:$0xf] }
 0x222   : > { %v4049_v19 = vor.u32 %v4749_v10, %v4046_v12  ;;  %v4785_v58 = vld [vmem:[%s5074_s23 + $0x76c] sm:$0xf]  ;;  %v4807_v10 = vld [vmem:[%s5074_s23 + $0x814] sm:$0xf0] }
 0x223   : > { %vm1867_vm9 = vcmp.ge.f32.partialorder %v1832_v15, 0.0  ;;  %v1875_v23 = vmul.f32 0.01, %v1832_v15  ;;  %2763 = vmatpush.bf16.msra.mxu3 %v4393_v53  ;;  %v4193_v63 = vor.u32 %v4785_v58, %v4190_v59  ;;  %v4851_v58 = vld [vmem:[%s5074_s23 + $0x974] sm:$0xf0] }
 0x224   : > { %v4817_v59 = vld [vmem:[%s5074_s23 + $0x86c] sm:$0xf] }
 0x225   : > { %v1883_v26 = vsel %vm1867_vm9, %v1832_v15, %v1875_v23  ;;  %2777 = vmatpush.bf16.msrb.mxu0 %v4013_v16  ;;  %v4125_v15 = vor.u32 %v4771_v8, %v4124_v6  ;;  %v4108_v16 = vld [vmem:[%s5074_s23 + $0x6c8] sm:$0xf] }
 0x226   : > { %v5740_v32 = vpack.c.bf16 %v1883_v26, %v1879_v22  ;;  %v1639_v41 = vpop.f32.mrf.mxu2  ;;  %v4345_v22 = vor.u32 %v4824_v13, %v4342_v14  ;;  %v4326_v26 = vld [vmem:[%s5074_s23 + $0x890] sm:$0xf0]  ;;  %v4729_v14 = vld [vmem:[%s5074_s23 + $0x5ac] sm:$0xf] }
 0x227   : > { %v5746_v42 = vadd.f32 %v1639_v41, %v5700_v25  ;;  %v4779_v25 = vld [vmem:[%s5074_s23 + $0x734] sm:$0xf0]  ;;  %2764 = vmatpush.bf16.msra.mxu3 %v4377_v60  ;;  %v4329_v44 = vor.u32 %v4820_v24, %v4326_v26  ;;  %v4773_v24 = vld [vmem:[%s5074_s23 + $0x70c] sm:$0xf]  ;;  %v4142_v26 = vld [vmem:[%s5074_s23 + $0x718] sm:$0xf0] }
 0x228   : > { %2684 = vmatmul.bf16.vlgmr.msrb.gmra.mxu1 %v5740_v32  ;;  %2726 = vmatmul.bf16.vlgmr.msra.gmra.mxu0 %v5709_v47  ;;  %v4157_v5 = vor.u32 %v4779_v25, %v4156_v52  ;;  %v4763_v41 = vld [vmem:[%s5074_s23 + $0x6b4] sm:$0xf0]  ;;  %v4317_v52 = vor.u32 %v4819_v33, %v4316_v31  ;;  %v4236_v31 = vld [vmem:[%s5074_s23 + $0x7c8] sm:$0xf] }
 0x229   : > { %2778 = vmatpush.bf16.msrb.mxu0 %v3997_v27  ;;  %2788 = vmatpush.bf16.msrb.mxu1 %v4189_v30  ;;  %v4109_v27 = vor.u32 %v4767_v17, %v4108_v16  ;;  %v4033_v30 = vor.u32 %v4745_v21, %v4030_v7  ;;  %v4093_v53 = vor.u32 %v4763_v41, %v4092_v34  ;;  %v4777_v16 = vld [vmem:[%s5074_s23 + $0x72c] sm:$0xf]  ;;  %v4799_v33 = vld [vmem:[%s5074_s23 + $0x7d4] sm:$0xf0]  ;;  %v4126_v41 = vld [vmem:[%s5074_s23 + $0x6f8] sm:$0xf0] }
 0x22b   : > { %2765 = vmatpush.bf16.msra.mxu3 %v4361_v9  ;;  %v4268_v9 = vld [vmem:[%s5074_s23 + $0x808] sm:$0xf] }
 0x22c   : > { %v4269_v17 = vor.u32 %v4807_v10, %v4268_v9  ;;  %v4813_v10 = vld [vmem:[%s5074_s23 + $0x84c] sm:$0xf] }
 0x22d   : > { %2779 = vmatpush.bf16.msrb.mxu0 %v3981_v46  ;;  %2789 = vmatpush.bf16.msrb.mxu1 %v4173_v49  ;;  %v4741_v46 = vld [vmem:[%s5074_s23 + $0x60c] sm:$0xf]  ;;  %v4014_v49 = vld [vmem:[%s5074_s23 + $0x618] sm:$0xf0] }
 0x22e   : > { %v1843_v61 = vpop.f32.mrf.mxu2 }
 0x22f   : > { %v1844_v2 = vadd.f32 %v1843_v61, %v1682_v4  ;;  %2766 = vmatpush.bf16.msra.mxu3 %v4345_v22  ;;  %v4284_v61 = vld [vmem:[%s5074_s23 + $0x828] sm:$0xf]  ;;  %v4725_v22 = vld [vmem:[%s5074_s23 + $0x58c] sm:$0xf] }
 0x230   : > { %v4285_v8 = vor.u32 %v4811_v39, %v4284_v61  ;;  %v4318_v61 = vld [vmem:[%s5074_s23 + $0x878] sm:$0xf0]  ;;  %v4761_v39 = vld [vmem:[%s5074_s23 + $0x6ac] sm:$0xf] }
 0x231   : > { %2780 = vmatpush.bf16.msrb.mxu0 %v3965_v56  ;;  %2790 = vmatpush.bf16.msrb.mxu1 %v4157_v5  ;;  %v1872_v18 = vmul.f32 0.01, %v1844_v2  ;;  %vm1864_vm10 = vcmp.ge.f32.partialorder %v1844_v2, 0.0  ;;  %v4076_v56 = vld [vmem:[%s5074_s23 + $0x688] sm:$0xf] }
 0x232   : > { %v4759_v5 = vld [vmem:[%s5074_s23 + $0x694] sm:$0xf0] }
 0x233   : > { %v1880_v35 = vsel %vm1864_vm10, %v1844_v2, %v1872_v18  ;;  %2767 = vmatpush.bf16.msra.mxu3 %v4329_v44  ;;  %v4077_v60 = vor.u32 %v4759_v5, %v4076_v56  ;;  %v4781_v2 = vld [vmem:[%s5074_s23 + $0x74c] sm:$0xf]  ;;  %v4252_v18 = vld [vmem:[%s5074_s23 + $0x7e8] sm:$0xf] }
 0x235   : > { %2781 = vmatpush.bf16.msrb.mxu0 %v3949_v1  ;;  %2791 = vmatpush.bf16.msrb.mxu1 %v4141_v38  ;;  %v3982_v38 = vld [vmem:[%s5074_s23 + $0x5d8] sm:$0xf0] }
 0x236   : > { %v1845_v23 = vpop.f32.mrf.mxu2  ;;  %v3985_v12 = vor.u32 %v4733_v0, %v3982_v38 }
 0x237   : > { %v1846_v48 = vadd.f32 %v1845_v23, %v1682_v4  ;;  %v4017_v4 = vor.u32 %v4741_v46, %v4014_v49  ;;  %v4220_v46 = vld [vmem:[%s5074_s23 + $0x7a8] sm:$0xf]  ;;  %v4795_v49 = vld [vmem:[%s5074_s23 + $0x7b4] sm:$0xf0] }
 0x238   : > { %2740 = vmatmul.bf16.vlgmr.msra.gmra.mxu1 %v5740_v32  ;;  %2782 = vmatmul.bf16.vlgmr.msrb.gmra.mxu0 %v5709_v47  ;;  %v4221_v5 = vor.u32 %v4795_v49, %v4220_v46  ;;  %v4797_v46 = vld [vmem:[%s5074_s23 + $0x7cc] sm:$0xf]  ;;  %v4238_v49 = vld [vmem:[%s5074_s23 + $0x7d8] sm:$0xf0] }
 0x239   : > { %2830 = vmatpush.bf16.msra.mxu0 %v4065_v3  ;;  %2792 = vmatpush.bf16.msrb.mxu1 %v4125_v15  ;;  %vm1868_vm11 = vcmp.ge.f32.partialorder %v1846_v48, 0.0  ;;  %v1876_v40 = vmul.f32 0.01, %v1846_v48  ;;  %v4174_v3 = vld [vmem:[%s5074_s23 + $0x758] sm:$0xf0] }
 0x23a   : > { %v4177_v13 = vor.u32 %v4781_v2, %v4174_v3  ;;  %v3966_v15 = vld [vmem:[%s5074_s23 + $0x5b8] sm:$0xf0]  ;;  %v4321_v2 = vor.u32 %v4817_v59, %v4318_v61  ;;  %v4428_v3 = vld [vmem:[%s5074_s23 + $0x948] sm:$0xf]  ;;  %v4849_v59 = vld [vmem:[%s5074_s23 + $0x96c] sm:$0xf] }
 0x23b   : > { %v1884_v50 = vsel %vm1868_vm11, %v1846_v48, %v1876_v40  ;;  %v3969_v21 = vor.u32 %v4729_v14, %v3966_v15  ;;  %v3950_v48 = vld [vmem:[%s5074_s23 + $0x598] sm:$0xf0]  ;;  %v4769_v40 = vld [vmem:[%s5074_s23 + $0x6ec] sm:$0xf] }
 0x23c   : > { %v5790_v25 = vpack.c.bf16 %v1884_v50, %v1880_v35  ;;  %v3953_v34 = vor.u32 %v4725_v22, %v3950_v48  ;;  %v4145_v35 = vor.u32 %v4773_v24, %v4142_v26  ;;  %v4129_v50 = vor.u32 %v4769_v40, %v4126_v41  ;;  %v4078_v14 = vld [vmem:[%s5074_s23 + $0x698] sm:$0xf0]  ;;  %v4839_v48 = vld [vmem:[%s5074_s23 + $0x914] sm:$0xf0]  ;;  %v4805_v24 = vld [vmem:[%s5074_s23 + $0x80c] sm:$0xf] }
 0x23d   : > { %2831 = vmatpush.bf16.msra.mxu0 %v4049_v19  ;;  %2793 = vmatpush.bf16.msrb.mxu1 %v4109_v27  ;;  %v4803_v19 = vld [vmem:[%s5074_s23 + $0x7f4] sm:$0xf0]  ;;  %v1683_v27 = vperm.slane %v5332_v37, 1  ;;  %v4270_v26 = vld [vmem:[%s5074_s23 + $0x818] sm:$0xf0] }
 0x23e   : > { %v1651_v45 = vpop.f32.mrf.mxu3  ;;  %2698 = vmatmul.bf16.vlgmr.msrb.gmra.mxu2 %v5790_v25 }
 0x23f   : > { %v5788_v51 = vadd.f32 %v1651_v45, %v5729_v11  ;;  %v3998_v11 = vld [vmem:[%s5074_s23 + $0x5f8] sm:$0xf0]  ;;  %2802 = vmatpush.bf16.msrb.mxu2 %v4317_v52  ;;  %v4237_v45 = vor.u32 %v4799_v33, %v4236_v31  ;;  %v4380_v31 = vld [vmem:[%s5074_s23 + $0x8e8] sm:$0xf]  ;;  %v4835_v33 = vld [vmem:[%s5074_s23 + $0x8f4] sm:$0xf0] }
 0x240   : > { %v4001_v62 = vor.u32 %v4737_v57, %v3998_v11  ;;  %v4791_v57 = vld [vmem:[%s5074_s23 + $0x794] sm:$0xf0]  ;;  %v4444_v11 = vld [vmem:[%s5074_s23 + $0x968] sm:$0xf]  ;;  %v4381_v40 = vor.u32 %v4835_v33, %v4380_v31 }
 0x241   : > { %2832 = vmatpush.bf16.msra.mxu0 %v4033_v30  ;;  %2794 = vmatpush.bf16.msrb.mxu1 %v4093_v53  ;;  %v4253_v30 = vor.u32 %v4803_v19, %v4252_v18  ;;  %v4765_v53 = vld [vmem:[%s5074_s23 + $0x6cc] sm:$0xf]  ;;  %4916 = vtanh.f32 %v5788_v51  ;;  %v4924_v51 = vld [vmem:[%s5995_s2] sm:$0xff] }
 0x242   : > { %v4809_v19 = vld [vmem:[%s5074_s23 + $0x82c] sm:$0xf] }
 0x243   : > { %2803 = vmatpush.bf16.msrb.mxu2 %v4301_v20 }
 0x245   : > { %2833 = vmatpush.bf16.msra.mxu0 %v4017_v4  ;;  %2795 = vmatpush.bf16.msrb.mxu1 %v4077_v60  ;;  %v4113_v60 = vor.u32 %v4765_v53, %v4110_v54  ;;  %v4827_v53 = vld [vmem:[%s5074_s23 + $0x8b4] sm:$0xf0]  ;;  %v4793_v54 = vld [vmem:[%s5074_s23 + $0x7ac] sm:$0xf] }
 0x246   : > { %v1653_v1 = vpop.f32.mrf.mxu3 }
 0x247   : > { %v5808_v6 = vadd.f32 %v1653_v1, %v5746_v42  ;;  %v4158_v42 = vld [vmem:[%s5074_s23 + $0x738] sm:$0xf0]  ;;  %2804 = vmatpush.bf16.msrb.mxu2 %v4285_v8  ;;  %v4205_v1 = vor.u32 %v4791_v57, %v4204_v55  ;;  %v4847_v8 = vld [vmem:[%s5074_s23 + $0x954] sm:$0xf0] }
 0x248   : > { %2796 = vmatmul.bf16.vlgmr.msrb.gmra.mxu1 %v5740_v32  ;;  %v4161_v7 = vor.u32 %v4777_v16, %v4158_v42  ;;  %v4429_v15 = vor.u32 %v4847_v8, %v4428_v3  ;;  %v4412_v42 = vld [vmem:[%s5074_s23 + $0x928] sm:$0xf]  ;;  %v4222_v55 = vld [vmem:[%s5074_s23 + $0x7b8] sm:$0xf0]  ;;  %v4823_v57 = vld [vmem:[%s5074_s23 + $0x894] sm:$0xf0] }
 0x249   : > { %2834 = vmatpush.bf16.msra.mxu0 %v4001_v62  ;;  %2844 = vmatpush.bf16.msra.mxu1 %v4193_v63  ;;  %v4094_v62 = vld [vmem:[%s5074_s23 + $0x6b8] sm:$0xf0]  ;;  %v4837_v3 = vld [vmem:[%s5074_s23 + $0x90c] sm:$0xf]  ;;  %4918 = vtanh.f32 %v5808_v6  ;;  %v4925_v6 = vld [vmem:[%s5995_s2 + $0x10] sm:$0xff] }
 0x24a   : > { %v4097_v9 = vor.u32 %v4761_v39, %v4094_v62  ;;  %v4845_v62 = vld [vmem:[%s5074_s23 + $0x94c] sm:$0xf]  ;;  %v4398_v8 = vld [vmem:[%s5074_s23 + $0x918] sm:$0xf0] }
 0x24b   : > { %2805 = vmatpush.bf16.msrb.mxu2 %v4269_v17  ;;  %v4843_v17 = vld [vmem:[%s5074_s23 + $0x934] sm:$0xf0] }
 0x24d   : > { %2835 = vmatpush.bf16.msra.mxu0 %v3985_v12  ;;  %2845 = vmatpush.bf16.msra.mxu1 %v4177_v13  ;;  %v4302_v12 = vld [vmem:[%s5074_s23 + $0x858] sm:$0xf0]  ;;  %v4757_v13 = vld [vmem:[%s5074_s23 + $0x68c] sm:$0xf] }
 0x24e   : > { %v1857_v23 = vpop.f32.mrf.mxu3  ;;  %2754 = vmatmul.bf16.vlgmr.msra.gmra.mxu2 %v5790_v25  ;;  %v4305_v16 = vor.u32 %v4813_v10, %v4302_v12  ;;  %v4081_v18 = vor.u32 %v4757_v13, %v4078_v14  ;;  %v4833_v10 = vld [vmem:[%s5074_s23 + $0x8ec] sm:$0xf]  ;;  %v4382_v12 = vld [vmem:[%s5074_s23 + $0x8f8] sm:$0xf0] }
 0x24f   : > { %v1858_v44 = vadd.f32 %v1857_v23, %v1683_v27  ;;  %2806 = vmatpush.bf16.msrb.mxu2 %v4253_v30  ;;  %v4396_v23 = vld [vmem:[%s5074_s23 + $0x908] sm:$0xf]  ;;  %v4273_v30 = vor.u32 %v4805_v24, %v4270_v26  ;;  %v4385_v13 = vor.u32 %v4833_v10, %v4382_v12  ;;  %v4829_v14 = vld [vmem:[%s5074_s23 + $0x8cc] sm:$0xf]  ;;  %v4870_v24 = vld [vmem:[%s5074_s23 + $0xacc] sm:$0xf0] }
 0x250   : > { %v4852_v10 = vld [vmem:[%s5074_s23 + $0xa44] sm:$0xf]  ;;  %v4454_v12 = vld [vmem:[%s5074_s23 + $0xa50] sm:$0xf0] }
 0x251   : > { %2836 = vmatpush.bf16.msra.mxu0 %v3969_v21  ;;  %2846 = vmatpush.bf16.msra.mxu1 %v4161_v7  ;;  %v1873_v4 = vmul.f32 0.01, %v1858_v44  ;;  %vm1865_vm12 = vcmp.ge.f32.partialorder %v1858_v44, 0.0  ;;  %v4286_v21 = vld [vmem:[%s5074_s23 + $0x838] sm:$0xf0]  ;;  %v4413_v7 = vor.u32 %v4843_v17, %v4412_v42 }
 0x252   : > { %v4289_v22 = vor.u32 %v4809_v19, %v4286_v21  ;;  %v4350_v42 = vld [vmem:[%s5074_s23 + $0x8b8] sm:$0xf0] }
 0x253   : > { %2807 = vmatpush.bf16.msrb.mxu2 %v4237_v45  ;;  %v1881_v63 = vsel %vm1865_vm12, %v1858_v44, %v1873_v4  ;;  %v4364_v44 = vld [vmem:[%s5074_s23 + $0x8c8] sm:$0xf]  ;;  %v4831_v45 = vld [vmem:[%s5074_s23 + $0x8d4] sm:$0xf0]  ;;  %v4334_v19 = vld [vmem:[%s5074_s23 + $0x898] sm:$0xf0] }
 0x255   : > { %2837 = vmatpush.bf16.msra.mxu0 %v3953_v34  ;;  %2847 = vmatpush.bf16.msra.mxu1 %v4145_v35  ;;  %v4801_v34 = vld [vmem:[%s5074_s23 + $0x7ec] sm:$0xf]  ;;  %v4254_v35 = vld [vmem:[%s5074_s23 + $0x7f8] sm:$0xf0] }
 0x256   : > { %v1859_v52 = vpop.f32.mrf.mxu3  ;;  %v4257_v41 = vor.u32 %v4801_v34, %v4254_v35  ;;  %v4862_v35 = vld [vmem:[%s5074_s23 + $0xa8c] sm:$0xf0] }
 0x257   : > { %v1860_v56 = vadd.f32 %v1859_v52, %v1683_v27  ;;  %2808 = vmatpush.bf16.msrb.mxu2 %v4221_v5  ;;  %v4397_v27 = vor.u32 %v4839_v48, %v4396_v23  ;;  %v4348_v52 = vld [vmem:[%s5074_s23 + $0x8a8] sm:$0xf]  ;;  %v4516_v48 = vld [vmem:[%s5074_s23 + $0xac0] sm:$0xf] }
 0x258   : > { %2838 = vmatmul.bf16.vlgmr.msra.gmra.mxu0 %v5709_v47  ;;  %v4445_v47 = vor.u32 %v4851_v58, %v4444_v11  ;;  %v4349_v4 = vor.u32 %v4827_v53, %v4348_v52  ;;  %v4332_v5 = vld [vmem:[%s5074_s23 + $0x888] sm:$0xf]  ;;  %v4789_v11 = vld [vmem:[%s5074_s23 + $0x78c] sm:$0xf]  ;;  %v4206_v58 = vld [vmem:[%s5074_s23 + $0x798] sm:$0xf0]  ;;  %v4517_v26 = vor.u32 %v4870_v24, %v4516_v48 }
 0x259   : > { %vm1869_vm13 = vcmp.ge.f32.partialorder %v1860_v56, 0.0  ;;  %v1877_v20 = vmul.f32 0.01, %v1860_v56  ;;  %2848 = vmatpush.bf16.msra.mxu1 %v4129_v50  ;;  %v4241_v50 = vor.u32 %v4797_v46, %v4238_v49  ;;  %v4209_v61 = vor.u32 %v4789_v11, %v4206_v58  ;;  %v2935_v46 = vld [vmem:[%s5074_s23 + $0xae8] sm:$0xff]  ;;  %v4864_v52 = vld [vmem:[%s5074_s23 + $0xaa4] sm:$0xf] }
 0x25a   : > { %v3001_v49 = vunpack.c.l.b16 %v2935_v46  ;;  %v4486_v58 = vld [vmem:[%s5074_s23 + $0xa90] sm:$0xf0]  ;;  %v4859_v48 = vld [vmem:[%s5074_s23 + $0xa74] sm:$0xf0] }
 0x25b   : > { %v1885_v0 = vsel %vm1869_vm13, %v1860_v56, %v1877_v20  ;;  %2809 = vmatpush.bf16.msrb.mxu2 %v4205_v1  ;;  %v4225_v56 = vor.u32 %v4793_v54, %v4222_v55  ;;  %v4446_v20 = vld [vmem:[%s5074_s23 + $0x978] sm:$0xf0]  ;;  %v4841_v1 = vld [vmem:[%s5074_s23 + $0x92c] sm:$0xf]  ;;  %v4502_v54 = vld [vmem:[%s5074_s23 + $0xab0] sm:$0xf0] }
 0x25c   : > { %v5842_v38 = vpack.c.bf16 %v1885_v0, %v1881_v63  ;;  %v4449_v39 = vor.u32 %v4849_v59, %v4446_v20  ;;  %v4430_v63 = vld [vmem:[%s5074_s23 + $0x958] sm:$0xf0]  ;;  %v3025_v55 = vpack.c.b16 %v3001_v49, %v3001_v49  ;;  %v4524_v59 = vld [vmem:[%s5074_s23 + $0xac8] sm:$0xf]  ;;  %v4871_v20 = vld [vmem:[%s5074_s23 + $0xad4] sm:$0xf0] }
 0x25d   : > { %2849 = vmatpush.bf16.msra.mxu1 %v4113_v60  ;;  %v4333_v60 = vor.u32 %v4823_v57, %v4332_v5  ;;  %v4433_v0 = vor.u32 %v4845_v62, %v4430_v63  ;;  %v4854_v5 = vld [vmem:[%s5074_s23 + $0xa4c] sm:$0xf0]  ;;  %v4860_v57 = vld [vmem:[%s5074_s23 + $0xa84] sm:$0xf]  ;;  %v4470_v63 = vld [vmem:[%s5074_s23 + $0xa70] sm:$0xf0] }
 0x25e   : > { %2712 = vmatmul.bf16.vlgmr.msrb.gmra.mxu3 %v5842_v38  ;;  %2810 = vmatmul.bf16.vlgmr.msrb.gmra.mxu2 %v5790_v25  ;;  %v4856_v62 = vld [vmem:[%s5074_s23 + $0xa64] sm:$0xf]  ;;  %v4855_v49 = vld [vmem:[%s5074_s23 + $0xa54] sm:$0xf0] }
 0x25f   : > { %2816 = vmatpush.bf16.msrb.mxu3 %v4445_v47  ;;  %2858 = vmatpush.bf16.msra.mxu2 %v4321_v2  ;;  %v4414_v47 = vld [vmem:[%s5074_s23 + $0x938] sm:$0xf0] }
 0x260   : > { %v4417_v2 = vor.u32 %v4841_v1, %v4414_v47  ;;  %v4473_v47 = vor.u32 %v4856_v62, %v4470_v63  ;;  %v4494_v62 = vld [vmem:[%s5074_s23 + $0xa98] sm:$0xf0] }
 0x261   : > { %2850 = vmatpush.bf16.msra.mxu1 %v4097_v9  ;;  %v4401_v9 = vor.u32 %v4837_v3, %v4398_v8 }
 0x263   : > { %2817 = vmatpush.bf16.msrb.mxu3 %v4429_v15  ;;  %2859 = vmatpush.bf16.msra.mxu2 %v4305_v16  ;;  %v4366_v15 = vld [vmem:[%s5074_s23 + $0x8d8] sm:$0xf0] }
 0x264   : > { %v4369_v16 = vor.u32 %v4829_v14, %v4366_v15  ;;  %v4457_v15 = vor.u32 %v4852_v10, %v4454_v12  ;;  %v2020_v12 = vperm.slane %v5330_v36, 3 }
 0x265   : > { %2851 = vmatpush.bf16.msra.mxu1 %v4081_v18  ;;  %v4821_v18 = vld [vmem:[%s5074_s23 + $0x88c] sm:$0xf] }
 0x266   : > { %v4337_v21 = vor.u32 %v4821_v18, %v4334_v19 }
 0x267   : > { %2818 = vmatpush.bf16.msrb.mxu3 %v4413_v7  ;;  %2860 = vmatpush.bf16.msra.mxu2 %v4289_v22  ;;  %v2934_v7 = vld [vmem:[%s5074_s23 + $0xae0] sm:$0xff] }
 0x268   : > { %2852 = vmatmul.bf16.vlgmr.msra.gmra.mxu1 %v5740_v32  ;;  %v4365_v32 = vor.u32 %v4831_v45, %v4364_v44  ;;  %v2999_v22 = vunpack.c.l.b16 %v2934_v7  ;;  %v3000_v31 = vunpack.c.h.b16 %v2934_v7  ;;  %v4518_v44 = vld [vmem:[%s5074_s23 + $0xad0] sm:$0xf0] }
 0x26a   : > { %v3023_v23 = vpack.c.b16 %v2999_v22, %v2999_v22  ;;  %v3024_v34 = vpack.c.b16 %v3000_v31, %v3000_v31 }
 0x26b   : > { %2819 = vmatpush.bf16.msrb.mxu3 %v4397_v27  ;;  %2861 = vmatpush.bf16.msra.mxu2 %v4273_v30  ;;  %v4500_v27 = vld [vmem:[%s5074_s23 + $0xaa0] sm:$0xf]  ;;  %v4866_v30 = vld [vmem:[%s5074_s23 + $0xaac] sm:$0xf0] }
 0x26c   : > { %3053 = vmatpush.bf16.xpose.msrb.mxu0 %v3023_v23  ;;  %v4501_v33 = vor.u32 %v4866_v30, %v4500_v27  ;;  %3067 = vmatpush.bf16.xpose.msrb.mxu1 %v3024_v34  ;;  %v4476_v23 = vld [vmem:[%s5074_s23 + $0xa68] sm:$0xf] }
 0x26e   : > { %2768 = vmatmul.bf16.vlgmr.msra.gmra.mxu3 %v5842_v38 }
 0x26f   : > { %2820 = vmatpush.bf16.msrb.mxu3 %v4381_v40  ;;  %2862 = vmatpush.bf16.msra.mxu2 %v4257_v41  ;;  %v4868_v40 = vld [vmem:[%s5074_s23 + $0xac4] sm:$0xf] }
 0x270   : > { %v4521_v45 = vor.u32 %v4868_v40, %v4518_v44  ;;  %v2019_v44 = vperm.slane %v5323_v28, 3 }
 0x273   : > { %2821 = vmatpush.bf16.msrb.mxu3 %v4365_v32  ;;  %2863 = vmatpush.bf16.msra.mxu2 %v4241_v50  ;;  %v4468_v32 = vld [vmem:[%s5074_s23 + $0xa60] sm:$0xf]  ;;  %v4858_v50 = vld [vmem:[%s5074_s23 + $0xa6c] sm:$0xf0] }
 0x274   : > { %3054 = vmatpush.bf16.xpose.msrb.mxu0 %v4517_v26  ;;  %3068 = vmatpush.bf16.xpose.msrb.mxu1 %v4521_v45  ;;  %v4469_v53 = vor.u32 %v4858_v50, %v4468_v32  ;;  %v4477_v26 = vor.u32 %v4859_v48, %v4476_v23 }
 0x277   : > { %2822 = vmatpush.bf16.msrb.mxu3 %v4349_v4  ;;  %2864 = vmatpush.bf16.msra.mxu2 %v4225_v56  ;;  %v4505_v4 = vor.u32 %v4864_v52, %v4502_v54  ;;  %v4452_v56 = vld [vmem:[%s5074_s23 + $0xa40] sm:$0xf] }
 0x278   : > { %v4453_v11 = vor.u32 %v4854_v5, %v4452_v56  ;;  %v4510_v5 = vld [vmem:[%s5074_s23 + $0xab8] sm:$0xf0] }
 0x27b   : > { %2823 = vmatpush.bf16.msrb.mxu3 %v4333_v60  ;;  %2865 = vmatpush.bf16.msra.mxu2 %v4209_v61  ;;  %v4489_v60 = vor.u32 %v4860_v57, %v4486_v58  ;;  %v4525_v61 = vor.u32 %v4871_v20, %v4524_v59 }
 0x27c   : > { %3055 = vmatpush.bf16.xpose.msrb.mxu0 %v4501_v33  ;;  %3069 = vmatpush.bf16.xpose.msrb.mxu1 %v4505_v4  ;;  %v4869_v33 = vld [vmem:[%s5074_s23 + $0xacc] sm:$0xf] }
 0x27d   : > { %v4865_v4 = vld [vmem:[%s5074_s23 + $0xaac] sm:$0xf] }
 0x27e   : > { %2824 = vmatmul.bf16.vlgmr.msrb.gmra.mxu3 %v5842_v38  ;;  %2866 = vmatmul.bf16.vlgmr.msra.gmra.mxu2 %v5790_v25  ;;  %v4825_v25 = vld [vmem:[%s5074_s23 + $0x8ac] sm:$0xf] }
 0x27f   : > { %2872 = vmatpush.bf16.msra.mxu3 %v4449_v39  ;;  %v4353_v17 = vor.u32 %v4825_v25, %v4350_v42  ;;  %3081 = vmatpush.bf16.xpose.msrb.mxu2 %v3025_v55 }
 0x283   : > { %2873 = vmatpush.bf16.msra.mxu3 %v4433_v0  ;;  %v4508_v0 = vld [vmem:[%s5074_s23 + $0xaa8] sm:$0xf] }
 0x284   : > { %3070 = vmatpush.bf16.xpose.msrb.mxu1 %v4489_v60 }
 0x287   : > { %2874 = vmatpush.bf16.msra.mxu3 %v4417_v2  ;;  %3082 = vmatpush.bf16.xpose.msrb.mxu2 %v4525_v61  ;;  %v4867_v2 = vld [vmem:[%s5074_s23 + $0xab4] sm:$0xf0] }
 0x288   : > { %v4509_v3 = vor.u32 %v4867_v2, %v4508_v0 }
 0x28b   : > { %2875 = vmatpush.bf16.msra.mxu3 %v4401_v9  ;;  %v2018_v9 = vperm.slane %v5325_v29, 3 }
 0x28c   : > { %3071 = vmatpush.bf16.xpose.msrb.mxu1 %v4473_v47 }
 0x28f   : > { %2876 = vmatpush.bf16.msra.mxu3 %v4385_v13  ;;  %3083 = vmatpush.bf16.xpose.msrb.mxu2 %v4509_v3  ;;  %v4492_v13 = vld [vmem:[%s5074_s23 + $0xa88] sm:$0xf] }
 0x293   : > { %2877 = vmatpush.bf16.msra.mxu3 %v4369_v16  ;;  %v4863_v16 = vld [vmem:[%s5074_s23 + $0xa94] sm:$0xf0] }
 0x294   : > { %v4493_v25 = vor.u32 %v4863_v16, %v4492_v13  ;;  %3072 = vmatpush.bf16.xpose.msrb.mxu1 %v4457_v15 }
 0x295   : > { %v2671_v39 = vpop.f32.mrf.mxu0 }
 0x296   : > { %v2672_v18 = vadd.f32 %v2671_v39, %v2018_v9  ;;  %v4861_v39 = vld [vmem:[%s5074_s23 + $0xa8c] sm:$0xf] }
 0x297   : > { %2878 = vmatpush.bf16.msra.mxu3 %v4353_v17  ;;  %v3002_v17 = vunpack.c.h.b16 %v2935_v46  ;;  %3084 = vmatpush.bf16.xpose.msrb.mxu2 %v4493_v25  ;;  %v4460_v46 = vld [vmem:[%s5074_s23 + $0xa48] sm:$0xf]  ;;  %v4857_v25 = vld [vmem:[%s5074_s23 + $0xa6c] sm:$0xf] }
 0x298   : > { %v4461_v50 = vor.u32 %v4855_v49, %v4460_v46 }
 0x29b   : > { %2879 = vmatpush.bf16.msra.mxu3 %v4337_v21  ;;  %v3026_v21 = vpack.c.b16 %v3002_v17, %v3002_v17 }
 0x29d   : > { %v2673_v14 = vpop.f32.mrf.mxu0 }
 0x29e   : > { %2880 = vmatmul.bf16.vlgmr.msra.gmra.mxu3 %v5842_v38  ;;  %v4484_v38 = vld [vmem:[%s5074_s23 + $0xa80] sm:$0xf]  ;;  %v2674_v22 = vadd.f32 %v2673_v14, %v2018_v9 }
 0x29f   : > { %v4485_v41 = vor.u32 %v4862_v35, %v4484_v38  ;;  %3095 = vmatpush.bf16.xpose.msrb.mxu3 %v3026_v21  ;;  %3085 = vmatpush.bf16.xpose.msrb.mxu2 %v4477_v26  ;;  %v4526_v38 = vld [vmem:[%s5074_s23 + $0xad8] sm:$0xf0] }
 0x2a0   : > { %v4529_v40 = vor.u32 %v4869_v33, %v4526_v38 }
 0x2a1   : > { %3056 = vmatpush.bf16.xpose.msrb.mxu0 %v4485_v41 }
 0x2a5   : > { %v2685_v1 = vpop.f32.mrf.mxu1  ;;  %v2727_v27 = vpop.f32.mrf.mxu0 }
 0x2a6   : > { %v2686_v7 = vadd.f32 %v2685_v1, %v2672_v18  ;;  %v2728_v54 = vadd.f32 %v2727_v27, %v2019_v44  ;;  %v4497_v1 = vor.u32 %v4861_v39, %v4494_v62  ;;  %v4853_v27 = vld [vmem:[%s5074_s23 + $0xa4c] sm:$0xf] }
 0x2a7   : > { %3096 = vmatpush.bf16.xpose.msrb.mxu3 %v4529_v40  ;;  %3086 = vmatpush.bf16.xpose.msrb.mxu2 %v4461_v50 }
 0x2a9   : > { %3057 = vmatpush.bf16.xpose.msrb.mxu0 %v4469_v53 }
 0x2ad   : > { %v2687_v42 = vpop.f32.mrf.mxu1  ;;  %v2729_v56 = vpop.f32.mrf.mxu0 }
 0x2ae   : > { %v2688_v30 = vadd.f32 %v2687_v42, %v2674_v22  ;;  %v2730_v63 = vadd.f32 %v2729_v56, %v2019_v44  ;;  %v4478_v42 = vld [vmem:[%s5074_s23 + $0xa78] sm:$0xf0] }
 0x2af   : > { %v4481_v21 = vor.u32 %v4857_v25, %v4478_v42 }
 0x2b1   : > { %3058 = vmatpush.bf16.xpose.msrb.mxu0 %v4453_v11  ;;  %v4513_v11 = vor.u32 %v4865_v4, %v4510_v5 }
 0x2b3   : > { %3097 = vmatpush.bf16.xpose.msrb.mxu3 %v4513_v11 }
 0x2b5   : > { %v2741_v34 = vpop.f32.mrf.mxu1  ;;  %v2783_v3 = vpop.f32.mrf.mxu0 }
 0x2b6   : > { %v2742_v20 = vadd.f32 %v2741_v34, %v2728_v54  ;;  %v2784_v17 = vadd.f32 %v2783_v3, %v2020_v12  ;;  %v2021_v54 = vperm.slane %v5332_v37, 3 }
 0x2bb   : > { %3098 = vmatpush.bf16.xpose.msrb.mxu3 %v4497_v1 }
 0x2bd   : > { %v2743_v58 = vpop.f32.mrf.mxu1  ;;  %v2785_v22 = vpop.f32.mrf.mxu0 }
 0x2be   : > { %v2744_v47 = vadd.f32 %v2743_v58, %v2730_v63  ;;  %v2786_v48 = vadd.f32 %v2785_v22, %v2020_v12 }
 0x2c1   : > { %v2699_v8 = vpop.f32.mrf.mxu2 }
 0x2c2   : > { %v2700_v31 = vadd.f32 %v2699_v8, %v2686_v7 }
 0x2c3   : > { %3099 = vmatpush.bf16.xpose.msrb.mxu3 %v4481_v21 }
 0x2c5   : > { %v2797_v9 = vpop.f32.mrf.mxu1 }
 0x2c6   : > { %v2798_v36 = vadd.f32 %v2797_v9, %v2784_v17 }
 0x2c9   : > { %v2701_v19 = vpop.f32.mrf.mxu2 }
 0x2ca   : > { %v2702_v45 = vadd.f32 %v2701_v19, %v2688_v30 }
 0x2d1   : > { %v2755_v41 = vpop.f32.mrf.mxu2 }
 0x2d2   : > { %v2756_v0 = vadd.f32 %v2755_v41, %v2742_v20 }
 0x2d5   : > { %v2839_v50 = vpop.f32.mrf.mxu0 }
 0x2d9   : > { %v2757_v60 = vpop.f32.mrf.mxu2 }
 0x2da   : > { %v2758_v8 = vadd.f32 %v2757_v60, %v2744_v47  ;;  %v4917_v47 = vpop.eup %4916 }
 0x2dd   : > { %v2841_v4 = vpop.f32.mrf.mxu0 }
 0x2e1   : > { %v2713_v24 = vpop.f32.mrf.mxu3  ;;  %v2811_v15 = vpop.f32.mrf.mxu2 }
 0x2e2   : > { %v2714_v35 = vadd.f32 %v2713_v24, %v2700_v31  ;;  %v2799_v24 = vpop.f32.mrf.mxu1  ;;  %v2812_v26 = vadd.f32 %v2811_v15, %v2798_v36  ;;  %v4462_v31 = vld [vmem:[%s5074_s23 + $0xa58] sm:$0xf0] }
 0x2e3   : > { %v2800_v33 = vadd.f32 %v2799_v24, %v2786_v48  ;;  %v4465_v38 = vor.u32 %v4853_v27, %v4462_v31  ;;  %v4926_v27 = vld [vmem:[%s5995_s2 + $0x8] sm:$0xff] }
 0x2e4   : > { %v2894_v52 = vmul.f32 0.01, %v2714_v35  ;;  %vm2886_vm14 = vcmp.ge.f32.partialorder %v2714_v35, 0.0 }
 0x2e5   : > { %3100 = vmatpush.bf16.xpose.msrb.mxu3 %v4465_v38 }
 0x2e6   : > { %v2902_v28 = vsel %vm2886_vm14, %v2714_v35, %v2894_v52 }
 0x2e9   : > { %v2715_v32 = vpop.f32.mrf.mxu3  ;;  %v2813_v30 = vpop.f32.mrf.mxu2 }
 0x2ea   : > { %v2716_v53 = vadd.f32 %v2715_v32, %v2702_v45  ;;  %v2814_v35 = vadd.f32 %v2813_v30, %v2800_v33  ;;  %v2853_v52 = vpop.f32.mrf.mxu1  ;;  %v4927_v30 = vld [vmem:[%s5995_s2 + $0x18] sm:$0xff] }
 0x2eb   : > { %v194_v31 = vsel %vm5194_vm2, %v4926_v27, %v4927_v30 }
 0x2ec   : > { %vm2890_vm15 = vcmp.ge.f32.partialorder %v2716_v53, 0.0  ;;  %v2898_v55 = vmul.f32 0.01, %v2716_v53 }
 0x2ee   : > { %v2906_v57 = vsel %vm2890_vm15, %v2716_v53, %v2898_v55  ;;  %v2840_v55 = vadd.f32 %v2839_v50, %v2021_v54 }
 0x2ef   : > { %v2910_v59 = vpack.c.bf16 %v2906_v57, %v2902_v28  ;;  %v2842_v57 = vadd.f32 %v2841_v4, %v2021_v54 }
 0x2f0   : > { %v2854_v5 = vadd.f32 %v2853_v52, %v2840_v55 }
 0x2f1   : > { %v2769_v61 = vpop.f32.mrf.mxu3  ;;  %3059 = vmatmul.bf16.vlgmr.msrb.gmra.mxu0 %v2910_v59 }
 0x2f2   : > { %v2770_v2 = vadd.f32 %v2769_v61, %v2756_v0  ;;  %v2855_v28 = vpop.f32.mrf.mxu1 }
 0x2f3   : > { %v2856_v59 = vadd.f32 %v2855_v28, %v2842_v57 }
 0x2f4   : > { %v2895_v13 = vmul.f32 0.01, %v2770_v2  ;;  %vm2887_vm0 = vcmp.ge.f32.partialorder %v2770_v2, 0.0 }
 0x2f6   : > { %v2903_v18 = vsel %vm2887_vm0, %v2770_v2, %v2895_v13  ;;  %v3109_v2 = vsub.f32 0.0, %v4917_v47  ;;  %v4919_v13 = vpop.eup %4918 }
 0x2f9   : > { %v2771_v10 = vpop.f32.mrf.mxu3 }
 0x2fa   : > { %v2772_v14 = vadd.f32 %v2771_v10, %v2758_v8  ;;  %v2936_v8 = vperm.slane %v5325_v29, 5  ;;  %v3111_v10 = vmul.f32 1.442695, %v3109_v2  ;;  %v193_v29 = vsel %vm5194_vm2, %v4924_v51, %v4925_v6 }
 0x2fc   : > { %vm2891_vm1 = vcmp.ge.f32.partialorder %v2772_v14, 0.0  ;;  %v2899_v16 = vmul.f32 0.01, %v2772_v14  ;;  %4920 = vpow2.f32 %v3111_v10 }
 0x2fe   : > { %v2907_v19 = vsel %vm2891_vm1, %v2772_v14, %v2899_v16  ;;  %v3110_v16 = vsub.f32 0.0, %v4919_v13 }
 0x2ff   : > { %v2911_v7 = vpack.c.bf16 %v2907_v19, %v2903_v18 }
 0x300   : > { %v3113_v19 = vmul.f32 1.442695, %v3110_v16 }
 0x301   : > { %v2825_v23 = vpop.f32.mrf.mxu3  ;;  %3073 = vmatmul.bf16.vlgmr.msrb.gmra.mxu1 %v2911_v7  ;;  %v2867_v53 = vpop.f32.mrf.mxu2 }
 0x302   : > { %v2826_v34 = vadd.f32 %v2825_v23, %v2812_v26  ;;  %v2868_v11 = vadd.f32 %v2867_v53, %v2854_v5  ;;  %v4921_v23 = vpop.eup %4920  ;;  %4922 = vpow2.f32 %v3113_v19 }
 0x304   : > { %v2896_v41 = vmul.f32 0.01, %v2826_v34  ;;  %vm2888_vm4 = vcmp.ge.f32.partialorder %v2826_v34, 0.0 }
 0x306   : > { %v2904_v46 = vsel %vm2888_vm4, %v2826_v34, %v2896_v41 }
 0x309   : > { %v2827_v40 = vpop.f32.mrf.mxu3  ;;  %v2869_v58 = vpop.f32.mrf.mxu2 }
 0x30a   : > { %v2828_v44 = vadd.f32 %v2827_v40, %v2814_v35  ;;  %v2870_v60 = vadd.f32 %v2869_v58, %v2856_v59  ;;  %v4923_v35 = vpop.eup %4922 }
 0x30c   : > { %vm2892_vm5 = vcmp.ge.f32.partialorder %v2828_v44, 0.0  ;;  %v2900_v45 = vmul.f32 0.01, %v2828_v44 }
 0x30e   : > { %v2908_v49 = vsel %vm2892_vm5, %v2828_v44, %v2900_v45 }
 0x30f   : > { %v2912_v32 = vpack.c.bf16 %v2908_v49, %v2904_v46 }
 0x311   : > { %3087 = vmatmul.bf16.vlgmr.msrb.gmra.mxu2 %v2912_v32 }
 0x321   : > { %v2881_v56 = vpop.f32.mrf.mxu3 }
 0x322   : > { %v2882_v20 = vadd.f32 %v2881_v56, %v2868_v11 }
 0x324   : > { %v2897_v39 = vmul.f32 0.01, %v2882_v20  ;;  %vm2889_vm6 = vcmp.ge.f32.partialorder %v2882_v20, 0.0 }
 0x326   : > { %v2905_v0 = vsel %vm2889_vm6, %v2882_v20, %v2897_v39 }
 0x329   : > { %v2883_v61 = vpop.f32.mrf.mxu3 }
 0x32a   : > { %v2884_v62 = vadd.f32 %v2883_v61, %v2870_v60 }
 0x32c   : > { %vm2893_vm7 = vcmp.ge.f32.partialorder %v2884_v62, 0.0  ;;  %v2901_v63 = vmul.f32 0.01, %v2884_v62 }
 0x32e   : > { %v2909_v1 = vsel %vm2893_vm7, %v2884_v62, %v2901_v63 }
 0x32f   : > { %v2913_v37 = vpack.c.bf16 %v2909_v1, %v2905_v0 }
 0x331   : > { %3101 = vmatmul.bf16.vlgmr.msrb.gmra.mxu3 %v2913_v37 }
 0x36e   : > { %v3060_v3 = vpop.f32.mrf.mxu0 }
 0x36f   : > { %v3061_v14 = vadd.f32 %v3060_v3, %v2936_v8 }
 0x376   : > { %v3062_v42 = vpop.f32.mrf.mxu0 }
 0x377   : > { %v3063_v7 = vadd.f32 %v3062_v42, %v2936_v8 }
 0x37e   : > { %v3074_v9 = vpop.f32.mrf.mxu1 }
 0x37f   : > { %v3075_v15 = vadd.f32 %v3074_v9, %v3061_v14 }
 0x386   : > { %v3076_v21 = vpop.f32.mrf.mxu1 }
 0x387   : > { %v3077_v48 = vadd.f32 %v3076_v21, %v3063_v7 }
 0x394   : > { %v3088_v12 = vpop.f32.mrf.mxu2 }
 0x395   : > { %v3089_v25 = vadd.f32 %v3088_v12, %v3075_v15 }
 0x39c   : > { %v3090_v36 = vpop.f32.mrf.mxu2 }
 0x39d   : > { %v3091_v26 = vadd.f32 %v3090_v36, %v3077_v48 }
 0x3b4   : > { %v3102_v17 = vpop.f32.mrf.mxu3 }
 0x3b5   : > { %v3103_v18 = vadd.f32 %v3102_v17, %v3089_v25 }
 0x3b7   : > { %v3107_v22 = vsub.f32 %v193_v29, %v3103_v18 }
 0x3b9   : > { %v3115_v24 = vmul.f32 %v4921_v23, %v3107_v22 }
 0x3bc   : > { %v3104_v33 = vpop.f32.mrf.mxu3 }
 0x3bd   : > { %v3105_v34 = vadd.f32 %v3104_v33, %v3091_v26  ;;  %3119 = sbr.rel (%p4530_p10) target bundleno = 964 (0x3c4), region = 40 }
 0x3bf   : > { %v3108_v38 = vsub.f32 %v194_v31, %v3105_v34 }
 0x3c1   : > { %v3116_v40 = vmul.f32 %v4923_v35, %v3108_v38 }
 0x3c2   : > { %3120 = vst.msk [vmem:[%s5995_s2] sm:$0xff] %vm338_vm3, %v3115_v24 }
 0x3c3   : > { %3121 = vst.msk [vmem:[%s5995_s2 + $0x8] sm:$0xff] %vm338_vm3, %v3116_v40 }
 0x3c4 PF: > { %p4531_p11 = scmp.ne.s32.totalorder %s6007_s21, 1 }
 0x3c6   : > { %3125 = sbr.rel (%p4531_p11) target bundleno = 973 (0x3cd), region = 44 }
 0x3cb   : > { %4532 = vst.msk [vmem:[%s5995_s2 + $0x10] sm:$0xff] %vm338_vm3, %v3115_v24 }
 0x3cc   : > { %4533 = vst.msk [vmem:[%s5995_s2 + $0x18] sm:$0xff] %vm338_vm3, %v3116_v40 }
 0x3cd PF: > { %p12_p12 = scmp.ge.s32.totalorder %s5033_s14, 18   ;;  %s6000_s9 = smov %s4984_s10 }
 0x3ce   : > { %s6001_s10 = smov %s4988_s11  ;;  %s6002_s11 = smov %s5043_s19 }
 0x3cf   : > { %s6003_s12 = smov %s5033_s14  ;;  %14 = sbr.rel (!%p12_p12) target bundleno = 3 (0x3), region = 77 }
 0x3d4   :  { %3139 = vsyncpa [#allocation3], 1 }
 0x3d5   :  { %3141 = vsyncpa [#allocation3 + $0x1], 1 }

</bundles_post_ra>
